<compile_context>
chip_gen: v5e
topology: v5e:2x2
jax: 0.10.0
libtpu: 0.0.40
codegen_flags: <defaults>
</compile_context>

<pallas_src>
import math
import functools

import jax
import jax.numpy as jnp
from jax.experimental import pallas as pl
from jax.experimental.pallas import tpu as pltpu

VMEM_SPEC = pl.BlockSpec(memory_space=pltpu.MemorySpace.VMEM)


# ----------------------------------------------------------------------------
# Fused forward kernel: whole transformer in one pallas_call.
# ----------------------------------------------------------------------------
def _fused_forward_kernel(x_ref, w_ref, vec_ref, outw_ref, o_ref, *,
                          S, Sd, A, D, O, n_X, n_enc, n_dec):
    f32 = jnp.float32
    bf16 = jnp.bfloat16
    scale = 1.0 / math.sqrt(A)

    # ---- static row offsets inside the packed vector slab ------------------
    r_enc_in_w = 0
    r_enc_in_b = n_X
    r_dec_in_w = n_X + 1
    r_dec_in_b = 2 * n_X + 1
    r_out_b = 2 * n_X + 2
    r_pe = 2 * n_X + 3
    r_enc_vec = r_pe + S
    r_dec_vec = r_enc_vec + 6 * n_enc

    def vrow(r):                      # (1, D) f32 row of the vector slab
        return vec_ref[r:r + 1, :]

    def vrows(r, n):                  # (n, D) f32 rows of the vector slab
        return vec_ref[r:r + n, :]

    def mm(h, w):                     # (B,S,K) @ (K,N) on the MXU in bf16
        return jnp.einsum("bsk,kn->bsn", h.astype(bf16), w.astype(bf16),
                          preferred_element_type=f32)

    def softmax_last(s):
        s = s - jnp.max(s, axis=-1, keepdims=True)
        p = jnp.exp(s)
        return p * pl.reciprocal(jnp.sum(p, axis=-1, keepdims=True),
                                 approx=True)

    def layernorm(h, g, b):           # torch LayerNorm defaults (eps=1e-5)
        mean = jnp.mean(h, axis=-1, keepdims=True)
        var = jnp.mean((h - mean) ** 2, axis=-1, keepdims=True)
        return (h - mean) * jax.lax.rsqrt(var + 1e-5) * g + b

    def elu(h):                       # F.elu alpha=1 (overflow-safe branch)
        return jnp.where(h > 0, h, jnp.exp(jnp.minimum(h, 0.0)) - 1.0)

    def attn_core(q, k, v):
        s = jnp.einsum("bqa,bka->bqk", q.astype(bf16), k.astype(bf16),
                       preferred_element_type=f32) * scale
        p = softmax_last(s)
        return jnp.einsum("bqk,bkd->bqd", p.astype(bf16), v.astype(bf16),
                          preferred_element_type=f32)

    # Weight group layout (each group is a (D, 128) bf16 tile):
    #   ATTN group : [Wq (A) | Wk (A) | Wv (D) | Wfc (D) | zero-pad]
    #   FFN  group : [fc2 (D) | fc1 (D) | zero-pad]
    def self_attn(h, g):
        qkv = mm(h, g[:, 0:2 * A + D])              # fused Q|K|V projection
        q = qkv[..., 0:A]
        k = qkv[..., A:2 * A]
        v = qkv[..., 2 * A:2 * A + D]
        a = attn_core(q, k, v)
        return mm(a, g[:, 2 * A + D:2 * A + 2 * D])  # attention out-fc

    def cross_attn(h, kv_src, g):
        q = mm(h, g[:, 0:A])
        kv = mm(kv_src, g[:, A:2 * A + D])          # fused K|V projection
        k = kv[..., 0:A]
        v = kv[..., A:A + D]
        a = attn_core(q, k, v)
        return mm(a, g[:, 2 * A + D:2 * A + 2 * D])

    def ffn(h, g, fc2_b, fc1_b):                    # fc1(elu(fc2(h)))
        t = elu(mm(h, g[:, 0:D]) + fc2_b)
        return mm(t, g[:, D:2 * D]) + fc1_b

    # ------------------------- encoder path ---------------------------------
    x = x_ref[...].astype(f32)                      # (B, S, n_X)
    e = jnp.einsum("bsk,kn->bsn", x, vrows(r_enc_in_w, n_X),
                   preferred_element_type=f32)
    e = e + vrow(r_enc_in_b) + vrows(r_pe, S)       # bias + positional enc

    for l in range(n_enc):
        g_attn = w_ref[2 * l]
        g_ffn = w_ref[2 * l + 1]
        vb = r_enc_vec + 6 * l
        a = self_attn(e, g_attn)
        e = layernorm(e + a, vrow(vb + 2), vrow(vb + 3))
        a = ffn(e, g_ffn, vrow(vb + 0), vrow(vb + 1))
        e = layernorm(e + a, vrow(vb + 4), vrow(vb + 5))

    # ------------------------- decoder path ---------------------------------
    xd = x[:, S - Sd:, :]                           # decoder input slice
    d = jnp.einsum("bsk,kn->bsn", xd, vrows(r_dec_in_w, n_X),
                   preferred_element_type=f32)
    d = d + vrow(r_dec_in_b)

    g_dec0 = 2 * n_enc
    for l in range(n_dec):
        g_a1 = w_ref[g_dec0 + 3 * l]
        g_a2 = w_ref[g_dec0 + 3 * l + 1]
        g_ff = w_ref[g_dec0 + 3 * l + 2]
        vb = r_dec_vec + 8 * l

        a = self_attn(d, g_a1)                      # self-attention
        d = layernorm(a + d, vrow(vb + 2), vrow(vb + 3))

        a = cross_attn(d, e, g_a2)                  # cross-attention (kv = e)
        d = layernorm(a + d, vrow(vb + 4), vrow(vb + 5))

        a = ffn(d, g_ff, vrow(vb + 0), vrow(vb + 1))
        d = layernorm(d + a, vrow(vb + 6), vrow(vb + 7))

    # ------------------------- output head ----------------------------------
    # out_fc(d.flatten(start_dim=1)): lane-concatenate the Sd positions and do
    # a single K = Sd*D matmul (no scratch, one MXU push chain).
    d_flat = jnp.concatenate([d[:, s:s + 1, :] for s in range(Sd)], axis=-1)
    out = jnp.einsum("bxk,ko->bxo", d_flat.astype(bf16), outw_ref[...],
                     preferred_element_type=f32)    # (B, 1, O)
    out = out + vrow(r_out_b)[:, 0:O]
    o_ref[...] = out.astype(o_ref.dtype)


# ----------------------------------------------------------------------------
# Parameter init: weights stored as (in, out) and packed into slabs.
# ----------------------------------------------------------------------------
def _positional_encoding_table(d_model, max_len):
    position = jnp.arange(max_len, dtype=jnp.float32)[:, None]
    div_term = jnp.exp(jnp.arange(0, d_model, 2, dtype=jnp.float32)
                       * (-math.log(10000.0) / d_model))
    pe = jnp.zeros((max_len, d_model), jnp.float32)
    pe = pe.at[:, 0::2].set(jnp.sin(position * div_term))
    pe = pe.at[:, 1::2].set(jnp.cos(position * div_term))
    return pe


def init_params(key, *, dim_val, dim_attn, n_X_features, n_Y_features,
                seq_len, dec_seq_len, out_seq_len,
                n_encoder_layers, n_decoder_layers, n_heads=1):
    assert n_heads == 1, "kernel implements the module's default n_heads=1"
    assert n_encoder_layers >= 1 and n_decoder_layers >= 1
    D, A, S, Sd = dim_val, dim_attn, seq_len, dec_seq_len
    O = out_seq_len * n_Y_features
    LANES = 128
    assert 2 * A + 2 * D <= LANES and 2 * D <= LANES, "weight group too wide"
    assert O <= D, "out_fc bias packed into a single (1, D) slab row"

    n_keys = 3 + 6 * n_encoder_layers + 10 * n_decoder_layers
    keys = iter(jax.random.split(key, n_keys))

    def dense(shape, scale=0.1):
        return scale * jax.random.normal(next(keys), shape, jnp.float32)

    def pad_lanes(mats):             # concat along lanes, zero-pad to 128
        m = jnp.concatenate(mats, axis=1)
        return jnp.pad(m, ((0, 0), (0, LANES - m.shape[1])))

    ones = jnp.ones((1, D), jnp.float32)
    zeros = jnp.zeros((1, D), jnp.float32)

    groups, enc_vecs, dec_vecs = [], [], []
    for _ in range(n_encoder_layers):
        groups.append(pad_lanes([dense((D, A)), dense((D, A)),     # Wq|Wk
                                 dense((D, D)), dense((D, D))]))   # Wv|Wfc
        groups.append(pad_lanes([dense((D, D)), dense((D, D))]))   # fc2|fc1
        enc_vecs += [zeros, zeros,                                 # fc2_b,fc1_b
                     ones, zeros, ones, zeros]                     # n1, n2 g/b
    for _ in range(n_decoder_layers):
        groups.append(pad_lanes([dense((D, A)), dense((D, A)),     # attn1
                                 dense((D, D)), dense((D, D))]))
        groups.append(pad_lanes([dense((D, A)), dense((D, A)),     # attn2
                                 dense((D, D)), dense((D, D))]))
        groups.append(pad_lanes([dense((D, D)), dense((D, D))]))   # fc2|fc1
        dec_vecs += [zeros, zeros,                                 # fc2_b,fc1_b
                     ones, zeros, ones, zeros, ones, zeros]        # n1/n2/n3

    enc_in_w = dense((n_X_features, D))
    dec_in_w = dense((n_X_features, D))
    out_w = dense((Sd * D, O))
    out_b_row = jnp.zeros((1, D), jnp.float32)      # out_fc bias, padded to D
    pe = _positional_encoding_table(D, S)           # (S, D)

    vec_slab = jnp.concatenate(
        [enc_in_w, zeros,            # enc_input_fc W (n_X rows) + bias
         dec_in_w, zeros,            # dec_input_fc W (n_X rows) + bias
         out_b_row, pe] + enc_vecs + dec_vecs, axis=0)

    return dict(
        w_slab=jnp.stack(groups).astype(jnp.bfloat16),   # (G, D, 128)
        vec_slab=vec_slab,                               # (R, D) f32
        out_w=out_w.astype(jnp.bfloat16),                # (Sd*D, O)
    )


# ----------------------------------------------------------------------------
# Forward wrapper: one fused pallas_call (no grid — everything fits in VMEM).
# ----------------------------------------------------------------------------
def transformer_forward(params, x, *, dim_attn, dec_seq_len, out_seq_len,
                        n_Y_features, n_encoder_layers, n_decoder_layers):
    B, S, n_X = x.shape
    D = params["vec_slab"].shape[1]
    O = out_seq_len * n_Y_features

    kernel = functools.partial(
        _fused_forward_kernel,
        S=S, Sd=dec_seq_len, A=dim_attn, D=D, O=O, n_X=n_X,
        n_enc=n_encoder_layers, n_dec=n_decoder_layers)

    out = pl.pallas_call(
        kernel,
        out_shape=jax.ShapeDtypeStruct((B, 1, O), jnp.float32),
        in_specs=[VMEM_SPEC] * 4,
        out_specs=VMEM_SPEC,
    )(x, params["w_slab"], params["vec_slab"], params["out_w"])
    return out.reshape(B, out_seq_len, n_Y_features)


# ----------------------------------------------------------------------------
if __name__ == "__main__":
    B = 2
    seq_len = 16
    n_X_features = 4
    n_Y_features = 2
    dim_val = 32
    dim_attn = 16
    dec_seq_len = 4
    out_seq_len = 8
    n_encoder_layers = 2
    n_decoder_layers = 2

    key = jax.random.PRNGKey(0)
    k_param, k_x = jax.random.split(key)

    params = init_params(
        k_param,
        dim_val=dim_val, dim_attn=dim_attn,
        n_X_features=n_X_features, n_Y_features=n_Y_features,
        seq_len=seq_len, dec_seq_len=dec_seq_len, out_seq_len=out_seq_len,
        n_encoder_layers=n_encoder_layers, n_decoder_layers=n_decoder_layers,
        n_heads=1,
    )

    x = jax.random.normal(k_x, (B, seq_len, n_X_features), jnp.float32)

    fwd = jax.jit(functools.partial(
        transformer_forward,
        dim_attn=dim_attn,
        dec_seq_len=dec_seq_len,
        out_seq_len=out_seq_len,
        n_Y_features=n_Y_features,
        n_encoder_layers=n_encoder_layers,
        n_decoder_layers=n_decoder_layers,
    ))

    y = fwd(params, x)
    jax.block_until_ready(y)
    assert y.shape == (B, out_seq_len, n_Y_features)
    assert bool(jnp.all(jnp.isfinite(y)))
    print("KERNEL_OK")
</pallas_src>

<mosaic_0001>
module attributes {stable_mosaic.version = 11 : i64} {
  func.func @_fused_forward_kernel(%arg0: memref<2x16x4xf32, #tpu.memory_space<vmem>>, %arg1: memref<10x32x128xbf16, #tpu.memory_space<vmem>>, %arg2: memref<55x32xf32, #tpu.memory_space<vmem>>, %arg3: memref<128x16xbf16, #tpu.memory_space<vmem>>, %arg4: memref<2x1x16xf32, #tpu.memory_space<vmem>>) attributes {dimension_semantics = [], scalar_prefetch = 0 : i64, scratch_operands = 0 : i64, tpu.core_type = #tpu.core_type<tc>} {
    %c0 = arith.constant 0 : index
    %c0_0 = arith.constant 0 : index
    %c0_1 = arith.constant 0 : index
    %0 = vector.load %arg0[%c0, %c0_0, %c0_1] : memref<2x16x4xf32, #tpu.memory_space<vmem>>, vector<2x16x4xf32>
    %c0_2 = arith.constant 0 : index
    %c0_3 = arith.constant 0 : index
    %1 = vector.load %arg2[%c0_2, %c0_3] : memref<55x32xf32, #tpu.memory_space<vmem>>, vector<4x32xf32>
    "tpu.trace_start"() <{level = 10 : i32, message = "bsk,kn->bsn"}> : () -> ()
    %cst = arith.constant dense<0.000000e+00> : vector<2x16x32xf32>
    %2 = tpu.matmul %0, %1, %cst {dimension_numbers = #tpu.dot_dimension_numbers<[2], [0], [0, 1], [1], [0, 0, 0, 1, 1, 1], [], []>} : vector<2x16x4xf32>, vector<4x32xf32>, vector<2x16x32xf32> -> vector<2x16x32xf32>
    "tpu.trace_stop"() : () -> ()
    %c4 = arith.constant 4 : index
    %c0_4 = arith.constant 0 : index
    %3 = vector.load %arg2[%c4, %c0_4] : memref<55x32xf32, #tpu.memory_space<vmem>>, vector<1x32xf32>
    %4 = vector.shape_cast %3 : vector<1x32xf32> to vector<1x1x32xf32>
    %5 = vector.broadcast %4 : vector<1x1x32xf32> to vector<2x16x32xf32>
    %6 = arith.addf %2, %5 : vector<2x16x32xf32>
    %c11 = arith.constant 11 : index
    %c0_5 = arith.constant 0 : index
    %7 = vector.load %arg2[%c11, %c0_5] : memref<55x32xf32, #tpu.memory_space<vmem>>, vector<16x32xf32>
    %8 = vector.shape_cast %7 : vector<16x32xf32> to vector<1x16x32xf32>
    %9 = vector.broadcast %8 : vector<1x16x32xf32> to vector<2x16x32xf32>
    %10 = arith.addf %6, %9 : vector<2x16x32xf32>
    %c0_6 = arith.constant 0 : index
    %c0_7 = arith.constant 0 : index
    %c0_8 = arith.constant 0 : index
    %11 = vector.load %arg1[%c0_6, %c0_7, %c0_8] : memref<10x32x128xbf16, #tpu.memory_space<vmem>>, vector<1x32x128xbf16>
    %12 = vector.shape_cast %11 : vector<1x32x128xbf16> to vector<32x128xbf16>
    %c1 = arith.constant 1 : index
    %c0_9 = arith.constant 0 : index
    %c0_10 = arith.constant 0 : index
    %13 = vector.load %arg1[%c1, %c0_9, %c0_10] : memref<10x32x128xbf16, #tpu.memory_space<vmem>>, vector<1x32x128xbf16>
    %14 = vector.shape_cast %13 : vector<1x32x128xbf16> to vector<32x128xbf16>
    %15 = vector.extract_strided_slice %12 {offsets = [0, 0], sizes = [32, 64], strides = [1, 1]} : vector<32x128xbf16> to vector<32x64xbf16>
    %16 = arith.truncf %10 : vector<2x16x32xf32> to vector<2x16x32xbf16>
    "tpu.trace_start"() <{level = 10 : i32, message = "bsk,kn->bsn"}> : () -> ()
    %cst_11 = arith.constant dense<0.000000e+00> : vector<2x16x64xf32>
    %17 = tpu.matmul %16, %15, %cst_11 {dimension_numbers = #tpu.dot_dimension_numbers<[2], [0], [0, 1], [1], [0, 0, 0, 1, 1, 1], [], []>} : vector<2x16x32xbf16>, vector<32x64xbf16>, vector<2x16x64xf32> -> vector<2x16x64xf32>
    "tpu.trace_stop"() : () -> ()
    %18 = vector.extract_strided_slice %17 {offsets = [0, 0, 0], sizes = [2, 16, 16], strides = [1, 1, 1]} : vector<2x16x64xf32> to vector<2x16x16xf32>
    %19 = vector.extract_strided_slice %17 {offsets = [0, 0, 16], sizes = [2, 16, 16], strides = [1, 1, 1]} : vector<2x16x64xf32> to vector<2x16x16xf32>
    %20 = vector.extract_strided_slice %17 {offsets = [0, 0, 32], sizes = [2, 16, 32], strides = [1, 1, 1]} : vector<2x16x64xf32> to vector<2x16x32xf32>
    %21 = arith.truncf %18 : vector<2x16x16xf32> to vector<2x16x16xbf16>
    %22 = arith.truncf %19 : vector<2x16x16xf32> to vector<2x16x16xbf16>
    "tpu.trace_start"() <{level = 10 : i32, message = "bqa,bka->bqk"}> : () -> ()
    %cst_12 = arith.constant dense<0.000000e+00> : vector<2x16x16xf32>
    %23 = tpu.matmul %21, %22, %cst_12 {dimension_numbers = #tpu.dot_dimension_numbers<[2], [2], [1], [1], [0, 0, 0, 1, 1, 1], [0], [0]>} : vector<2x16x16xbf16>, vector<2x16x16xbf16>, vector<2x16x16xf32> -> vector<2x16x16xf32>
    "tpu.trace_stop"() : () -> ()
    %cst_13 = arith.constant 2.500000e-01 : f32
    %24 = vector.broadcast %cst_13 : f32 to vector<2x16x16xf32>
    %25 = arith.mulf %23, %24 : vector<2x16x16xf32>
    %cst_14 = arith.constant dense<0xFF800000> : vector<2x16xf32>
    %26 = vector.multi_reduction <maximumf>, %25, %cst_14 [2] : vector<2x16x16xf32> to vector<2x16xf32>
    %27 = vector.shape_cast %26 : vector<2x16xf32> to vector<2x16x1xf32>
    %28 = vector.broadcast %27 : vector<2x16x1xf32> to vector<2x16x16xf32>
    %29 = arith.subf %25, %28 : vector<2x16x16xf32>
    %30 = math.exp %29 : vector<2x16x16xf32>
    %cst_15 = arith.constant dense<0.000000e+00> : vector<2x16xf32>
    %31 = vector.multi_reduction <add>, %30, %cst_15 [2] : vector<2x16x16xf32> to vector<2x16xf32>
    %32 = vector.shape_cast %31 : vector<2x16xf32> to vector<2x16x1xf32>
    %33 = tpu.reciprocal %32 {approx = true} : vector<2x16x1xf32> -> vector<2x16x1xf32>
    %34 = vector.broadcast %33 : vector<2x16x1xf32> to vector<2x16x16xf32>
    %35 = arith.mulf %30, %34 : vector<2x16x16xf32>
    %36 = arith.truncf %35 : vector<2x16x16xf32> to vector<2x16x16xbf16>
    %37 = arith.truncf %20 : vector<2x16x32xf32> to vector<2x16x32xbf16>
    "tpu.trace_start"() <{level = 10 : i32, message = "bqk,bkd->bqd"}> : () -> ()
    %cst_16 = arith.constant dense<0.000000e+00> : vector<2x16x32xf32>
    %38 = tpu.matmul %36, %37, %cst_16 {dimension_numbers = #tpu.dot_dimension_numbers<[2], [1], [1], [2], [0, 0, 0, 1, 1, 2], [0], [0]>} : vector<2x16x16xbf16>, vector<2x16x32xbf16>, vector<2x16x32xf32> -> vector<2x16x32xf32>
    "tpu.trace_stop"() : () -> ()
    %39 = vector.extract_strided_slice %12 {offsets = [0, 64], sizes = [32, 32], strides = [1, 1]} : vector<32x128xbf16> to vector<32x32xbf16>
    %40 = arith.truncf %38 : vector<2x16x32xf32> to vector<2x16x32xbf16>
    "tpu.trace_start"() <{level = 10 : i32, message = "bsk,kn->bsn"}> : () -> ()
    %cst_17 = arith.constant dense<0.000000e+00> : vector<2x16x32xf32>
    %41 = tpu.matmul %40, %39, %cst_17 {dimension_numbers = #tpu.dot_dimension_numbers<[2], [0], [0, 1], [1], [0, 0, 0, 1, 1, 1], [], []>} : vector<2x16x32xbf16>, vector<32x32xbf16>, vector<2x16x32xf32> -> vector<2x16x32xf32>
    "tpu.trace_stop"() : () -> ()
    %42 = arith.addf %10, %41 : vector<2x16x32xf32>
    %c29 = arith.constant 29 : index
    %c0_18 = arith.constant 0 : index
    %43 = vector.load %arg2[%c29, %c0_18] : memref<55x32xf32, #tpu.memory_space<vmem>>, vector<1x32xf32>
    %c30 = arith.constant 30 : index
    %c0_19 = arith.constant 0 : index
    %44 = vector.load %arg2[%c30, %c0_19] : memref<55x32xf32, #tpu.memory_space<vmem>>, vector<1x32xf32>
    %cst_20 = arith.constant dense<0.000000e+00> : vector<2x16xf32>
    %45 = vector.multi_reduction <add>, %42, %cst_20 [2] : vector<2x16x32xf32> to vector<2x16xf32>
    %46 = vector.shape_cast %45 : vector<2x16xf32> to vector<2x16x1xf32>
    %cst_21 = arith.constant 3.200000e+01 : f32
    %47 = vector.broadcast %cst_21 : f32 to vector<2x16x1xf32>
    %48 = arith.divf %46, %47 : vector<2x16x1xf32>
    %49 = vector.broadcast %48 : vector<2x16x1xf32> to vector<2x16x32xf32>
    %50 = arith.subf %42, %49 : vector<2x16x32xf32>
    %51 = arith.mulf %50, %50 : vector<2x16x32xf32>
    %cst_22 = arith.constant dense<0.000000e+00> : vector<2x16xf32>
    %52 = vector.multi_reduction <add>, %51, %cst_22 [2] : vector<2x16x32xf32> to vector<2x16xf32>
    %53 = vector.shape_cast %52 : vector<2x16xf32> to vector<2x16x1xf32>
    %cst_23 = arith.constant 3.200000e+01 : f32
    %54 = vector.broadcast %cst_23 : f32 to vector<2x16x1xf32>
    %55 = arith.divf %53, %54 : vector<2x16x1xf32>
    %56 = vector.broadcast %48 : vector<2x16x1xf32> to vector<2x16x32xf32>
    %57 = arith.subf %42, %56 : vector<2x16x32xf32>
    %cst_24 = arith.constant 9.99999974E-6 : f32
    %58 = vector.broadcast %cst_24 : f32 to vector<2x16x1xf32>
    %59 = arith.addf %55, %58 : vector<2x16x1xf32>
    %60 = math.rsqrt %59 : vector<2x16x1xf32>
    %61 = vector.broadcast %60 : vector<2x16x1xf32> to vector<2x16x32xf32>
    %62 = arith.mulf %57, %61 : vector<2x16x32xf32>
    %63 = vector.shape_cast %43 : vector<1x32xf32> to vector<1x1x32xf32>
    %64 = vector.broadcast %63 : vector<1x1x32xf32> to vector<2x16x32xf32>
    %65 = arith.mulf %62, %64 : vector<2x16x32xf32>
    %66 = vector.shape_cast %44 : vector<1x32xf32> to vector<1x1x32xf32>
    %67 = vector.broadcast %66 : vector<1x1x32xf32> to vector<2x16x32xf32>
    %68 = arith.addf %65, %67 : vector<2x16x32xf32>
    %c27 = arith.constant 27 : index
    %c0_25 = arith.constant 0 : index
    %69 = vector.load %arg2[%c27, %c0_25] : memref<55x32xf32, #tpu.memory_space<vmem>>, vector<1x32xf32>
    %c28 = arith.constant 28 : index
    %c0_26 = arith.constant 0 : index
    %70 = vector.load %arg2[%c28, %c0_26] : memref<55x32xf32, #tpu.memory_space<vmem>>, vector<1x32xf32>
    %71 = vector.extract_strided_slice %14 {offsets = [0, 0], sizes = [32, 32], strides = [1, 1]} : vector<32x128xbf16> to vector<32x32xbf16>
    %72 = arith.truncf %68 : vector<2x16x32xf32> to vector<2x16x32xbf16>
    "tpu.trace_start"() <{level = 10 : i32, message = "bsk,kn->bsn"}> : () -> ()
    %cst_27 = arith.constant dense<0.000000e+00> : vector<2x16x32xf32>
    %73 = tpu.matmul %72, %71, %cst_27 {dimension_numbers = #tpu.dot_dimension_numbers<[2], [0], [0, 1], [1], [0, 0, 0, 1, 1, 1], [], []>} : vector<2x16x32xbf16>, vector<32x32xbf16>, vector<2x16x32xf32> -> vector<2x16x32xf32>
    "tpu.trace_stop"() : () -> ()
    %74 = vector.shape_cast %69 : vector<1x32xf32> to vector<1x1x32xf32>
    %75 = vector.broadcast %74 : vector<1x1x32xf32> to vector<2x16x32xf32>
    %76 = arith.addf %73, %75 : vector<2x16x32xf32>
    %cst_28 = arith.constant 0.000000e+00 : f32
    %77 = vector.broadcast %cst_28 : f32 to vector<2x16x32xf32>
    %78 = arith.cmpf ogt, %76, %77 : vector<2x16x32xf32>
    %cst_29 = arith.constant 0.000000e+00 : f32
    %79 = vector.broadcast %cst_29 : f32 to vector<2x16x32xf32>
    %80 = arith.minimumf %76, %79 : vector<2x16x32xf32>
    %81 = math.exp %80 : vector<2x16x32xf32>
    %cst_30 = arith.constant 1.000000e+00 : f32
    %82 = vector.broadcast %cst_30 : f32 to vector<2x16x32xf32>
    %83 = arith.subf %81, %82 : vector<2x16x32xf32>
    %84 = arith.select %78, %76, %83 : vector<2x16x32xi1>, vector<2x16x32xf32>
    %85 = vector.extract_strided_slice %14 {offsets = [0, 32], sizes = [32, 32], strides = [1, 1]} : vector<32x128xbf16> to vector<32x32xbf16>
    %86 = arith.truncf %84 : vector<2x16x32xf32> to vector<2x16x32xbf16>
    "tpu.trace_start"() <{level = 10 : i32, message = "bsk,kn->bsn"}> : () -> ()
    %cst_31 = arith.constant dense<0.000000e+00> : vector<2x16x32xf32>
    %87 = tpu.matmul %86, %85, %cst_31 {dimension_numbers = #tpu.dot_dimension_numbers<[2], [0], [0, 1], [1], [0, 0, 0, 1, 1, 1], [], []>} : vector<2x16x32xbf16>, vector<32x32xbf16>, vector<2x16x32xf32> -> vector<2x16x32xf32>
    "tpu.trace_stop"() : () -> ()
    %88 = vector.shape_cast %70 : vector<1x32xf32> to vector<1x1x32xf32>
    %89 = vector.broadcast %88 : vector<1x1x32xf32> to vector<2x16x32xf32>
    %90 = arith.addf %87, %89 : vector<2x16x32xf32>
    %91 = arith.addf %68, %90 : vector<2x16x32xf32>
    %c31 = arith.constant 31 : index
    %c0_32 = arith.constant 0 : index
    %92 = vector.load %arg2[%c31, %c0_32] : memref<55x32xf32, #tpu.memory_space<vmem>>, vector<1x32xf32>
    %c32 = arith.constant 32 : index
    %c0_33 = arith.constant 0 : index
    %93 = vector.load %arg2[%c32, %c0_33] : memref<55x32xf32, #tpu.memory_space<vmem>>, vector<1x32xf32>
    %cst_34 = arith.constant dense<0.000000e+00> : vector<2x16xf32>
    %94 = vector.multi_reduction <add>, %91, %cst_34 [2] : vector<2x16x32xf32> to vector<2x16xf32>
    %95 = vector.shape_cast %94 : vector<2x16xf32> to vector<2x16x1xf32>
    %cst_35 = arith.constant 3.200000e+01 : f32
    %96 = vector.broadcast %cst_35 : f32 to vector<2x16x1xf32>
    %97 = arith.divf %95, %96 : vector<2x16x1xf32>
    %98 = vector.broadcast %97 : vector<2x16x1xf32> to vector<2x16x32xf32>
    %99 = arith.subf %91, %98 : vector<2x16x32xf32>
    %100 = arith.mulf %99, %99 : vector<2x16x32xf32>
    %cst_36 = arith.constant dense<0.000000e+00> : vector<2x16xf32>
    %101 = vector.multi_reduction <add>, %100, %cst_36 [2] : vector<2x16x32xf32> to vector<2x16xf32>
    %102 = vector.shape_cast %101 : vector<2x16xf32> to vector<2x16x1xf32>
    %cst_37 = arith.constant 3.200000e+01 : f32
    %103 = vector.broadcast %cst_37 : f32 to vector<2x16x1xf32>
    %104 = arith.divf %102, %103 : vector<2x16x1xf32>
    %105 = vector.broadcast %97 : vector<2x16x1xf32> to vector<2x16x32xf32>
    %106 = arith.subf %91, %105 : vector<2x16x32xf32>
    %cst_38 = arith.constant 9.99999974E-6 : f32
    %107 = vector.broadcast %cst_38 : f32 to vector<2x16x1xf32>
    %108 = arith.addf %104, %107 : vector<2x16x1xf32>
    %109 = math.rsqrt %108 : vector<2x16x1xf32>
    %110 = vector.broadcast %109 : vector<2x16x1xf32> to vector<2x16x32xf32>
    %111 = arith.mulf %106, %110 : vector<2x16x32xf32>
    %112 = vector.shape_cast %92 : vector<1x32xf32> to vector<1x1x32xf32>
    %113 = vector.broadcast %112 : vector<1x1x32xf32> to vector<2x16x32xf32>
    %114 = arith.mulf %111, %113 : vector<2x16x32xf32>
    %115 = vector.shape_cast %93 : vector<1x32xf32> to vector<1x1x32xf32>
    %116 = vector.broadcast %115 : vector<1x1x32xf32> to vector<2x16x32xf32>
    %117 = arith.addf %114, %116 : vector<2x16x32xf32>
    %c2 = arith.constant 2 : index
    %c0_39 = arith.constant 0 : index
    %c0_40 = arith.constant 0 : index
    %118 = vector.load %arg1[%c2, %c0_39, %c0_40] : memref<10x32x128xbf16, #tpu.memory_space<vmem>>, vector<1x32x128xbf16>
    %119 = vector.shape_cast %118 : vector<1x32x128xbf16> to vector<32x128xbf16>
    %c3 = arith.constant 3 : index
    %c0_41 = arith.constant 0 : index
    %c0_42 = arith.constant 0 : index
    %120 = vector.load %arg1[%c3, %c0_41, %c0_42] : memref<10x32x128xbf16, #tpu.memory_space<vmem>>, vector<1x32x128xbf16>
    %121 = vector.shape_cast %120 : vector<1x32x128xbf16> to vector<32x128xbf16>
    %122 = vector.extract_strided_slice %119 {offsets = [0, 0], sizes = [32, 64], strides = [1, 1]} : vector<32x128xbf16> to vector<32x64xbf16>
    %123 = arith.truncf %117 : vector<2x16x32xf32> to vector<2x16x32xbf16>
    "tpu.trace_start"() <{level = 10 : i32, message = "bsk,kn->bsn"}> : () -> ()
    %cst_43 = arith.constant dense<0.000000e+00> : vector<2x16x64xf32>
    %124 = tpu.matmul %123, %122, %cst_43 {dimension_numbers = #tpu.dot_dimension_numbers<[2], [0], [0, 1], [1], [0, 0, 0, 1, 1, 1], [], []>} : vector<2x16x32xbf16>, vector<32x64xbf16>, vector<2x16x64xf32> -> vector<2x16x64xf32>
    "tpu.trace_stop"() : () -> ()
    %125 = vector.extract_strided_slice %124 {offsets = [0, 0, 0], sizes = [2, 16, 16], strides = [1, 1, 1]} : vector<2x16x64xf32> to vector<2x16x16xf32>
    %126 = vector.extract_strided_slice %124 {offsets = [0, 0, 16], sizes = [2, 16, 16], strides = [1, 1, 1]} : vector<2x16x64xf32> to vector<2x16x16xf32>
    %127 = vector.extract_strided_slice %124 {offsets = [0, 0, 32], sizes = [2, 16, 32], strides = [1, 1, 1]} : vector<2x16x64xf32> to vector<2x16x32xf32>
    %128 = arith.truncf %125 : vector<2x16x16xf32> to vector<2x16x16xbf16>
    %129 = arith.truncf %126 : vector<2x16x16xf32> to vector<2x16x16xbf16>
    "tpu.trace_start"() <{level = 10 : i32, message = "bqa,bka->bqk"}> : () -> ()
    %cst_44 = arith.constant dense<0.000000e+00> : vector<2x16x16xf32>
    %130 = tpu.matmul %128, %129, %cst_44 {dimension_numbers = #tpu.dot_dimension_numbers<[2], [2], [1], [1], [0, 0, 0, 1, 1, 1], [0], [0]>} : vector<2x16x16xbf16>, vector<2x16x16xbf16>, vector<2x16x16xf32> -> vector<2x16x16xf32>
    "tpu.trace_stop"() : () -> ()
    %cst_45 = arith.constant 2.500000e-01 : f32
    %131 = vector.broadcast %cst_45 : f32 to vector<2x16x16xf32>
    %132 = arith.mulf %130, %131 : vector<2x16x16xf32>
    %cst_46 = arith.constant dense<0xFF800000> : vector<2x16xf32>
    %133 = vector.multi_reduction <maximumf>, %132, %cst_46 [2] : vector<2x16x16xf32> to vector<2x16xf32>
    %134 = vector.shape_cast %133 : vector<2x16xf32> to vector<2x16x1xf32>
    %135 = vector.broadcast %134 : vector<2x16x1xf32> to vector<2x16x16xf32>
    %136 = arith.subf %132, %135 : vector<2x16x16xf32>
    %137 = math.exp %136 : vector<2x16x16xf32>
    %cst_47 = arith.constant dense<0.000000e+00> : vector<2x16xf32>
    %138 = vector.multi_reduction <add>, %137, %cst_47 [2] : vector<2x16x16xf32> to vector<2x16xf32>
    %139 = vector.shape_cast %138 : vector<2x16xf32> to vector<2x16x1xf32>
    %140 = tpu.reciprocal %139 {approx = true} : vector<2x16x1xf32> -> vector<2x16x1xf32>
    %141 = vector.broadcast %140 : vector<2x16x1xf32> to vector<2x16x16xf32>
    %142 = arith.mulf %137, %141 : vector<2x16x16xf32>
    %143 = arith.truncf %142 : vector<2x16x16xf32> to vector<2x16x16xbf16>
    %144 = arith.truncf %127 : vector<2x16x32xf32> to vector<2x16x32xbf16>
    "tpu.trace_start"() <{level = 10 : i32, message = "bqk,bkd->bqd"}> : () -> ()
    %cst_48 = arith.constant dense<0.000000e+00> : vector<2x16x32xf32>
    %145 = tpu.matmul %143, %144, %cst_48 {dimension_numbers = #tpu.dot_dimension_numbers<[2], [1], [1], [2], [0, 0, 0, 1, 1, 2], [0], [0]>} : vector<2x16x16xbf16>, vector<2x16x32xbf16>, vector<2x16x32xf32> -> vector<2x16x32xf32>
    "tpu.trace_stop"() : () -> ()
    %146 = vector.extract_strided_slice %119 {offsets = [0, 64], sizes = [32, 32], strides = [1, 1]} : vector<32x128xbf16> to vector<32x32xbf16>
    %147 = arith.truncf %145 : vector<2x16x32xf32> to vector<2x16x32xbf16>
    "tpu.trace_start"() <{level = 10 : i32, message = "bsk,kn->bsn"}> : () -> ()
    %cst_49 = arith.constant dense<0.000000e+00> : vector<2x16x32xf32>
    %148 = tpu.matmul %147, %146, %cst_49 {dimension_numbers = #tpu.dot_dimension_numbers<[2], [0], [0, 1], [1], [0, 0, 0, 1, 1, 1], [], []>} : vector<2x16x32xbf16>, vector<32x32xbf16>, vector<2x16x32xf32> -> vector<2x16x32xf32>
    "tpu.trace_stop"() : () -> ()
    %149 = arith.addf %117, %148 : vector<2x16x32xf32>
    %c35 = arith.constant 35 : index
    %c0_50 = arith.constant 0 : index
    %150 = vector.load %arg2[%c35, %c0_50] : memref<55x32xf32, #tpu.memory_space<vmem>>, vector<1x32xf32>
    %c36 = arith.constant 36 : index
    %c0_51 = arith.constant 0 : index
    %151 = vector.load %arg2[%c36, %c0_51] : memref<55x32xf32, #tpu.memory_space<vmem>>, vector<1x32xf32>
    %cst_52 = arith.constant dense<0.000000e+00> : vector<2x16xf32>
    %152 = vector.multi_reduction <add>, %149, %cst_52 [2] : vector<2x16x32xf32> to vector<2x16xf32>
    %153 = vector.shape_cast %152 : vector<2x16xf32> to vector<2x16x1xf32>
    %cst_53 = arith.constant 3.200000e+01 : f32
    %154 = vector.broadcast %cst_53 : f32 to vector<2x16x1xf32>
    %155 = arith.divf %153, %154 : vector<2x16x1xf32>
    %156 = vector.broadcast %155 : vector<2x16x1xf32> to vector<2x16x32xf32>
    %157 = arith.subf %149, %156 : vector<2x16x32xf32>
    %158 = arith.mulf %157, %157 : vector<2x16x32xf32>
    %cst_54 = arith.constant dense<0.000000e+00> : vector<2x16xf32>
    %159 = vector.multi_reduction <add>, %158, %cst_54 [2] : vector<2x16x32xf32> to vector<2x16xf32>
    %160 = vector.shape_cast %159 : vector<2x16xf32> to vector<2x16x1xf32>
    %cst_55 = arith.constant 3.200000e+01 : f32
    %161 = vector.broadcast %cst_55 : f32 to vector<2x16x1xf32>
    %162 = arith.divf %160, %161 : vector<2x16x1xf32>
    %163 = vector.broadcast %155 : vector<2x16x1xf32> to vector<2x16x32xf32>
    %164 = arith.subf %149, %163 : vector<2x16x32xf32>
    %cst_56 = arith.constant 9.99999974E-6 : f32
    %165 = vector.broadcast %cst_56 : f32 to vector<2x16x1xf32>
    %166 = arith.addf %162, %165 : vector<2x16x1xf32>
    %167 = math.rsqrt %166 : vector<2x16x1xf32>
    %168 = vector.broadcast %167 : vector<2x16x1xf32> to vector<2x16x32xf32>
    %169 = arith.mulf %164, %168 : vector<2x16x32xf32>
    %170 = vector.shape_cast %150 : vector<1x32xf32> to vector<1x1x32xf32>
    %171 = vector.broadcast %170 : vector<1x1x32xf32> to vector<2x16x32xf32>
    %172 = arith.mulf %169, %171 : vector<2x16x32xf32>
    %173 = vector.shape_cast %151 : vector<1x32xf32> to vector<1x1x32xf32>
    %174 = vector.broadcast %173 : vector<1x1x32xf32> to vector<2x16x32xf32>
    %175 = arith.addf %172, %174 : vector<2x16x32xf32>
    %c33 = arith.constant 33 : index
    %c0_57 = arith.constant 0 : index
    %176 = vector.load %arg2[%c33, %c0_57] : memref<55x32xf32, #tpu.memory_space<vmem>>, vector<1x32xf32>
    %c34 = arith.constant 34 : index
    %c0_58 = arith.constant 0 : index
    %177 = vector.load %arg2[%c34, %c0_58] : memref<55x32xf32, #tpu.memory_space<vmem>>, vector<1x32xf32>
    %178 = vector.extract_strided_slice %121 {offsets = [0, 0], sizes = [32, 32], strides = [1, 1]} : vector<32x128xbf16> to vector<32x32xbf16>
    %179 = arith.truncf %175 : vector<2x16x32xf32> to vector<2x16x32xbf16>
    "tpu.trace_start"() <{level = 10 : i32, message = "bsk,kn->bsn"}> : () -> ()
    %cst_59 = arith.constant dense<0.000000e+00> : vector<2x16x32xf32>
    %180 = tpu.matmul %179, %178, %cst_59 {dimension_numbers = #tpu.dot_dimension_numbers<[2], [0], [0, 1], [1], [0, 0, 0, 1, 1, 1], [], []>} : vector<2x16x32xbf16>, vector<32x32xbf16>, vector<2x16x32xf32> -> vector<2x16x32xf32>
    "tpu.trace_stop"() : () -> ()
    %181 = vector.shape_cast %176 : vector<1x32xf32> to vector<1x1x32xf32>
    %182 = vector.broadcast %181 : vector<1x1x32xf32> to vector<2x16x32xf32>
    %183 = arith.addf %180, %182 : vector<2x16x32xf32>
    %cst_60 = arith.constant 0.000000e+00 : f32
    %184 = vector.broadcast %cst_60 : f32 to vector<2x16x32xf32>
    %185 = arith.cmpf ogt, %183, %184 : vector<2x16x32xf32>
    %cst_61 = arith.constant 0.000000e+00 : f32
    %186 = vector.broadcast %cst_61 : f32 to vector<2x16x32xf32>
    %187 = arith.minimumf %183, %186 : vector<2x16x32xf32>
    %188 = math.exp %187 : vector<2x16x32xf32>
    %cst_62 = arith.constant 1.000000e+00 : f32
    %189 = vector.broadcast %cst_62 : f32 to vector<2x16x32xf32>
    %190 = arith.subf %188, %189 : vector<2x16x32xf32>
    %191 = arith.select %185, %183, %190 : vector<2x16x32xi1>, vector<2x16x32xf32>
    %192 = vector.extract_strided_slice %121 {offsets = [0, 32], sizes = [32, 32], strides = [1, 1]} : vector<32x128xbf16> to vector<32x32xbf16>
    %193 = arith.truncf %191 : vector<2x16x32xf32> to vector<2x16x32xbf16>
    "tpu.trace_start"() <{level = 10 : i32, message = "bsk,kn->bsn"}> : () -> ()
    %cst_63 = arith.constant dense<0.000000e+00> : vector<2x16x32xf32>
    %194 = tpu.matmul %193, %192, %cst_63 {dimension_numbers = #tpu.dot_dimension_numbers<[2], [0], [0, 1], [1], [0, 0, 0, 1, 1, 1], [], []>} : vector<2x16x32xbf16>, vector<32x32xbf16>, vector<2x16x32xf32> -> vector<2x16x32xf32>
    "tpu.trace_stop"() : () -> ()
    %195 = vector.shape_cast %177 : vector<1x32xf32> to vector<1x1x32xf32>
    %196 = vector.broadcast %195 : vector<1x1x32xf32> to vector<2x16x32xf32>
    %197 = arith.addf %194, %196 : vector<2x16x32xf32>
    %198 = arith.addf %175, %197 : vector<2x16x32xf32>
    %c37 = arith.constant 37 : index
    %c0_64 = arith.constant 0 : index
    %199 = vector.load %arg2[%c37, %c0_64] : memref<55x32xf32, #tpu.memory_space<vmem>>, vector<1x32xf32>
    %c38 = arith.constant 38 : index
    %c0_65 = arith.constant 0 : index
    %200 = vector.load %arg2[%c38, %c0_65] : memref<55x32xf32, #tpu.memory_space<vmem>>, vector<1x32xf32>
    %cst_66 = arith.constant dense<0.000000e+00> : vector<2x16xf32>
    %201 = vector.multi_reduction <add>, %198, %cst_66 [2] : vector<2x16x32xf32> to vector<2x16xf32>
    %202 = vector.shape_cast %201 : vector<2x16xf32> to vector<2x16x1xf32>
    %cst_67 = arith.constant 3.200000e+01 : f32
    %203 = vector.broadcast %cst_67 : f32 to vector<2x16x1xf32>
    %204 = arith.divf %202, %203 : vector<2x16x1xf32>
    %205 = vector.broadcast %204 : vector<2x16x1xf32> to vector<2x16x32xf32>
    %206 = arith.subf %198, %205 : vector<2x16x32xf32>
    %207 = arith.mulf %206, %206 : vector<2x16x32xf32>
    %cst_68 = arith.constant dense<0.000000e+00> : vector<2x16xf32>
    %208 = vector.multi_reduction <add>, %207, %cst_68 [2] : vector<2x16x32xf32> to vector<2x16xf32>
    %209 = vector.shape_cast %208 : vector<2x16xf32> to vector<2x16x1xf32>
    %cst_69 = arith.constant 3.200000e+01 : f32
    %210 = vector.broadcast %cst_69 : f32 to vector<2x16x1xf32>
    %211 = arith.divf %209, %210 : vector<2x16x1xf32>
    %212 = vector.broadcast %204 : vector<2x16x1xf32> to vector<2x16x32xf32>
    %213 = arith.subf %198, %212 : vector<2x16x32xf32>
    %cst_70 = arith.constant 9.99999974E-6 : f32
    %214 = vector.broadcast %cst_70 : f32 to vector<2x16x1xf32>
    %215 = arith.addf %211, %214 : vector<2x16x1xf32>
    %216 = math.rsqrt %215 : vector<2x16x1xf32>
    %217 = vector.broadcast %216 : vector<2x16x1xf32> to vector<2x16x32xf32>
    %218 = arith.mulf %213, %217 : vector<2x16x32xf32>
    %219 = vector.shape_cast %199 : vector<1x32xf32> to vector<1x1x32xf32>
    %220 = vector.broadcast %219 : vector<1x1x32xf32> to vector<2x16x32xf32>
    %221 = arith.mulf %218, %220 : vector<2x16x32xf32>
    %222 = vector.shape_cast %200 : vector<1x32xf32> to vector<1x1x32xf32>
    %223 = vector.broadcast %222 : vector<1x1x32xf32> to vector<2x16x32xf32>
    %224 = arith.addf %221, %223 : vector<2x16x32xf32>
    %225 = vector.extract_strided_slice %0 {offsets = [0, 12, 0], sizes = [2, 4, 4], strides = [1, 1, 1]} : vector<2x16x4xf32> to vector<2x4x4xf32>
    %c5 = arith.constant 5 : index
    %c0_71 = arith.constant 0 : index
    %226 = vector.load %arg2[%c5, %c0_71] : memref<55x32xf32, #tpu.memory_space<vmem>>, vector<4x32xf32>
    "tpu.trace_start"() <{level = 10 : i32, message = "bsk,kn->bsn"}> : () -> ()
    %cst_72 = arith.constant dense<0.000000e+00> : vector<2x4x32xf32>
    %227 = tpu.matmul %225, %226, %cst_72 {dimension_numbers = #tpu.dot_dimension_numbers<[2], [0], [0, 1], [1], [0, 0, 0, 1, 1, 1], [], []>} : vector<2x4x4xf32>, vector<4x32xf32>, vector<2x4x32xf32> -> vector<2x4x32xf32>
    "tpu.trace_stop"() : () -> ()
    %c9 = arith.constant 9 : index
    %c0_73 = arith.constant 0 : index
    %228 = vector.load %arg2[%c9, %c0_73] : memref<55x32xf32, #tpu.memory_space<vmem>>, vector<1x32xf32>
    %229 = vector.shape_cast %228 : vector<1x32xf32> to vector<1x1x32xf32>
    %230 = vector.broadcast %229 : vector<1x1x32xf32> to vector<2x4x32xf32>
    %231 = arith.addf %227, %230 : vector<2x4x32xf32>
    %c4_74 = arith.constant 4 : index
    %c0_75 = arith.constant 0 : index
    %c0_76 = arith.constant 0 : index
    %232 = vector.load %arg1[%c4_74, %c0_75, %c0_76] : memref<10x32x128xbf16, #tpu.memory_space<vmem>>, vector<1x32x128xbf16>
    %233 = vector.shape_cast %232 : vector<1x32x128xbf16> to vector<32x128xbf16>
    %c5_77 = arith.constant 5 : index
    %c0_78 = arith.constant 0 : index
    %c0_79 = arith.constant 0 : index
    %234 = vector.load %arg1[%c5_77, %c0_78, %c0_79] : memref<10x32x128xbf16, #tpu.memory_space<vmem>>, vector<1x32x128xbf16>
    %235 = vector.shape_cast %234 : vector<1x32x128xbf16> to vector<32x128xbf16>
    %c6 = arith.constant 6 : index
    %c0_80 = arith.constant 0 : index
    %c0_81 = arith.constant 0 : index
    %236 = vector.load %arg1[%c6, %c0_80, %c0_81] : memref<10x32x128xbf16, #tpu.memory_space<vmem>>, vector<1x32x128xbf16>
    %237 = vector.shape_cast %236 : vector<1x32x128xbf16> to vector<32x128xbf16>
    %238 = vector.extract_strided_slice %233 {offsets = [0, 0], sizes = [32, 64], strides = [1, 1]} : vector<32x128xbf16> to vector<32x64xbf16>
    %239 = arith.truncf %231 : vector<2x4x32xf32> to vector<2x4x32xbf16>
    "tpu.trace_start"() <{level = 10 : i32, message = "bsk,kn->bsn"}> : () -> ()
    %cst_82 = arith.constant dense<0.000000e+00> : vector<2x4x64xf32>
    %240 = tpu.matmul %239, %238, %cst_82 {dimension_numbers = #tpu.dot_dimension_numbers<[2], [0], [0, 1], [1], [0, 0, 0, 1, 1, 1], [], []>} : vector<2x4x32xbf16>, vector<32x64xbf16>, vector<2x4x64xf32> -> vector<2x4x64xf32>
    "tpu.trace_stop"() : () -> ()
    %241 = vector.extract_strided_slice %240 {offsets = [0, 0, 0], sizes = [2, 4, 16], strides = [1, 1, 1]} : vector<2x4x64xf32> to vector<2x4x16xf32>
    %242 = vector.extract_strided_slice %240 {offsets = [0, 0, 16], sizes = [2, 4, 16], strides = [1, 1, 1]} : vector<2x4x64xf32> to vector<2x4x16xf32>
    %243 = vector.extract_strided_slice %240 {offsets = [0, 0, 32], sizes = [2, 4, 32], strides = [1, 1, 1]} : vector<2x4x64xf32> to vector<2x4x32xf32>
    %244 = arith.truncf %241 : vector<2x4x16xf32> to vector<2x4x16xbf16>
    %245 = arith.truncf %242 : vector<2x4x16xf32> to vector<2x4x16xbf16>
    "tpu.trace_start"() <{level = 10 : i32, message = "bqa,bka->bqk"}> : () -> ()
    %cst_83 = arith.constant dense<0.000000e+00> : vector<2x4x4xf32>
    %246 = tpu.matmul %244, %245, %cst_83 {dimension_numbers = #tpu.dot_dimension_numbers<[2], [2], [1], [1], [0, 0, 0, 1, 1, 1], [0], [0]>} : vector<2x4x16xbf16>, vector<2x4x16xbf16>, vector<2x4x4xf32> -> vector<2x4x4xf32>
    "tpu.trace_stop"() : () -> ()
    %cst_84 = arith.constant 2.500000e-01 : f32
    %247 = vector.broadcast %cst_84 : f32 to vector<2x4x4xf32>
    %248 = arith.mulf %246, %247 : vector<2x4x4xf32>
    %cst_85 = arith.constant dense<0xFF800000> : vector<2x4xf32>
    %249 = vector.multi_reduction <maximumf>, %248, %cst_85 [2] : vector<2x4x4xf32> to vector<2x4xf32>
    %250 = vector.shape_cast %249 : vector<2x4xf32> to vector<2x4x1xf32>
    %251 = vector.broadcast %250 : vector<2x4x1xf32> to vector<2x4x4xf32>
    %252 = arith.subf %248, %251 : vector<2x4x4xf32>
    %253 = math.exp %252 : vector<2x4x4xf32>
    %cst_86 = arith.constant dense<0.000000e+00> : vector<2x4xf32>
    %254 = vector.multi_reduction <add>, %253, %cst_86 [2] : vector<2x4x4xf32> to vector<2x4xf32>
    %255 = vector.shape_cast %254 : vector<2x4xf32> to vector<2x4x1xf32>
    %256 = tpu.reciprocal %255 {approx = true} : vector<2x4x1xf32> -> vector<2x4x1xf32>
    %257 = vector.broadcast %256 : vector<2x4x1xf32> to vector<2x4x4xf32>
    %258 = arith.mulf %253, %257 : vector<2x4x4xf32>
    %259 = arith.truncf %258 : vector<2x4x4xf32> to vector<2x4x4xbf16>
    %260 = arith.truncf %243 : vector<2x4x32xf32> to vector<2x4x32xbf16>
    "tpu.trace_start"() <{level = 10 : i32, message = "bqk,bkd->bqd"}> : () -> ()
    %cst_87 = arith.constant dense<0.000000e+00> : vector<2x4x32xf32>
    %261 = tpu.matmul %259, %260, %cst_87 {dimension_numbers = #tpu.dot_dimension_numbers<[2], [1], [1], [2], [0, 0, 0, 1, 1, 2], [0], [0]>} : vector<2x4x4xbf16>, vector<2x4x32xbf16>, vector<2x4x32xf32> -> vector<2x4x32xf32>
    "tpu.trace_stop"() : () -> ()
    %262 = vector.extract_strided_slice %233 {offsets = [0, 64], sizes = [32, 32], strides = [1, 1]} : vector<32x128xbf16> to vector<32x32xbf16>
    %263 = arith.truncf %261 : vector<2x4x32xf32> to vector<2x4x32xbf16>
    "tpu.trace_start"() <{level = 10 : i32, message = "bsk,kn->bsn"}> : () -> ()
    %cst_88 = arith.constant dense<0.000000e+00> : vector<2x4x32xf32>
    %264 = tpu.matmul %263, %262, %cst_88 {dimension_numbers = #tpu.dot_dimension_numbers<[2], [0], [0, 1], [1], [0, 0, 0, 1, 1, 1], [], []>} : vector<2x4x32xbf16>, vector<32x32xbf16>, vector<2x4x32xf32> -> vector<2x4x32xf32>
    "tpu.trace_stop"() : () -> ()
    %265 = arith.addf %264, %231 : vector<2x4x32xf32>
    %c41 = arith.constant 41 : index
    %c0_89 = arith.constant 0 : index
    %266 = vector.load %arg2[%c41, %c0_89] : memref<55x32xf32, #tpu.memory_space<vmem>>, vector<1x32xf32>
    %c42 = arith.constant 42 : index
    %c0_90 = arith.constant 0 : index
    %267 = vector.load %arg2[%c42, %c0_90] : memref<55x32xf32, #tpu.memory_space<vmem>>, vector<1x32xf32>
    %cst_91 = arith.constant dense<0.000000e+00> : vector<2x4xf32>
    %268 = vector.multi_reduction <add>, %265, %cst_91 [2] : vector<2x4x32xf32> to vector<2x4xf32>
    %269 = vector.shape_cast %268 : vector<2x4xf32> to vector<2x4x1xf32>
    %cst_92 = arith.constant 3.200000e+01 : f32
    %270 = vector.broadcast %cst_92 : f32 to vector<2x4x1xf32>
    %271 = arith.divf %269, %270 : vector<2x4x1xf32>
    %272 = vector.broadcast %271 : vector<2x4x1xf32> to vector<2x4x32xf32>
    %273 = arith.subf %265, %272 : vector<2x4x32xf32>
    %274 = arith.mulf %273, %273 : vector<2x4x32xf32>
    %cst_93 = arith.constant dense<0.000000e+00> : vector<2x4xf32>
    %275 = vector.multi_reduction <add>, %274, %cst_93 [2] : vector<2x4x32xf32> to vector<2x4xf32>
    %276 = vector.shape_cast %275 : vector<2x4xf32> to vector<2x4x1xf32>
    %cst_94 = arith.constant 3.200000e+01 : f32
    %277 = vector.broadcast %cst_94 : f32 to vector<2x4x1xf32>
    %278 = arith.divf %276, %277 : vector<2x4x1xf32>
    %279 = vector.broadcast %271 : vector<2x4x1xf32> to vector<2x4x32xf32>
    %280 = arith.subf %265, %279 : vector<2x4x32xf32>
    %cst_95 = arith.constant 9.99999974E-6 : f32
    %281 = vector.broadcast %cst_95 : f32 to vector<2x4x1xf32>
    %282 = arith.addf %278, %281 : vector<2x4x1xf32>
    %283 = math.rsqrt %282 : vector<2x4x1xf32>
    %284 = vector.broadcast %283 : vector<2x4x1xf32> to vector<2x4x32xf32>
    %285 = arith.mulf %280, %284 : vector<2x4x32xf32>
    %286 = vector.shape_cast %266 : vector<1x32xf32> to vector<1x1x32xf32>
    %287 = vector.broadcast %286 : vector<1x1x32xf32> to vector<2x4x32xf32>
    %288 = arith.mulf %285, %287 : vector<2x4x32xf32>
    %289 = vector.shape_cast %267 : vector<1x32xf32> to vector<1x1x32xf32>
    %290 = vector.broadcast %289 : vector<1x1x32xf32> to vector<2x4x32xf32>
    %291 = arith.addf %288, %290 : vector<2x4x32xf32>
    %292 = vector.extract_strided_slice %235 {offsets = [0, 0], sizes = [32, 16], strides = [1, 1]} : vector<32x128xbf16> to vector<32x16xbf16>
    %293 = arith.truncf %291 : vector<2x4x32xf32> to vector<2x4x32xbf16>
    "tpu.trace_start"() <{level = 10 : i32, message = "bsk,kn->bsn"}> : () -> ()
    %cst_96 = arith.constant dense<0.000000e+00> : vector<2x4x16xf32>
    %294 = tpu.matmul %293, %292, %cst_96 {dimension_numbers = #tpu.dot_dimension_numbers<[2], [0], [0, 1], [1], [0, 0, 0, 1, 1, 1], [], []>} : vector<2x4x32xbf16>, vector<32x16xbf16>, vector<2x4x16xf32> -> vector<2x4x16xf32>
    "tpu.trace_stop"() : () -> ()
    %295 = vector.extract_strided_slice %235 {offsets = [0, 16], sizes = [32, 48], strides = [1, 1]} : vector<32x128xbf16> to vector<32x48xbf16>
    %296 = arith.truncf %224 : vector<2x16x32xf32> to vector<2x16x32xbf16>
    "tpu.trace_start"() <{level = 10 : i32, message = "bsk,kn->bsn"}> : () -> ()
    %cst_97 = arith.constant dense<0.000000e+00> : vector<2x16x48xf32>
    %297 = tpu.matmul %296, %295, %cst_97 {dimension_numbers = #tpu.dot_dimension_numbers<[2], [0], [0, 1], [1], [0, 0, 0, 1, 1, 1], [], []>} : vector<2x16x32xbf16>, vector<32x48xbf16>, vector<2x16x48xf32> -> vector<2x16x48xf32>
    "tpu.trace_stop"() : () -> ()
    %298 = vector.extract_strided_slice %297 {offsets = [0, 0, 0], sizes = [2, 16, 16], strides = [1, 1, 1]} : vector<2x16x48xf32> to vector<2x16x16xf32>
    %299 = vector.extract_strided_slice %297 {offsets = [0, 0, 16], sizes = [2, 16, 32], strides = [1, 1, 1]} : vector<2x16x48xf32> to vector<2x16x32xf32>
    %300 = arith.truncf %294 : vector<2x4x16xf32> to vector<2x4x16xbf16>
    %301 = arith.truncf %298 : vector<2x16x16xf32> to vector<2x16x16xbf16>
    "tpu.trace_start"() <{level = 10 : i32, message = "bqa,bka->bqk"}> : () -> ()
    %cst_98 = arith.constant dense<0.000000e+00> : vector<2x4x16xf32>
    %302 = tpu.matmul %300, %301, %cst_98 {dimension_numbers = #tpu.dot_dimension_numbers<[2], [2], [1], [1], [0, 0, 0, 1, 1, 1], [0], [0]>} : vector<2x4x16xbf16>, vector<2x16x16xbf16>, vector<2x4x16xf32> -> vector<2x4x16xf32>
    "tpu.trace_stop"() : () -> ()
    %cst_99 = arith.constant 2.500000e-01 : f32
    %303 = vector.broadcast %cst_99 : f32 to vector<2x4x16xf32>
    %304 = arith.mulf %302, %303 : vector<2x4x16xf32>
    %cst_100 = arith.constant dense<0xFF800000> : vector<2x4xf32>
    %305 = vector.multi_reduction <maximumf>, %304, %cst_100 [2] : vector<2x4x16xf32> to vector<2x4xf32>
    %306 = vector.shape_cast %305 : vector<2x4xf32> to vector<2x4x1xf32>
    %307 = vector.broadcast %306 : vector<2x4x1xf32> to vector<2x4x16xf32>
    %308 = arith.subf %304, %307 : vector<2x4x16xf32>
    %309 = math.exp %308 : vector<2x4x16xf32>
    %cst_101 = arith.constant dense<0.000000e+00> : vector<2x4xf32>
    %310 = vector.multi_reduction <add>, %309, %cst_101 [2] : vector<2x4x16xf32> to vector<2x4xf32>
    %311 = vector.shape_cast %310 : vector<2x4xf32> to vector<2x4x1xf32>
    %312 = tpu.reciprocal %311 {approx = true} : vector<2x4x1xf32> -> vector<2x4x1xf32>
    %313 = vector.broadcast %312 : vector<2x4x1xf32> to vector<2x4x16xf32>
    %314 = arith.mulf %309, %313 : vector<2x4x16xf32>
    %315 = arith.truncf %314 : vector<2x4x16xf32> to vector<2x4x16xbf16>
    %316 = arith.truncf %299 : vector<2x16x32xf32> to vector<2x16x32xbf16>
    "tpu.trace_start"() <{level = 10 : i32, message = "bqk,bkd->bqd"}> : () -> ()
    %cst_102 = arith.constant dense<0.000000e+00> : vector<2x4x32xf32>
    %317 = tpu.matmul %315, %316, %cst_102 {dimension_numbers = #tpu.dot_dimension_numbers<[2], [1], [1], [2], [0, 0, 0, 1, 1, 2], [0], [0]>} : vector<2x4x16xbf16>, vector<2x16x32xbf16>, vector<2x4x32xf32> -> vector<2x4x32xf32>
    "tpu.trace_stop"() : () -> ()
    %318 = vector.extract_strided_slice %235 {offsets = [0, 64], sizes = [32, 32], strides = [1, 1]} : vector<32x128xbf16> to vector<32x32xbf16>
    %319 = arith.truncf %317 : vector<2x4x32xf32> to vector<2x4x32xbf16>
    "tpu.trace_start"() <{level = 10 : i32, message = "bsk,kn->bsn"}> : () -> ()
    %cst_103 = arith.constant dense<0.000000e+00> : vector<2x4x32xf32>
    %320 = tpu.matmul %319, %318, %cst_103 {dimension_numbers = #tpu.dot_dimension_numbers<[2], [0], [0, 1], [1], [0, 0, 0, 1, 1, 1], [], []>} : vector<2x4x32xbf16>, vector<32x32xbf16>, vector<2x4x32xf32> -> vector<2x4x32xf32>
    "tpu.trace_stop"() : () -> ()
    %321 = arith.addf %320, %291 : vector<2x4x32xf32>
    %c43 = arith.constant 43 : index
    %c0_104 = arith.constant 0 : index
    %322 = vector.load %arg2[%c43, %c0_104] : memref<55x32xf32, #tpu.memory_space<vmem>>, vector<1x32xf32>
    %c44 = arith.constant 44 : index
    %c0_105 = arith.constant 0 : index
    %323 = vector.load %arg2[%c44, %c0_105] : memref<55x32xf32, #tpu.memory_space<vmem>>, vector<1x32xf32>
    %cst_106 = arith.constant dense<0.000000e+00> : vector<2x4xf32>
    %324 = vector.multi_reduction <add>, %321, %cst_106 [2] : vector<2x4x32xf32> to vector<2x4xf32>
    %325 = vector.shape_cast %324 : vector<2x4xf32> to vector<2x4x1xf32>
    %cst_107 = arith.constant 3.200000e+01 : f32
    %326 = vector.broadcast %cst_107 : f32 to vector<2x4x1xf32>
    %327 = arith.divf %325, %326 : vector<2x4x1xf32>
    %328 = vector.broadcast %327 : vector<2x4x1xf32> to vector<2x4x32xf32>
    %329 = arith.subf %321, %328 : vector<2x4x32xf32>
    %330 = arith.mulf %329, %329 : vector<2x4x32xf32>
    %cst_108 = arith.constant dense<0.000000e+00> : vector<2x4xf32>
    %331 = vector.multi_reduction <add>, %330, %cst_108 [2] : vector<2x4x32xf32> to vector<2x4xf32>
    %332 = vector.shape_cast %331 : vector<2x4xf32> to vector<2x4x1xf32>
    %cst_109 = arith.constant 3.200000e+01 : f32
    %333 = vector.broadcast %cst_109 : f32 to vector<2x4x1xf32>
    %334 = arith.divf %332, %333 : vector<2x4x1xf32>
    %335 = vector.broadcast %327 : vector<2x4x1xf32> to vector<2x4x32xf32>
    %336 = arith.subf %321, %335 : vector<2x4x32xf32>
    %cst_110 = arith.constant 9.99999974E-6 : f32
    %337 = vector.broadcast %cst_110 : f32 to vector<2x4x1xf32>
    %338 = arith.addf %334, %337 : vector<2x4x1xf32>
    %339 = math.rsqrt %338 : vector<2x4x1xf32>
    %340 = vector.broadcast %339 : vector<2x4x1xf32> to vector<2x4x32xf32>
    %341 = arith.mulf %336, %340 : vector<2x4x32xf32>
    %342 = vector.shape_cast %322 : vector<1x32xf32> to vector<1x1x32xf32>
    %343 = vector.broadcast %342 : vector<1x1x32xf32> to vector<2x4x32xf32>
    %344 = arith.mulf %341, %343 : vector<2x4x32xf32>
    %345 = vector.shape_cast %323 : vector<1x32xf32> to vector<1x1x32xf32>
    %346 = vector.broadcast %345 : vector<1x1x32xf32> to vector<2x4x32xf32>
    %347 = arith.addf %344, %346 : vector<2x4x32xf32>
    %c39 = arith.constant 39 : index
    %c0_111 = arith.constant 0 : index
    %348 = vector.load %arg2[%c39, %c0_111] : memref<55x32xf32, #tpu.memory_space<vmem>>, vector<1x32xf32>
    %c40 = arith.constant 40 : index
    %c0_112 = arith.constant 0 : index
    %349 = vector.load %arg2[%c40, %c0_112] : memref<55x32xf32, #tpu.memory_space<vmem>>, vector<1x32xf32>
    %350 = vector.extract_strided_slice %237 {offsets = [0, 0], sizes = [32, 32], strides = [1, 1]} : vector<32x128xbf16> to vector<32x32xbf16>
    %351 = arith.truncf %347 : vector<2x4x32xf32> to vector<2x4x32xbf16>
    "tpu.trace_start"() <{level = 10 : i32, message = "bsk,kn->bsn"}> : () -> ()
    %cst_113 = arith.constant dense<0.000000e+00> : vector<2x4x32xf32>
    %352 = tpu.matmul %351, %350, %cst_113 {dimension_numbers = #tpu.dot_dimension_numbers<[2], [0], [0, 1], [1], [0, 0, 0, 1, 1, 1], [], []>} : vector<2x4x32xbf16>, vector<32x32xbf16>, vector<2x4x32xf32> -> vector<2x4x32xf32>
    "tpu.trace_stop"() : () -> ()
    %353 = vector.shape_cast %348 : vector<1x32xf32> to vector<1x1x32xf32>
    %354 = vector.broadcast %353 : vector<1x1x32xf32> to vector<2x4x32xf32>
    %355 = arith.addf %352, %354 : vector<2x4x32xf32>
    %cst_114 = arith.constant 0.000000e+00 : f32
    %356 = vector.broadcast %cst_114 : f32 to vector<2x4x32xf32>
    %357 = arith.cmpf ogt, %355, %356 : vector<2x4x32xf32>
    %cst_115 = arith.constant 0.000000e+00 : f32
    %358 = vector.broadcast %cst_115 : f32 to vector<2x4x32xf32>
    %359 = arith.minimumf %355, %358 : vector<2x4x32xf32>
    %360 = math.exp %359 : vector<2x4x32xf32>
    %cst_116 = arith.constant 1.000000e+00 : f32
    %361 = vector.broadcast %cst_116 : f32 to vector<2x4x32xf32>
    %362 = arith.subf %360, %361 : vector<2x4x32xf32>
    %363 = arith.select %357, %355, %362 : vector<2x4x32xi1>, vector<2x4x32xf32>
    %364 = vector.extract_strided_slice %237 {offsets = [0, 32], sizes = [32, 32], strides = [1, 1]} : vector<32x128xbf16> to vector<32x32xbf16>
    %365 = arith.truncf %363 : vector<2x4x32xf32> to vector<2x4x32xbf16>
    "tpu.trace_start"() <{level = 10 : i32, message = "bsk,kn->bsn"}> : () -> ()
    %cst_117 = arith.constant dense<0.000000e+00> : vector<2x4x32xf32>
    %366 = tpu.matmul %365, %364, %cst_117 {dimension_numbers = #tpu.dot_dimension_numbers<[2], [0], [0, 1], [1], [0, 0, 0, 1, 1, 1], [], []>} : vector<2x4x32xbf16>, vector<32x32xbf16>, vector<2x4x32xf32> -> vector<2x4x32xf32>
    "tpu.trace_stop"() : () -> ()
    %367 = vector.shape_cast %349 : vector<1x32xf32> to vector<1x1x32xf32>
    %368 = vector.broadcast %367 : vector<1x1x32xf32> to vector<2x4x32xf32>
    %369 = arith.addf %366, %368 : vector<2x4x32xf32>
    %370 = arith.addf %347, %369 : vector<2x4x32xf32>
    %c45 = arith.constant 45 : index
    %c0_118 = arith.constant 0 : index
    %371 = vector.load %arg2[%c45, %c0_118] : memref<55x32xf32, #tpu.memory_space<vmem>>, vector<1x32xf32>
    %c46 = arith.constant 46 : index
    %c0_119 = arith.constant 0 : index
    %372 = vector.load %arg2[%c46, %c0_119] : memref<55x32xf32, #tpu.memory_space<vmem>>, vector<1x32xf32>
    %cst_120 = arith.constant dense<0.000000e+00> : vector<2x4xf32>
    %373 = vector.multi_reduction <add>, %370, %cst_120 [2] : vector<2x4x32xf32> to vector<2x4xf32>
    %374 = vector.shape_cast %373 : vector<2x4xf32> to vector<2x4x1xf32>
    %cst_121 = arith.constant 3.200000e+01 : f32
    %375 = vector.broadcast %cst_121 : f32 to vector<2x4x1xf32>
    %376 = arith.divf %374, %375 : vector<2x4x1xf32>
    %377 = vector.broadcast %376 : vector<2x4x1xf32> to vector<2x4x32xf32>
    %378 = arith.subf %370, %377 : vector<2x4x32xf32>
    %379 = arith.mulf %378, %378 : vector<2x4x32xf32>
    %cst_122 = arith.constant dense<0.000000e+00> : vector<2x4xf32>
    %380 = vector.multi_reduction <add>, %379, %cst_122 [2] : vector<2x4x32xf32> to vector<2x4xf32>
    %381 = vector.shape_cast %380 : vector<2x4xf32> to vector<2x4x1xf32>
    %cst_123 = arith.constant 3.200000e+01 : f32
    %382 = vector.broadcast %cst_123 : f32 to vector<2x4x1xf32>
    %383 = arith.divf %381, %382 : vector<2x4x1xf32>
    %384 = vector.broadcast %376 : vector<2x4x1xf32> to vector<2x4x32xf32>
    %385 = arith.subf %370, %384 : vector<2x4x32xf32>
    %cst_124 = arith.constant 9.99999974E-6 : f32
    %386 = vector.broadcast %cst_124 : f32 to vector<2x4x1xf32>
    %387 = arith.addf %383, %386 : vector<2x4x1xf32>
    %388 = math.rsqrt %387 : vector<2x4x1xf32>
    %389 = vector.broadcast %388 : vector<2x4x1xf32> to vector<2x4x32xf32>
    %390 = arith.mulf %385, %389 : vector<2x4x32xf32>
    %391 = vector.shape_cast %371 : vector<1x32xf32> to vector<1x1x32xf32>
    %392 = vector.broadcast %391 : vector<1x1x32xf32> to vector<2x4x32xf32>
    %393 = arith.mulf %390, %392 : vector<2x4x32xf32>
    %394 = vector.shape_cast %372 : vector<1x32xf32> to vector<1x1x32xf32>
    %395 = vector.broadcast %394 : vector<1x1x32xf32> to vector<2x4x32xf32>
    %396 = arith.addf %393, %395 : vector<2x4x32xf32>
    %c7 = arith.constant 7 : index
    %c0_125 = arith.constant 0 : index
    %c0_126 = arith.constant 0 : index
    %397 = vector.load %arg1[%c7, %c0_125, %c0_126] : memref<10x32x128xbf16, #tpu.memory_space<vmem>>, vector<1x32x128xbf16>
    %398 = vector.shape_cast %397 : vector<1x32x128xbf16> to vector<32x128xbf16>
    %c8 = arith.constant 8 : index
    %c0_127 = arith.constant 0 : index
    %c0_128 = arith.constant 0 : index
    %399 = vector.load %arg1[%c8, %c0_127, %c0_128] : memref<10x32x128xbf16, #tpu.memory_space<vmem>>, vector<1x32x128xbf16>
    %400 = vector.shape_cast %399 : vector<1x32x128xbf16> to vector<32x128xbf16>
    %c9_129 = arith.constant 9 : index
    %c0_130 = arith.constant 0 : index
    %c0_131 = arith.constant 0 : index
    %401 = vector.load %arg1[%c9_129, %c0_130, %c0_131] : memref<10x32x128xbf16, #tpu.memory_space<vmem>>, vector<1x32x128xbf16>
    %402 = vector.shape_cast %401 : vector<1x32x128xbf16> to vector<32x128xbf16>
    %403 = vector.extract_strided_slice %398 {offsets = [0, 0], sizes = [32, 64], strides = [1, 1]} : vector<32x128xbf16> to vector<32x64xbf16>
    %404 = arith.truncf %396 : vector<2x4x32xf32> to vector<2x4x32xbf16>
    "tpu.trace_start"() <{level = 10 : i32, message = "bsk,kn->bsn"}> : () -> ()
    %cst_132 = arith.constant dense<0.000000e+00> : vector<2x4x64xf32>
    %405 = tpu.matmul %404, %403, %cst_132 {dimension_numbers = #tpu.dot_dimension_numbers<[2], [0], [0, 1], [1], [0, 0, 0, 1, 1, 1], [], []>} : vector<2x4x32xbf16>, vector<32x64xbf16>, vector<2x4x64xf32> -> vector<2x4x64xf32>
    "tpu.trace_stop"() : () -> ()
    %406 = vector.extract_strided_slice %405 {offsets = [0, 0, 0], sizes = [2, 4, 16], strides = [1, 1, 1]} : vector<2x4x64xf32> to vector<2x4x16xf32>
    %407 = vector.extract_strided_slice %405 {offsets = [0, 0, 16], sizes = [2, 4, 16], strides = [1, 1, 1]} : vector<2x4x64xf32> to vector<2x4x16xf32>
    %408 = vector.extract_strided_slice %405 {offsets = [0, 0, 32], sizes = [2, 4, 32], strides = [1, 1, 1]} : vector<2x4x64xf32> to vector<2x4x32xf32>
    %409 = arith.truncf %406 : vector<2x4x16xf32> to vector<2x4x16xbf16>
    %410 = arith.truncf %407 : vector<2x4x16xf32> to vector<2x4x16xbf16>
    "tpu.trace_start"() <{level = 10 : i32, message = "bqa,bka->bqk"}> : () -> ()
    %cst_133 = arith.constant dense<0.000000e+00> : vector<2x4x4xf32>
    %411 = tpu.matmul %409, %410, %cst_133 {dimension_numbers = #tpu.dot_dimension_numbers<[2], [2], [1], [1], [0, 0, 0, 1, 1, 1], [0], [0]>} : vector<2x4x16xbf16>, vector<2x4x16xbf16>, vector<2x4x4xf32> -> vector<2x4x4xf32>
    "tpu.trace_stop"() : () -> ()
    %cst_134 = arith.constant 2.500000e-01 : f32
    %412 = vector.broadcast %cst_134 : f32 to vector<2x4x4xf32>
    %413 = arith.mulf %411, %412 : vector<2x4x4xf32>
    %cst_135 = arith.constant dense<0xFF800000> : vector<2x4xf32>
    %414 = vector.multi_reduction <maximumf>, %413, %cst_135 [2] : vector<2x4x4xf32> to vector<2x4xf32>
    %415 = vector.shape_cast %414 : vector<2x4xf32> to vector<2x4x1xf32>
    %416 = vector.broadcast %415 : vector<2x4x1xf32> to vector<2x4x4xf32>
    %417 = arith.subf %413, %416 : vector<2x4x4xf32>
    %418 = math.exp %417 : vector<2x4x4xf32>
    %cst_136 = arith.constant dense<0.000000e+00> : vector<2x4xf32>
    %419 = vector.multi_reduction <add>, %418, %cst_136 [2] : vector<2x4x4xf32> to vector<2x4xf32>
    %420 = vector.shape_cast %419 : vector<2x4xf32> to vector<2x4x1xf32>
    %421 = tpu.reciprocal %420 {approx = true} : vector<2x4x1xf32> -> vector<2x4x1xf32>
    %422 = vector.broadcast %421 : vector<2x4x1xf32> to vector<2x4x4xf32>
    %423 = arith.mulf %418, %422 : vector<2x4x4xf32>
    %424 = arith.truncf %423 : vector<2x4x4xf32> to vector<2x4x4xbf16>
    %425 = arith.truncf %408 : vector<2x4x32xf32> to vector<2x4x32xbf16>
    "tpu.trace_start"() <{level = 10 : i32, message = "bqk,bkd->bqd"}> : () -> ()
    %cst_137 = arith.constant dense<0.000000e+00> : vector<2x4x32xf32>
    %426 = tpu.matmul %424, %425, %cst_137 {dimension_numbers = #tpu.dot_dimension_numbers<[2], [1], [1], [2], [0, 0, 0, 1, 1, 2], [0], [0]>} : vector<2x4x4xbf16>, vector<2x4x32xbf16>, vector<2x4x32xf32> -> vector<2x4x32xf32>
    "tpu.trace_stop"() : () -> ()
    %427 = vector.extract_strided_slice %398 {offsets = [0, 64], sizes = [32, 32], strides = [1, 1]} : vector<32x128xbf16> to vector<32x32xbf16>
    %428 = arith.truncf %426 : vector<2x4x32xf32> to vector<2x4x32xbf16>
    "tpu.trace_start"() <{level = 10 : i32, message = "bsk,kn->bsn"}> : () -> ()
    %cst_138 = arith.constant dense<0.000000e+00> : vector<2x4x32xf32>
    %429 = tpu.matmul %428, %427, %cst_138 {dimension_numbers = #tpu.dot_dimension_numbers<[2], [0], [0, 1], [1], [0, 0, 0, 1, 1, 1], [], []>} : vector<2x4x32xbf16>, vector<32x32xbf16>, vector<2x4x32xf32> -> vector<2x4x32xf32>
    "tpu.trace_stop"() : () -> ()
    %430 = arith.addf %429, %396 : vector<2x4x32xf32>
    %c49 = arith.constant 49 : index
    %c0_139 = arith.constant 0 : index
    %431 = vector.load %arg2[%c49, %c0_139] : memref<55x32xf32, #tpu.memory_space<vmem>>, vector<1x32xf32>
    %c50 = arith.constant 50 : index
    %c0_140 = arith.constant 0 : index
    %432 = vector.load %arg2[%c50, %c0_140] : memref<55x32xf32, #tpu.memory_space<vmem>>, vector<1x32xf32>
    %cst_141 = arith.constant dense<0.000000e+00> : vector<2x4xf32>
    %433 = vector.multi_reduction <add>, %430, %cst_141 [2] : vector<2x4x32xf32> to vector<2x4xf32>
    %434 = vector.shape_cast %433 : vector<2x4xf32> to vector<2x4x1xf32>
    %cst_142 = arith.constant 3.200000e+01 : f32
    %435 = vector.broadcast %cst_142 : f32 to vector<2x4x1xf32>
    %436 = arith.divf %434, %435 : vector<2x4x1xf32>
    %437 = vector.broadcast %436 : vector<2x4x1xf32> to vector<2x4x32xf32>
    %438 = arith.subf %430, %437 : vector<2x4x32xf32>
    %439 = arith.mulf %438, %438 : vector<2x4x32xf32>
    %cst_143 = arith.constant dense<0.000000e+00> : vector<2x4xf32>
    %440 = vector.multi_reduction <add>, %439, %cst_143 [2] : vector<2x4x32xf32> to vector<2x4xf32>
    %441 = vector.shape_cast %440 : vector<2x4xf32> to vector<2x4x1xf32>
    %cst_144 = arith.constant 3.200000e+01 : f32
    %442 = vector.broadcast %cst_144 : f32 to vector<2x4x1xf32>
    %443 = arith.divf %441, %442 : vector<2x4x1xf32>
    %444 = vector.broadcast %436 : vector<2x4x1xf32> to vector<2x4x32xf32>
    %445 = arith.subf %430, %444 : vector<2x4x32xf32>
    %cst_145 = arith.constant 9.99999974E-6 : f32
    %446 = vector.broadcast %cst_145 : f32 to vector<2x4x1xf32>
    %447 = arith.addf %443, %446 : vector<2x4x1xf32>
    %448 = math.rsqrt %447 : vector<2x4x1xf32>
    %449 = vector.broadcast %448 : vector<2x4x1xf32> to vector<2x4x32xf32>
    %450 = arith.mulf %445, %449 : vector<2x4x32xf32>
    %451 = vector.shape_cast %431 : vector<1x32xf32> to vector<1x1x32xf32>
    %452 = vector.broadcast %451 : vector<1x1x32xf32> to vector<2x4x32xf32>
    %453 = arith.mulf %450, %452 : vector<2x4x32xf32>
    %454 = vector.shape_cast %432 : vector<1x32xf32> to vector<1x1x32xf32>
    %455 = vector.broadcast %454 : vector<1x1x32xf32> to vector<2x4x32xf32>
    %456 = arith.addf %453, %455 : vector<2x4x32xf32>
    %457 = vector.extract_strided_slice %400 {offsets = [0, 0], sizes = [32, 16], strides = [1, 1]} : vector<32x128xbf16> to vector<32x16xbf16>
    %458 = arith.truncf %456 : vector<2x4x32xf32> to vector<2x4x32xbf16>
    "tpu.trace_start"() <{level = 10 : i32, message = "bsk,kn->bsn"}> : () -> ()
    %cst_146 = arith.constant dense<0.000000e+00> : vector<2x4x16xf32>
    %459 = tpu.matmul %458, %457, %cst_146 {dimension_numbers = #tpu.dot_dimension_numbers<[2], [0], [0, 1], [1], [0, 0, 0, 1, 1, 1], [], []>} : vector<2x4x32xbf16>, vector<32x16xbf16>, vector<2x4x16xf32> -> vector<2x4x16xf32>
    "tpu.trace_stop"() : () -> ()
    %460 = vector.extract_strided_slice %400 {offsets = [0, 16], sizes = [32, 48], strides = [1, 1]} : vector<32x128xbf16> to vector<32x48xbf16>
    %461 = arith.truncf %224 : vector<2x16x32xf32> to vector<2x16x32xbf16>
    "tpu.trace_start"() <{level = 10 : i32, message = "bsk,kn->bsn"}> : () -> ()
    %cst_147 = arith.constant dense<0.000000e+00> : vector<2x16x48xf32>
    %462 = tpu.matmul %461, %460, %cst_147 {dimension_numbers = #tpu.dot_dimension_numbers<[2], [0], [0, 1], [1], [0, 0, 0, 1, 1, 1], [], []>} : vector<2x16x32xbf16>, vector<32x48xbf16>, vector<2x16x48xf32> -> vector<2x16x48xf32>
    "tpu.trace_stop"() : () -> ()
    %463 = vector.extract_strided_slice %462 {offsets = [0, 0, 0], sizes = [2, 16, 16], strides = [1, 1, 1]} : vector<2x16x48xf32> to vector<2x16x16xf32>
    %464 = vector.extract_strided_slice %462 {offsets = [0, 0, 16], sizes = [2, 16, 32], strides = [1, 1, 1]} : vector<2x16x48xf32> to vector<2x16x32xf32>
    %465 = arith.truncf %459 : vector<2x4x16xf32> to vector<2x4x16xbf16>
    %466 = arith.truncf %463 : vector<2x16x16xf32> to vector<2x16x16xbf16>
    "tpu.trace_start"() <{level = 10 : i32, message = "bqa,bka->bqk"}> : () -> ()
    %cst_148 = arith.constant dense<0.000000e+00> : vector<2x4x16xf32>
    %467 = tpu.matmul %465, %466, %cst_148 {dimension_numbers = #tpu.dot_dimension_numbers<[2], [2], [1], [1], [0, 0, 0, 1, 1, 1], [0], [0]>} : vector<2x4x16xbf16>, vector<2x16x16xbf16>, vector<2x4x16xf32> -> vector<2x4x16xf32>
    "tpu.trace_stop"() : () -> ()
    %cst_149 = arith.constant 2.500000e-01 : f32
    %468 = vector.broadcast %cst_149 : f32 to vector<2x4x16xf32>
    %469 = arith.mulf %467, %468 : vector<2x4x16xf32>
    %cst_150 = arith.constant dense<0xFF800000> : vector<2x4xf32>
    %470 = vector.multi_reduction <maximumf>, %469, %cst_150 [2] : vector<2x4x16xf32> to vector<2x4xf32>
    %471 = vector.shape_cast %470 : vector<2x4xf32> to vector<2x4x1xf32>
    %472 = vector.broadcast %471 : vector<2x4x1xf32> to vector<2x4x16xf32>
    %473 = arith.subf %469, %472 : vector<2x4x16xf32>
    %474 = math.exp %473 : vector<2x4x16xf32>
    %cst_151 = arith.constant dense<0.000000e+00> : vector<2x4xf32>
    %475 = vector.multi_reduction <add>, %474, %cst_151 [2] : vector<2x4x16xf32> to vector<2x4xf32>
    %476 = vector.shape_cast %475 : vector<2x4xf32> to vector<2x4x1xf32>
    %477 = tpu.reciprocal %476 {approx = true} : vector<2x4x1xf32> -> vector<2x4x1xf32>
    %478 = vector.broadcast %477 : vector<2x4x1xf32> to vector<2x4x16xf32>
    %479 = arith.mulf %474, %478 : vector<2x4x16xf32>
    %480 = arith.truncf %479 : vector<2x4x16xf32> to vector<2x4x16xbf16>
    %481 = arith.truncf %464 : vector<2x16x32xf32> to vector<2x16x32xbf16>
    "tpu.trace_start"() <{level = 10 : i32, message = "bqk,bkd->bqd"}> : () -> ()
    %cst_152 = arith.constant dense<0.000000e+00> : vector<2x4x32xf32>
    %482 = tpu.matmul %480, %481, %cst_152 {dimension_numbers = #tpu.dot_dimension_numbers<[2], [1], [1], [2], [0, 0, 0, 1, 1, 2], [0], [0]>} : vector<2x4x16xbf16>, vector<2x16x32xbf16>, vector<2x4x32xf32> -> vector<2x4x32xf32>
    "tpu.trace_stop"() : () -> ()
    %483 = vector.extract_strided_slice %400 {offsets = [0, 64], sizes = [32, 32], strides = [1, 1]} : vector<32x128xbf16> to vector<32x32xbf16>
    %484 = arith.truncf %482 : vector<2x4x32xf32> to vector<2x4x32xbf16>
    "tpu.trace_start"() <{level = 10 : i32, message = "bsk,kn->bsn"}> : () -> ()
    %cst_153 = arith.constant dense<0.000000e+00> : vector<2x4x32xf32>
    %485 = tpu.matmul %484, %483, %cst_153 {dimension_numbers = #tpu.dot_dimension_numbers<[2], [0], [0, 1], [1], [0, 0, 0, 1, 1, 1], [], []>} : vector<2x4x32xbf16>, vector<32x32xbf16>, vector<2x4x32xf32> -> vector<2x4x32xf32>
    "tpu.trace_stop"() : () -> ()
    %486 = arith.addf %485, %456 : vector<2x4x32xf32>
    %c51 = arith.constant 51 : index
    %c0_154 = arith.constant 0 : index
    %487 = vector.load %arg2[%c51, %c0_154] : memref<55x32xf32, #tpu.memory_space<vmem>>, vector<1x32xf32>
    %c52 = arith.constant 52 : index
    %c0_155 = arith.constant 0 : index
    %488 = vector.load %arg2[%c52, %c0_155] : memref<55x32xf32, #tpu.memory_space<vmem>>, vector<1x32xf32>
    %cst_156 = arith.constant dense<0.000000e+00> : vector<2x4xf32>
    %489 = vector.multi_reduction <add>, %486, %cst_156 [2] : vector<2x4x32xf32> to vector<2x4xf32>
    %490 = vector.shape_cast %489 : vector<2x4xf32> to vector<2x4x1xf32>
    %cst_157 = arith.constant 3.200000e+01 : f32
    %491 = vector.broadcast %cst_157 : f32 to vector<2x4x1xf32>
    %492 = arith.divf %490, %491 : vector<2x4x1xf32>
    %493 = vector.broadcast %492 : vector<2x4x1xf32> to vector<2x4x32xf32>
    %494 = arith.subf %486, %493 : vector<2x4x32xf32>
    %495 = arith.mulf %494, %494 : vector<2x4x32xf32>
    %cst_158 = arith.constant dense<0.000000e+00> : vector<2x4xf32>
    %496 = vector.multi_reduction <add>, %495, %cst_158 [2] : vector<2x4x32xf32> to vector<2x4xf32>
    %497 = vector.shape_cast %496 : vector<2x4xf32> to vector<2x4x1xf32>
    %cst_159 = arith.constant 3.200000e+01 : f32
    %498 = vector.broadcast %cst_159 : f32 to vector<2x4x1xf32>
    %499 = arith.divf %497, %498 : vector<2x4x1xf32>
    %500 = vector.broadcast %492 : vector<2x4x1xf32> to vector<2x4x32xf32>
    %501 = arith.subf %486, %500 : vector<2x4x32xf32>
    %cst_160 = arith.constant 9.99999974E-6 : f32
    %502 = vector.broadcast %cst_160 : f32 to vector<2x4x1xf32>
    %503 = arith.addf %499, %502 : vector<2x4x1xf32>
    %504 = math.rsqrt %503 : vector<2x4x1xf32>
    %505 = vector.broadcast %504 : vector<2x4x1xf32> to vector<2x4x32xf32>
    %506 = arith.mulf %501, %505 : vector<2x4x32xf32>
    %507 = vector.shape_cast %487 : vector<1x32xf32> to vector<1x1x32xf32>
    %508 = vector.broadcast %507 : vector<1x1x32xf32> to vector<2x4x32xf32>
    %509 = arith.mulf %506, %508 : vector<2x4x32xf32>
    %510 = vector.shape_cast %488 : vector<1x32xf32> to vector<1x1x32xf32>
    %511 = vector.broadcast %510 : vector<1x1x32xf32> to vector<2x4x32xf32>
    %512 = arith.addf %509, %511 : vector<2x4x32xf32>
    %c47 = arith.constant 47 : index
    %c0_161 = arith.constant 0 : index
    %513 = vector.load %arg2[%c47, %c0_161] : memref<55x32xf32, #tpu.memory_space<vmem>>, vector<1x32xf32>
    %c48 = arith.constant 48 : index
    %c0_162 = arith.constant 0 : index
    %514 = vector.load %arg2[%c48, %c0_162] : memref<55x32xf32, #tpu.memory_space<vmem>>, vector<1x32xf32>
    %515 = vector.extract_strided_slice %402 {offsets = [0, 0], sizes = [32, 32], strides = [1, 1]} : vector<32x128xbf16> to vector<32x32xbf16>
    %516 = arith.truncf %512 : vector<2x4x32xf32> to vector<2x4x32xbf16>
    "tpu.trace_start"() <{level = 10 : i32, message = "bsk,kn->bsn"}> : () -> ()
    %cst_163 = arith.constant dense<0.000000e+00> : vector<2x4x32xf32>
    %517 = tpu.matmul %516, %515, %cst_163 {dimension_numbers = #tpu.dot_dimension_numbers<[2], [0], [0, 1], [1], [0, 0, 0, 1, 1, 1], [], []>} : vector<2x4x32xbf16>, vector<32x32xbf16>, vector<2x4x32xf32> -> vector<2x4x32xf32>
    "tpu.trace_stop"() : () -> ()
    %518 = vector.shape_cast %513 : vector<1x32xf32> to vector<1x1x32xf32>
    %519 = vector.broadcast %518 : vector<1x1x32xf32> to vector<2x4x32xf32>
    %520 = arith.addf %517, %519 : vector<2x4x32xf32>
    %cst_164 = arith.constant 0.000000e+00 : f32
    %521 = vector.broadcast %cst_164 : f32 to vector<2x4x32xf32>
    %522 = arith.cmpf ogt, %520, %521 : vector<2x4x32xf32>
    %cst_165 = arith.constant 0.000000e+00 : f32
    %523 = vector.broadcast %cst_165 : f32 to vector<2x4x32xf32>
    %524 = arith.minimumf %520, %523 : vector<2x4x32xf32>
    %525 = math.exp %524 : vector<2x4x32xf32>
    %cst_166 = arith.constant 1.000000e+00 : f32
    %526 = vector.broadcast %cst_166 : f32 to vector<2x4x32xf32>
    %527 = arith.subf %525, %526 : vector<2x4x32xf32>
    %528 = arith.select %522, %520, %527 : vector<2x4x32xi1>, vector<2x4x32xf32>
    %529 = vector.extract_strided_slice %402 {offsets = [0, 32], sizes = [32, 32], strides = [1, 1]} : vector<32x128xbf16> to vector<32x32xbf16>
    %530 = arith.truncf %528 : vector<2x4x32xf32> to vector<2x4x32xbf16>
    "tpu.trace_start"() <{level = 10 : i32, message = "bsk,kn->bsn"}> : () -> ()
    %cst_167 = arith.constant dense<0.000000e+00> : vector<2x4x32xf32>
    %531 = tpu.matmul %530, %529, %cst_167 {dimension_numbers = #tpu.dot_dimension_numbers<[2], [0], [0, 1], [1], [0, 0, 0, 1, 1, 1], [], []>} : vector<2x4x32xbf16>, vector<32x32xbf16>, vector<2x4x32xf32> -> vector<2x4x32xf32>
    "tpu.trace_stop"() : () -> ()
    %532 = vector.shape_cast %514 : vector<1x32xf32> to vector<1x1x32xf32>
    %533 = vector.broadcast %532 : vector<1x1x32xf32> to vector<2x4x32xf32>
    %534 = arith.addf %531, %533 : vector<2x4x32xf32>
    %535 = arith.addf %512, %534 : vector<2x4x32xf32>
    %c53 = arith.constant 53 : index
    %c0_168 = arith.constant 0 : index
    %536 = vector.load %arg2[%c53, %c0_168] : memref<55x32xf32, #tpu.memory_space<vmem>>, vector<1x32xf32>
    %c54 = arith.constant 54 : index
    %c0_169 = arith.constant 0 : index
    %537 = vector.load %arg2[%c54, %c0_169] : memref<55x32xf32, #tpu.memory_space<vmem>>, vector<1x32xf32>
    %cst_170 = arith.constant dense<0.000000e+00> : vector<2x4xf32>
    %538 = vector.multi_reduction <add>, %535, %cst_170 [2] : vector<2x4x32xf32> to vector<2x4xf32>
    %539 = vector.shape_cast %538 : vector<2x4xf32> to vector<2x4x1xf32>
    %cst_171 = arith.constant 3.200000e+01 : f32
    %540 = vector.broadcast %cst_171 : f32 to vector<2x4x1xf32>
    %541 = arith.divf %539, %540 : vector<2x4x1xf32>
    %542 = vector.broadcast %541 : vector<2x4x1xf32> to vector<2x4x32xf32>
    %543 = arith.subf %535, %542 : vector<2x4x32xf32>
    %544 = arith.mulf %543, %543 : vector<2x4x32xf32>
    %cst_172 = arith.constant dense<0.000000e+00> : vector<2x4xf32>
    %545 = vector.multi_reduction <add>, %544, %cst_172 [2] : vector<2x4x32xf32> to vector<2x4xf32>
    %546 = vector.shape_cast %545 : vector<2x4xf32> to vector<2x4x1xf32>
    %cst_173 = arith.constant 3.200000e+01 : f32
    %547 = vector.broadcast %cst_173 : f32 to vector<2x4x1xf32>
    %548 = arith.divf %546, %547 : vector<2x4x1xf32>
    %549 = vector.broadcast %541 : vector<2x4x1xf32> to vector<2x4x32xf32>
    %550 = arith.subf %535, %549 : vector<2x4x32xf32>
    %cst_174 = arith.constant 9.99999974E-6 : f32
    %551 = vector.broadcast %cst_174 : f32 to vector<2x4x1xf32>
    %552 = arith.addf %548, %551 : vector<2x4x1xf32>
    %553 = math.rsqrt %552 : vector<2x4x1xf32>
    %554 = vector.broadcast %553 : vector<2x4x1xf32> to vector<2x4x32xf32>
    %555 = arith.mulf %550, %554 : vector<2x4x32xf32>
    %556 = vector.shape_cast %536 : vector<1x32xf32> to vector<1x1x32xf32>
    %557 = vector.broadcast %556 : vector<1x1x32xf32> to vector<2x4x32xf32>
    %558 = arith.mulf %555, %557 : vector<2x4x32xf32>
    %559 = vector.shape_cast %537 : vector<1x32xf32> to vector<1x1x32xf32>
    %560 = vector.broadcast %559 : vector<1x1x32xf32> to vector<2x4x32xf32>
    %561 = arith.addf %558, %560 : vector<2x4x32xf32>
    %562 = vector.extract_strided_slice %561 {offsets = [0, 0, 0], sizes = [2, 1, 32], strides = [1, 1, 1]} : vector<2x4x32xf32> to vector<2x1x32xf32>
    %563 = vector.extract_strided_slice %561 {offsets = [0, 1, 0], sizes = [2, 1, 32], strides = [1, 1, 1]} : vector<2x4x32xf32> to vector<2x1x32xf32>
    %564 = vector.extract_strided_slice %561 {offsets = [0, 2, 0], sizes = [2, 1, 32], strides = [1, 1, 1]} : vector<2x4x32xf32> to vector<2x1x32xf32>
    %565 = vector.extract_strided_slice %561 {offsets = [0, 3, 0], sizes = [2, 1, 32], strides = [1, 1, 1]} : vector<2x4x32xf32> to vector<2x1x32xf32>
    %566 = tpu.concatenate %562, %563, %564, %565 in 2 : vector<2x1x32xf32>, vector<2x1x32xf32>, vector<2x1x32xf32>, vector<2x1x32xf32> -> vector<2x1x128xf32>
    %567 = arith.truncf %566 : vector<2x1x128xf32> to vector<2x1x128xbf16>
    %c0_175 = arith.constant 0 : index
    %c0_176 = arith.constant 0 : index
    %568 = vector.load %arg3[%c0_175, %c0_176] : memref<128x16xbf16, #tpu.memory_space<vmem>>, vector<128x16xbf16>
    "tpu.trace_start"() <{level = 10 : i32, message = "bxk,ko->bxo"}> : () -> ()
    %cst_177 = arith.constant dense<0.000000e+00> : vector<2x1x16xf32>
    %569 = tpu.matmul %567, %568, %cst_177 {dimension_numbers = #tpu.dot_dimension_numbers<[2], [0], [0, 1], [1], [0, 0, 0, 1, 1, 1], [], []>} : vector<2x1x128xbf16>, vector<128x16xbf16>, vector<2x1x16xf32> -> vector<2x1x16xf32>
    "tpu.trace_stop"() : () -> ()
    %c10 = arith.constant 10 : index
    %c0_178 = arith.constant 0 : index
    %570 = vector.load %arg2[%c10, %c0_178] : memref<55x32xf32, #tpu.memory_space<vmem>>, vector<1x32xf32>
    %571 = vector.extract_strided_slice %570 {offsets = [0, 0], sizes = [1, 16], strides = [1, 1]} : vector<1x32xf32> to vector<1x16xf32>
    %572 = vector.shape_cast %571 : vector<1x16xf32> to vector<1x1x16xf32>
    %573 = vector.broadcast %572 : vector<1x1x16xf32> to vector<2x1x16xf32>
    %574 = arith.addf %569, %573 : vector<2x1x16xf32>
    %c0_179 = arith.constant 0 : index
    %c0_180 = arith.constant 0 : index
    %c0_181 = arith.constant 0 : index
    %575 = vector.load %arg4[%c0_179, %c0_180, %c0_181] : memref<2x1x16xf32, #tpu.memory_space<vmem>>, vector<2x1x16xf32>
    tpu.vector_store %arg4[%c0_179, %c0_180, %c0_181], %574 {strides = array<i32>} : memref<2x1x16xf32, #tpu.memory_space<vmem>>, vector<2x1x16xf32>,
    return
  }
}

</mosaic_0001>

<bundles_post_ra>
// kernel: transformer_forward.1
= control target key start
LH: loop header
LB: loop body
LE: loop exit
PB: predicated region body
PF: predicated region fallthrough
CT: control target
= control target key end

     0   :  { %9 = vsyncpa [#allocation3], 0  ;;  %s3316_s18 = smov [#allocation2]   ;;  %s3317_s20 = smov 64   ;;  %s4048_s0 = inlined_call_operand.vmem [shape: f32[2,16,4], index: 0, kind: input, shape index: {}]   ;;  %s4049_s1 = inlined_call_operand.hbm [shape: bf16[10,32,128], index: 1, kind: input, shape index: {}]   ;;  %s4050_s2 = inlined_call_operand.vmem [shape: f32[55,32], index: 2, kind: input, shape index: {}]   ;;  %s4051_s3 = inlined_call_operand.vmem [shape: bf16[128,16], index: 3, kind: input, shape index: {}]   ;;  %s4052_s4 = inlined_call_operand.vmem [shape: f32[2,1,16], index: 4, kind: output, shape index: {}]  }
   0x1   :  { %s16_s17 = sshll.u32 %s4049_s1, 4  ;;  %s18_s19 = sshll.u32 %s3316_s18, 4  ;;  %s17_s17 = int_to_ptr.hbm [resolvable:$true] %s16_s17  ;;  %s19_s19 = int_to_ptr.vmem [resolvable:$true] %s18_s19 }
   0x2   :  { %s3318_s21 = smov 4  }
   0x3   :  { %24 = dma.hbm_to_vmem [thread:$0]  %s17_s17, 2560, %s19_s19, [#allocation3], %s3317_s20, %s3317_s20, %s3318_s21  }
   0x4   :  { %3314 = dma.done.wait [#allocation3], 2560  }
   0x5   :  { %3315 = vsyncadd [#allocation3], 4294964736  ;;  %vm54_vm0 = vcmask 1043456   ;;  %vm41_vm1 = vcmask 31744   ;;  %v38_v0 = vld [vmem:[%s4050_s2] sm:$0xf] }
   0x6   :  { %v34_v1 = vld [vmem:[%s4048_s0] sm:$0xff]  ;;  %2875 = vmatpush.msk.msra.mxu0 %vm54_vm0, %v38_v0  ;;  %v35_v2 = vld [vmem:[%s4048_s0 + $0x8] sm:$0xff]  ;;  %v37_v3 = vld [vmem:[%s4048_s0 + $0x18] sm:$0xff]  ;;  %vm128_vm2 = vcmask 261120   ;;  %s3319_s12 = smov 112   ;;  %vm165_vm3 = vcmask 130048  }
   0x7   :  { %2876 = vmatmul.msk.f32.vlgmr.msra.gmra.mxu0 %vm41_vm1, %v34_v1  ;;  %1300 = vst.sshfl [vmem:[#allocation1] sm:$0xff pattern:$0x75316420] %v35_v2  ;;  %v3114_v6 = vld [vmem:[%s4050_s2 + $0x9] ss:$0 sm:$0xff]  ;;  %v36_v7 = vld [vmem:[%s4048_s0 + $0x10] sm:$0xff] }
   0x8   :  { %1303 = vst.sshfl [vmem:[#allocation1 + $0x10] sm:$0xff pattern:$0x75316420] %v37_v3  ;;  %v3378_v9 = vld [vmem:[#allocation2 + $0x8] sm:$0xff]  ;;  %v3381_v10 = vld [vmem:[#allocation2] sm:$0xff]  ;;  %s3320_s13 = smov 96  }
   0x9   :  { %141 = vmatpush.bf16.msra.mxu1 %v3378_v9  ;;  %v3115_v11 = vld [vmem:[%s4050_s2 + $0x4] ss:$0 sm:$0xff]  ;;  %v87_v14 = vld [vmem:[%s4050_s2 + $0xb] sm:$0xff]  ;;  %v88_v17 = vld [vmem:[%s4050_s2 + $0x13] sm:$0xff]  ;;  %s3322_s22 = smov 32  }
   0xd   :  { %142 = vmatpush.bf16.msra.mxu1 %v3381_v10 }
   0xe   :  { %v1302_v4 = vld [vmem:[#allocation1 + $0x1] ss:$2 sm:$0xff] }
   0xf   :  { %2877 = vmatmul.msk.f32.gmra.mxu0 %vm41_vm1, %v35_v2  ;;  %v1305_v5 = vld [vmem:[#allocation1 + $0x11] ss:$2 sm:$0xff]  ;;  %1306 = vst [vmem:[#allocation1] ss:$2 sm:$0xff] %v1302_v4 }
  0x10   :  { %1308 = vst [vmem:[#allocation1 + $0x1] ss:$2 sm:$0xff] %v1305_v5 }
  0x17   :  { %v3374_v8 = vld.sshfl [vmem:[#allocation1] sm:$0xff pattern:$0x75316420]  ;;  %2878 = vmatmul.msk.f32.gmra.mxu0 %vm41_vm1, %v36_v7 }
  0x18   :  { %1311 = vst [vmem:[#allocation1] ss:$2 sm:$0xff] %v3114_v6 }
  0x19   :  { %1313 = vst [vmem:[#allocation1 + $0x1] ss:$2 sm:$0xff] %v3114_v6 }
  0x1f   :  { %2879 = vmatmul.msk.f32.gmra.mxu0 %vm41_vm1, %v37_v3 }
  0x84   :  { %v75_v12 = vpop.f32.mrf.mxu0 }
  0x85   :  { %v76_v13 = vadd.f32 %v3115_v11, %v75_v12 }
  0x87   :  { %v3390_v15 = vadd.f32 %v87_v14, %v76_v13 }
  0x89   :  { %v102_v19 = vpack.c.bf16 %v3390_v15, %v3390_v15 }
  0x8b   :  { %v110_v23 = vunpack.c.l.b16 %v102_v19 }
  0x8c   :  { %v78_v16 = vpop.f32.mrf.mxu0 }
  0x8d   :  { %v79_v18 = vadd.f32 %v3115_v11, %v78_v16 }
  0x8f   :  { %v3397_v20 = vadd.f32 %v88_v17, %v79_v18 }
  0x91   :  { %v103_v21 = vpack.c.bf16 %v3397_v20, %v3397_v20 }
  0x93   :  { %v111_v22 = vunpack.c.l.b16 %v103_v21 }
  0x94   :  { %v81_v24 = vpop.f32.mrf.mxu0 }
  0x95   :  { %v114_v25 = vpack.c.b16 %v111_v22, %v110_v23  ;;  %v82_v26 = vadd.f32 %v3115_v11, %v81_v24 }
  0x97   :  { %2888 = vmatmul.msk.bf16.vlgmr.msra.gmra.mxu1 %vm128_vm2, %v114_v25  ;;  %v3402_v27 = vadd.f32 %v87_v14, %v82_v26 }
  0x99   :  { %v104_v30 = vpack.c.bf16 %v3402_v27, %v3402_v27 }
  0x9b   :  { %v112_v34 = vunpack.c.l.b16 %v104_v30 }
  0x9c   :  { %v84_v28 = vpop.f32.mrf.mxu0 }
  0x9d   :  { %v85_v29 = vadd.f32 %v3115_v11, %v84_v28 }
  0x9f   :  { %v3406_v31 = vadd.f32 %v88_v17, %v85_v29 }
  0xa1   :  { %v105_v32 = vpack.c.bf16 %v3406_v31, %v3406_v31 }
  0xa3   :  { %v113_v33 = vunpack.c.l.b16 %v105_v32 }
  0xa5   :  { %v115_v35 = vpack.c.b16 %v113_v33, %v112_v34 }
  0xa7   :  { %2889 = vmatmul.msk.bf16.gmra.mxu1 %vm128_vm2, %v115_v35 }
 0x114   :  { %v144_v36 = vpop.f32.mrf.mxu1 }
 0x115   :  { %v154_v37 = vpack.c.bf16 %v144_v36, %v144_v36 }
 0x117   :  { %v160_v40 = vunpack.c.l.b16 %v154_v37 }
 0x11c   :  { %v146_v38 = vpop.f32.mrf.mxu1 }
 0x11d   :  { %v155_v39 = vpack.c.bf16 %v146_v38, %v146_v38 }
 0x11f   :  { %v161_v41 = vunpack.c.l.b16 %v155_v39 }
 0x121   :  { %v162_v42 = vpack.c.b16 %v161_v41, %v160_v40 }
 0x123   :  { %163 = vrot.lane.b32.xlu0 %v162_v42, %s3319_s12 }
 0x124   :  { %v149_v43 = vpop.f32.mrf.mxu1 }
 0x125   :  { %v156_v44 = vpack.c.bf16 %v149_v43, %v149_v43 }
 0x127   :  { %v188_v47 = vunpack.c.l.b16 %v156_v44 }
 0x12c   :  { %v151_v45 = vpop.f32.mrf.mxu1 }
 0x12d   :  { %v157_v46 = vpack.c.bf16 %v151_v45, %v151_v45 }
 0x12f   :  { %v189_v48 = vunpack.c.l.b16 %v157_v46 }
 0x131   :  { %v190_v49 = vpack.c.b16 %v189_v48, %v188_v47 }
 0x133   :  { %191 = vrot.lane.b32.xlu0 %v190_v49, %s3319_s12 }
 0x195   :  { %v164_v50 = vpop.permute.xlu0 %163 }
 0x196   :  { %v170_v51 = vsel %vm165_vm3, %v164_v50, 0 }
 0x197   :  { %179 = vmatpush.bf16.xpose.msra.mxu3 %v170_v51 }
 0x19e   :  { %2890 = vmatmul.msk.bf16.vlgmr.msra.gmra.mxu3 %vm165_vm3, %v162_v42 }
 0x1a5   :  { %v192_v52 = vpop.permute.xlu0 %191 }
 0x1a6   :  { %v197_v53 = vsel %vm165_vm3, %v192_v52, 0 }
 0x1a7   :  { %206 = vmatpush.bf16.xpose.msrb.mxu3 %v197_v53 }
 0x1ae   :  { %2891 = vmatmul.msk.bf16.vlgmr.msrb.gmra.mxu3 %vm165_vm3, %v190_v49 }
 0x221   :  { %v181_v54 = vpop.f32.mrf.mxu3 }
 0x222   :  { %v213_v55 = vmul.f32 0.25, %v181_v54 }
 0x224   :  { %v217_v56 = vsel %vm165_vm3, %v213_v55, -inf }
 0x225   :  { %218 = vmax.xlane.f32.xlu1 %v217_v56 }
 0x229   :  { %v183_v57 = vpop.f32.mrf.mxu3 }
 0x22a   :  { %v214_v58 = vmul.f32 0.25, %v183_v57 }
 0x22c   :  { %v220_v59 = vsel %vm165_vm3, %v214_v58, -inf }
 0x22d   :  { %221 = vmax.xlane.f32.xlu1 %v220_v59 }
 0x231   :  { %v208_v60 = vpop.f32.mrf.mxu3 }
 0x232   :  { %v215_v61 = vmul.f32 0.25, %v208_v60 }
 0x234   :  { %v223_v62 = vsel %vm165_vm3, %v215_v61, -inf }
 0x235   :  { %224 = vmax.xlane.f32.xlu2 %v223_v62 }
 0x239   :  { %v210_v63 = vpop.f32.mrf.mxu3 }
 0x23a   :  { %v216_v0 = vmul.f32 0.25, %v210_v63 }
 0x23c   :  { %v226_v1 = vsel %vm165_vm3, %v216_v0, -inf }
 0x23d   :  { %227 = vmax.xlane.f32.xlu2 %v226_v1 }
 0x255   :  { %270 = vrot.lane.b32.xlu2 %v162_v42, %s3320_s13 }
 0x25d   :  { %331 = vrot.lane.b32.xlu2 %v3378_v9, %s3317_s20 }
 0x265   :  { %329 = vrot.lane.b32.xlu2 %v3381_v10, %s3317_s20 }
 0x298   :  { %v219_v2 = vpop.xlane.xlu1 %218 }
 0x299   :  { %v229_v3 = vsub.f32 %v213_v55, %v219_v2 }
 0x29b   :  { %v233_v4 = vmul.f32 1.442695, %v229_v3 }
 0x29d   :  { %3144 = vpow2.f32 %v233_v4 }
 0x2a0   :  { %v222_v5 = vpop.xlane.xlu1 %221 }
 0x2a1   :  { %v230_v6 = vsub.f32 %v214_v58, %v222_v5 }
 0x2a3   :  { %v3145_v7 = vpop.eup %3144  ;;  %v235_v11 = vmul.f32 1.442695, %v230_v6 }
 0x2a4   :  { %v241_v12 = vsel %vm165_vm3, %v3145_v7, 0.0 }
 0x2a5   :  { %3146 = vpow2.f32 %v235_v11  ;;  %242 = vadd.xlane.f32.xlu0 %v241_v12 }
 0x2a8   :  { %v225_v13 = vpop.xlane.xlu2 %224 }
 0x2a9   :  { %v231_v14 = vsub.f32 %v215_v61, %v225_v13 }
 0x2ab   :  { %v3147_v16 = vpop.eup %3146  ;;  %v237_v17 = vmul.f32 1.442695, %v231_v14 }
 0x2ac   :  { %v244_v9 = vsel %vm165_vm3, %v3147_v16, 0.0 }
 0x2ad   :  { %3148 = vpow2.f32 %v237_v17  ;;  %245 = vadd.xlane.f32.xlu1 %v244_v9  ;;  %v3321_v9 = vmov 32.0  }
 0x2b0   :  { %v228_v10 = vpop.xlane.xlu2 %227 }
 0x2b1   :  { %v232_v18 = vsub.f32 %v216_v0, %v228_v10 }
 0x2b3   :  { %v3149_v19 = vpop.eup %3148  ;;  %v239_v21 = vmul.f32 1.442695, %v232_v18 }
 0x2b4   :  { %v247_v22 = vsel %vm165_vm3, %v3149_v19, 0.0 }
 0x2b5   :  { %3150 = vpow2.f32 %v239_v21  ;;  %248 = vadd.xlane.f32.xlu1 %v247_v22 }
 0x2b8   :  { %v271_v23 = vpop.permute.xlu2 %270 }
 0x2b9   :  { %283 = vmatpush.bf16.msra.mxu2 %v271_v23 }
 0x2bb   :  { %v3151_v24 = vpop.eup %3150 }
 0x2bc   :  { %v250_v25 = vsel %vm165_vm3, %v3151_v24, 0.0 }
 0x2bd   :  { %251 = vadd.xlane.f32.xlu1 %v250_v25 }
 0x2c0   :  { %v332_v51 = vpop.permute.xlu2 %331 }
 0x2c1   :  { %347 = vmatpush.bf16.msrb.mxu0 %v332_v51 }
 0x2c8   :  { %v330_v52 = vpop.permute.xlu2 %329 }
 0x2c9   :  { %348 = vmatpush.bf16.msrb.mxu0 %v330_v52 }
 0x2d6   :  { %295 = vrot.lane.b32.xlu1 %v190_v49, %s3320_s13 }
 0x318   :  { %v243_v26 = vpop.xlane.xlu0 %242 }
 0x319   :  { %3152 = vrcp.f32 %v243_v26 }
 0x31f   :  { %v3153_v29 = vpop.eup %3152 }
 0x320   :  { %v246_v28 = vpop.xlane.xlu1 %245  ;;  %v257_v30 = vmul.f32 %v3153_v29, %v3145_v7 }
 0x321   :  { %3154 = vrcp.f32 %v246_v28 }
 0x322   :  { %v261_v35 = vpack.c.bf16 %v257_v30, %v257_v30 }
 0x324   :  { %v267_v37 = vunpack.c.l.b16 %v261_v35 }
 0x327   :  { %v3155_v32 = vpop.eup %3154 }
 0x328   :  { %v249_v33 = vpop.xlane.xlu1 %248  ;;  %v258_v34 = vmul.f32 %v3155_v32, %v3147_v16 }
 0x32a   :  { %v262_v36 = vpack.c.bf16 %v258_v34, %v258_v34 }
 0x32c   :  { %v268_v38 = vunpack.c.l.b16 %v262_v36 }
 0x32e   :  { %v269_v39 = vpack.c.b16 %v268_v38, %v267_v37 }
 0x330   :  { %2892 = vmatmul.msk.bf16.vlgmr.msra.gmra.mxu2 %vm165_vm3, %v269_v39  ;;  %v252_v40 = vpop.xlane.xlu1 %251 }
 0x331   :  { %3156 = vrcp.f32 %v252_v40 }
 0x332   :  { %3158 = vrcp.f32 %v249_v33 }
 0x333   :  { %3160 = vrcp.f32 %v3321_v9 }
 0x337   :  { %v3157_v41 = vpop.eup %3156 }
 0x338   :  { %v3159_v42 = vpop.eup %3158  ;;  %v260_v43 = vmul.f32 %v3157_v41, %v3151_v24 }
 0x339   :  { %v259_v44 = vmul.f32 %v3159_v42, %v3149_v19  ;;  %v3161_v10 = vpop.eup %3160 }
 0x33a   :  { %v264_v45 = vpack.c.bf16 %v260_v43, %v260_v43  ;;  %v379_v18 = vmul.f32 32.0, %v3161_v10  ;;  %vm383_vm4 = vweird.f32 %v3161_v10 }
 0x33b   :  { %v263_v46 = vpack.c.bf16 %v259_v44, %v259_v44 }
 0x33c   :  { %v293_v47 = vunpack.c.l.b16 %v264_v45  ;;  %v3067_v45 = vld [vmem:[#allocation2 + $0x18] sm:$0xff] }
 0x33d   :  { %v292_v48 = vunpack.c.l.b16 %v263_v46  ;;  %512 = vmatpush.bf16.msrb.mxu1 %v3067_v45 }
 0x33f   :  { %v294_v50 = vpack.c.b16 %v293_v47, %v292_v48  ;;  %v3066_v47 = vld [vmem:[#allocation2 + $0x10] sm:$0xff] }
 0x341   :  { %513 = vmatpush.bf16.msrb.mxu1 %v3066_v47 }
 0x348   :  { %v296_v49 = vpop.permute.xlu1 %295 }
 0x349   :  { %308 = vmatpush.bf16.msra.mxu3 %v296_v49 }
 0x34c   :  { %2893 = vmatmul.msk.bf16.vlgmr.msra.gmra.mxu3 %vm165_vm3, %v294_v50 }
 0x3b3   :  { %v285_v53 = vpop.f32.mrf.mxu2 }
 0x3b4   :  { %v315_v54 = vpack.c.bf16 %v285_v53, %v285_v53 }
 0x3b6   :  { %v323_v57 = vunpack.c.l.b16 %v315_v54 }
 0x3bb   :  { %v287_v55 = vpop.f32.mrf.mxu2 }
 0x3bc   :  { %v316_v56 = vpack.c.bf16 %v287_v55, %v287_v55 }
 0x3be   :  { %v324_v58 = vunpack.c.l.b16 %v316_v56 }
 0x3c0   :  { %v327_v59 = vpack.c.b16 %v324_v58, %v323_v57 }
 0x3c2   :  { %2894 = vmatmul.msk.bf16.vlgmr.msrb.gmra.mxu0 %vm128_vm2, %v327_v59 }
 0x3cf   :  { %v310_v60 = vpop.f32.mrf.mxu3 }
 0x3d0   :  { %v317_v61 = vpack.c.bf16 %v310_v60, %v310_v60 }
 0x3d2   :  { %v325_v0 = vunpack.c.l.b16 %v317_v61  ;;  %v3116_v61 = vld [vmem:[%s4050_s2 + $0x1d] ss:$0 sm:$0xff] }
 0x3d7   :  { %v312_v62 = vpop.f32.mrf.mxu3 }
 0x3d8   :  { %v318_v63 = vpack.c.bf16 %v312_v62, %v312_v62 }
 0x3da   :  { %v326_v1 = vunpack.c.l.b16 %v318_v63 }
 0x3dc   :  { %v328_v2 = vpack.c.b16 %v326_v1, %v325_v0 }
 0x3de   :  { %2895 = vmatmul.msk.bf16.gmra.mxu0 %vm128_vm2, %v328_v2  ;;  %v3117_v2 = vld [vmem:[%s4050_s2 + $0x1e] ss:$0 sm:$0xff] }
 0x43f   :  { %v350_v3 = vpop.f32.mrf.mxu0 }
 0x440   :  { %v360_v4 = vadd.f32 %v350_v3, %v3390_v15 }
 0x442   :  { %v366_v5 = vsel %vm128_vm2, %v360_v4, 0.0 }
 0x443   :  { %367 = vadd.xlane.f32.xlu2 %v366_v5 }
 0x447   :  { %v352_v6 = vpop.f32.mrf.mxu0 }
 0x448   :  { %v361_v7 = vadd.f32 %v352_v6, %v3397_v20  ;;  %v380_v20 = vsub.f32 1.0, %v379_v18 }
 0x44a   :  { %v369_v11 = vsel %vm128_vm2, %v361_v7, 0.0  ;;  %v381_v19 = vmul.f32 %v3161_v10, %v380_v20 }
 0x44b   :  { %370 = vadd.xlane.f32.xlu0 %v369_v11 }
 0x44c   :  { %v382_v21 = vadd.f32 %v3161_v10, %v381_v19 }
 0x44e   :  { %v3443_v22 = vsel %vm383_vm4, %v3161_v10, %v382_v21 }
 0x45b   :  { %v355_v12 = vpop.f32.mrf.mxu0 }
 0x45c   :  { %v362_v13 = vadd.f32 %v355_v12, %v3402_v27 }
 0x45e   :  { %v372_v14 = vsel %vm128_vm2, %v362_v13, 0.0 }
 0x45f   :  { %373 = vadd.xlane.f32.xlu1 %v372_v14 }
 0x463   :  { %v357_v16 = vpop.f32.mrf.mxu0 }
 0x464   :  { %v363_v17 = vadd.f32 %v357_v16, %v3406_v31 }
 0x466   :  { %v375_v15 = vsel %vm128_vm2, %v363_v17, 0.0 }
 0x467   :  { %376 = vadd.xlane.f32.xlu0 %v375_v15 }
 0x4b6   :  { %v368_v27 = vpop.xlane.xlu2 %367 }
 0x4b7   :  { %v385_v23 = vmul.f32 %v3443_v22, %v368_v27 }
 0x4b9   :  { %v389_v24 = vsub.f32 %v360_v4, %v385_v23 }
 0x4bb   :  { %v393_v25 = vmul.f32 %v389_v24, %v389_v24 }
 0x4bd   :  { %v397_v31 = vsel %vm128_vm2, %v393_v25, 0.0 }
 0x4be   :  { %v371_v26 = vpop.xlane.xlu0 %370  ;;  %398 = vadd.xlane.f32.xlu0 %v397_v31 }
 0x4bf   :  { %v386_v28 = vmul.f32 %v3443_v22, %v371_v26 }
 0x4c1   :  { %v390_v29 = vsub.f32 %v361_v7, %v386_v28 }
 0x4c3   :  { %v394_v30 = vmul.f32 %v390_v29, %v390_v29 }
 0x4c5   :  { %v400_v32 = vsel %vm128_vm2, %v394_v30, 0.0 }
 0x4c6   :  { %401 = vadd.xlane.f32.xlu0 %v400_v32 }
 0x4d2   :  { %v374_v33 = vpop.xlane.xlu1 %373 }
 0x4d3   :  { %v387_v34 = vmul.f32 %v3443_v22, %v374_v33 }
 0x4d5   :  { %v3450_v35 = vsub.f32 %v362_v13, %v387_v34 }
 0x4d7   :  { %v395_v36 = vmul.f32 %v3450_v35, %v3450_v35 }
 0x4d9   :  { %v403_v37 = vsel %vm128_vm2, %v395_v36, 0.0 }
 0x4da   :  { %404 = vadd.xlane.f32.xlu0 %v403_v37  ;;  %v377_v38 = vpop.xlane.xlu0 %376 }
 0x4db   :  { %v388_v39 = vmul.f32 %v3443_v22, %v377_v38 }
 0x4dd   :  { %v3456_v40 = vsub.f32 %v363_v17, %v388_v39 }
 0x4df   :  { %v396_v41 = vmul.f32 %v3456_v40, %v3456_v40 }
 0x4e1   :  { %v406_v42 = vsel %vm128_vm2, %v396_v41, 0.0 }
 0x4e2   :  { %407 = vadd.xlane.f32.xlu2 %v406_v42 }
 0x4ee   :  { %566 = vrot.lane.b32.xlu0 %v3067_v45, %s3320_s13 }
 0x4fa   :  { %564 = vrot.lane.b32.xlu2 %v3066_v47, %s3320_s13 }
 0x531   :  { %v399_v43 = vpop.xlane.xlu0 %398 }
 0x532   :  { %v409_v44 = vmul.f32 %v399_v43, %v3443_v22 }
 0x534   :  { %v413_v46 = vadd.f32 1e-05, %v409_v44 }
 0x536   :  { %3162 = vrsqrt.f32 %v413_v46  ;;  %vm423_vm6 = vweird.f32 %v413_v46 }
 0x539   :  { %v402_v48 = vpop.xlane.xlu0 %401 }
 0x53a   :  { %v410_v49 = vmul.f32 %v402_v48, %v3443_v22 }
 0x53c   :  { %v3163_v50 = vpop.eup %3162  ;;  %v414_v51 = vadd.f32 1e-05, %v410_v49 }
 0x53d   :  { %v418_v52 = vmul.f32 %v3163_v50, %v413_v46  ;;  %vm424_vm5 = vweird.f32 %v3163_v50 }
 0x53e   :  { %3164 = vrsqrt.f32 %v414_v51  ;;  %vm425_vm7 = vmor %vm423_vm6, %vm424_vm5  ;;  %vm433_vm9 = vweird.f32 %v414_v51 }
 0x53f   :  { %v419_v53 = vmul.f32 %v3163_v50, %v418_v52 }
 0x541   :  { %v420_v54 = vmul.f32 0.5, %v419_v53 }
 0x543   :  { %v421_v55 = vsub.f32 1.5, %v420_v54 }
 0x544   :  { %v3165_v56 = vpop.eup %3164 }
 0x545   :  { %v422_v57 = vmul.f32 %v3163_v50, %v421_v55  ;;  %v428_v58 = vmul.f32 %v3165_v56, %v414_v51  ;;  %vm434_vm8 = vweird.f32 %v3165_v56 }
 0x546   :  { %vm435_vm10 = vmor %vm433_vm9, %vm434_vm8 }
 0x547   :  { %v426_v59 = vsel %vm425_vm7, %v3163_v50, %v422_v57  ;;  %v429_v60 = vmul.f32 %v3165_v56, %v428_v58 }
 0x548   :  { %v457_v62 = vmul.f32 %v426_v59, %v389_v24 }
 0x549   :  { %v430_v63 = vmul.f32 0.5, %v429_v60 }
 0x54a   :  { %v462_v1 = vmul.f32 %v3116_v61, %v457_v62 }
 0x54b   :  { %v431_v0 = vsub.f32 1.5, %v430_v63 }
 0x54c   :  { %v3472_v12 = vadd.f32 %v3117_v2, %v462_v1 }
 0x54d   :  { %v432_v3 = vmul.f32 %v3165_v56, %v431_v0  ;;  %v405_v4 = vpop.xlane.xlu0 %404 }
 0x54e   :  { %v411_v5 = vmul.f32 %v405_v4, %v3443_v22  ;;  %v473_v16 = vpack.c.bf16 %v3472_v12, %v3472_v12 }
 0x54f   :  { %v436_v6 = vsel %vm435_vm10, %v3165_v56, %v432_v3 }
 0x550   :  { %v458_v7 = vmul.f32 %v436_v6, %v390_v29  ;;  %v415_v11 = vadd.f32 1e-05, %v411_v5  ;;  %v482_v20 = vunpack.c.l.b16 %v473_v16 }
 0x552   :  { %v463_v13 = vmul.f32 %v3116_v61, %v458_v7  ;;  %3166 = vrsqrt.f32 %v415_v11  ;;  %vm443_vm12 = vweird.f32 %v415_v11 }
 0x554   :  { %v3474_v14 = vadd.f32 %v3117_v2, %v463_v13 }
 0x555   :  { %v408_v17 = vpop.xlane.xlu2 %407 }
 0x556   :  { %v412_v15 = vmul.f32 %v408_v17, %v3443_v22  ;;  %v474_v9 = vpack.c.bf16 %v3474_v14, %v3474_v14 }
 0x558   :  { %v3167_v10 = vpop.eup %3166  ;;  %v416_v18 = vadd.f32 1e-05, %v412_v15  ;;  %v483_v19 = vunpack.c.l.b16 %v474_v9 }
 0x559   :  { %v438_v21 = vmul.f32 %v3167_v10, %v415_v11  ;;  %vm444_vm11 = vweird.f32 %v3167_v10 }
 0x55a   :  { %3168 = vrsqrt.f32 %v416_v18  ;;  %v486_v27 = vpack.c.b16 %v483_v19, %v482_v20  ;;  %vm445_vm13 = vmor %vm443_vm12, %vm444_vm11  ;;  %vm453_vm15 = vweird.f32 %v416_v18 }
 0x55b   :  { %v439_v23 = vmul.f32 %v3167_v10, %v438_v21 }
 0x55c   :  { %2904 = vmatmul.msk.bf16.vlgmr.msrb.gmra.mxu1 %vm128_vm2, %v486_v27 }
 0x55d   :  { %v440_v24 = vmul.f32 0.5, %v439_v23  ;;  %v565_v49 = vpop.permute.xlu2 %564 }
 0x55f   :  { %v441_v25 = vsub.f32 1.5, %v440_v24 }
 0x560   :  { %v3169_v31 = vpop.eup %3168  ;;  %v567_v48 = vpop.permute.xlu0 %566 }
 0x561   :  { %v442_v26 = vmul.f32 %v3167_v10, %v441_v25  ;;  %v448_v28 = vmul.f32 %v3169_v31, %v416_v18  ;;  %vm454_vm14 = vweird.f32 %v3169_v31  ;;  %582 = vmatpush.bf16.msrb.mxu2 %v567_v48 }
 0x562   :  { %vm455_vm4 = vmor %vm453_vm15, %vm454_vm14 }
 0x563   :  { %v446_v29 = vsel %vm445_vm13, %v3167_v10, %v442_v26  ;;  %v449_v30 = vmul.f32 %v3169_v31, %v448_v28  ;;  %v3119_v26 = vld [vmem:[%s4050_s2 + $0x1c] ss:$0 sm:$0xff] }
 0x564   :  { %v459_v32 = vmul.f32 %v446_v29, %v3450_v35 }
 0x565   :  { %v450_v33 = vmul.f32 0.5, %v449_v30  ;;  %583 = vmatpush.bf16.msrb.mxu2 %v565_v49 }
 0x566   :  { %v464_v36 = vmul.f32 %v3116_v61, %v459_v32 }
 0x567   :  { %v451_v34 = vsub.f32 1.5, %v450_v33 }
 0x568   :  { %v3484_v41 = vadd.f32 %v3117_v2, %v464_v36 }
 0x569   :  { %v452_v37 = vmul.f32 %v3169_v31, %v451_v34 }
 0x56a   :  { %v475_v44 = vpack.c.bf16 %v3484_v41, %v3484_v41 }
 0x56b   :  { %v456_v38 = vsel %vm455_vm4, %v3169_v31, %v452_v37 }
 0x56c   :  { %v460_v39 = vmul.f32 %v456_v38, %v3456_v40  ;;  %v484_v45 = vunpack.c.l.b16 %v475_v44  ;;  %v3118_v40 = vld [vmem:[%s4050_s2 + $0x1b] ss:$0 sm:$0xff] }
 0x56e   :  { %v465_v42 = vmul.f32 %v3116_v61, %v460_v39 }
 0x570   :  { %v3486_v43 = vadd.f32 %v3117_v2, %v465_v42 }
 0x572   :  { %v476_v35 = vpack.c.bf16 %v3486_v43, %v3486_v43 }
 0x574   :  { %v485_v46 = vunpack.c.l.b16 %v476_v35 }
 0x576   :  { %v487_v47 = vpack.c.b16 %v485_v46, %v484_v45 }
 0x578   :  { %2905 = vmatmul.msk.bf16.gmra.mxu1 %vm128_vm2, %v487_v47 }
 0x5d9   :  { %v515_v50 = vpop.f32.mrf.mxu1 }
 0x5da   :  { %v516_v51 = vadd.f32 %v3118_v40, %v515_v50 }
 0x5dc   :  { %v529_v52 = vmin.f32 %v516_v51, 0.0  ;;  %vm525_vm5 = vcmp.gt.f32.partialorder %v516_v51, 0.0 }
 0x5de   :  { %v533_v53 = vmul.f32 1.442695, %v529_v52 }
 0x5e0   :  { %3170 = vpow2.f32 %v533_v53 }
 0x5e1   :  { %v517_v54 = vpop.f32.mrf.mxu1 }
 0x5e2   :  { %v518_v55 = vadd.f32 %v3118_v40, %v517_v54 }
 0x5e4   :  { %v530_v56 = vmin.f32 %v518_v55, 0.0  ;;  %vm526_vm6 = vcmp.gt.f32.partialorder %v518_v55, 0.0 }
 0x5e6   :  { %v3171_v57 = vpop.eup %3170  ;;  %v535_v58 = vmul.f32 1.442695, %v530_v56 }
 0x5e7   :  { %v2906_v59 = vadd.f32 -1.0, %v3171_v57 }
 0x5e8   :  { %3172 = vpow2.f32 %v535_v58 }
 0x5e9   :  { %v545_v60 = vsel %vm525_vm5, %v516_v51, %v2906_v59 }
 0x5ea   :  { %v549_v63 = vpack.c.bf16 %v545_v60, %v545_v60 }
 0x5ec   :  { %v558_v2 = vunpack.c.l.b16 %v549_v63 }
 0x5ee   :  { %v3173_v61 = vpop.eup %3172 }
 0x5ef   :  { %v2907_v62 = vadd.f32 -1.0, %v3173_v61 }
 0x5f1   :  { %v546_v0 = vsel %vm526_vm6, %v518_v55, %v2907_v62 }
 0x5f2   :  { %v550_v1 = vpack.c.bf16 %v546_v0, %v546_v0 }
 0x5f4   :  { %v559_v3 = vunpack.c.l.b16 %v550_v1  ;;  %v3526_v1 = vld [vmem:[#allocation2 + $0x28] sm:$0xff] }
 0x5f5   :  { %v520_v4 = vpop.f32.mrf.mxu1  ;;  %747 = vmatpush.bf16.msrb.mxu3 %v3526_v1 }
 0x5f6   :  { %v521_v5 = vadd.f32 %v3118_v40, %v520_v4  ;;  %v562_v6 = vpack.c.b16 %v559_v3, %v558_v2  ;;  %v3529_v3 = vld [vmem:[#allocation2 + $0x20] sm:$0xff] }
 0x5f8   :  { %v531_v7 = vmin.f32 %v521_v5, 0.0  ;;  %2910 = vmatmul.msk.bf16.vlgmr.msrb.gmra.mxu2 %vm128_vm2, %v562_v6  ;;  %vm527_vm7 = vcmp.gt.f32.partialorder %v521_v5, 0.0 }
 0x5f9   :  { %748 = vmatpush.bf16.msrb.mxu3 %v3529_v3 }
 0x5fa   :  { %v537_v11 = vmul.f32 1.442695, %v531_v7 }
 0x5fc   :  { %3174 = vpow2.f32 %v537_v11 }
 0x5fd   :  { %v522_v13 = vpop.f32.mrf.mxu1 }
 0x5fe   :  { %v523_v16 = vadd.f32 %v3118_v40, %v522_v13 }
 0x600   :  { %v532_v17 = vmin.f32 %v523_v16, 0.0  ;;  %vm528_vm8 = vcmp.gt.f32.partialorder %v523_v16, 0.0 }
 0x602   :  { %v3175_v15 = vpop.eup %3174  ;;  %v539_v9 = vmul.f32 1.442695, %v532_v17 }
 0x603   :  { %v2908_v10 = vadd.f32 -1.0, %v3175_v15 }
 0x604   :  { %3176 = vpow2.f32 %v539_v9 }
 0x605   :  { %v547_v18 = vsel %vm527_vm7, %v521_v5, %v2908_v10 }
 0x606   :  { %v551_v21 = vpack.c.bf16 %v547_v18, %v547_v18 }
 0x608   :  { %v560_v24 = vunpack.c.l.b16 %v551_v21 }
 0x60a   :  { %v3177_v20 = vpop.eup %3176 }
 0x60b   :  { %v2909_v19 = vadd.f32 -1.0, %v3177_v20 }
 0x60d   :  { %v548_v27 = vsel %vm528_vm8, %v523_v16, %v2909_v19  ;;  %v3120_v19 = vld [vmem:[%s4050_s2 + $0x1f] ss:$0 sm:$0xff] }
 0x60e   :  { %v552_v23 = vpack.c.bf16 %v548_v27, %v548_v27 }
 0x610   :  { %v561_v25 = vunpack.c.l.b16 %v552_v23 }
 0x612   :  { %v563_v31 = vpack.c.b16 %v561_v25, %v560_v24  ;;  %v3121_v24 = vld [vmem:[%s4050_s2 + $0x20] ss:$0 sm:$0xff] }
 0x614   :  { %2911 = vmatmul.msk.bf16.gmra.mxu2 %vm128_vm2, %v563_v31 }
 0x67b   :  { %v585_v28 = vpop.f32.mrf.mxu2 }
 0x67c   :  { %v586_v29 = vadd.f32 %v3119_v26, %v585_v28 }
 0x67e   :  { %v595_v30 = vadd.f32 %v586_v29, %v3472_v12 }
 0x680   :  { %v601_v32 = vsel %vm128_vm2, %v595_v30, 0.0 }
 0x681   :  { %602 = vadd.xlane.f32.xlu1 %v601_v32 }
 0x683   :  { %v587_v33 = vpop.f32.mrf.mxu2 }
 0x684   :  { %v588_v34 = vadd.f32 %v3119_v26, %v587_v33 }
 0x686   :  { %v596_v36 = vadd.f32 %v588_v34, %v3474_v14 }
 0x688   :  { %v604_v37 = vsel %vm128_vm2, %v596_v36, 0.0 }
 0x689   :  { %605 = vadd.xlane.f32.xlu1 %v604_v37 }
 0x697   :  { %v590_v38 = vpop.f32.mrf.mxu2 }
 0x698   :  { %v591_v39 = vadd.f32 %v3119_v26, %v590_v38 }
 0x69a   :  { %v597_v42 = vadd.f32 %v591_v39, %v3484_v41 }
 0x69c   :  { %v607_v44 = vsel %vm128_vm2, %v597_v42, 0.0 }
 0x69d   :  { %608 = vadd.xlane.f32.xlu0 %v607_v44 }
 0x69f   :  { %v592_v35 = vpop.f32.mrf.mxu2 }
 0x6a0   :  { %v593_v45 = vadd.f32 %v3119_v26, %v592_v35 }
 0x6a2   :  { %v598_v12 = vadd.f32 %v593_v45, %v3486_v43 }
 0x6a4   :  { %v610_v46 = vsel %vm128_vm2, %v598_v12, 0.0 }
 0x6a5   :  { %611 = vadd.xlane.f32.xlu1 %v610_v46 }
 0x6f4   :  { %v603_v47 = vpop.xlane.xlu1 %602 }
 0x6f5   :  { %v613_v14 = vmul.f32 %v603_v47, %v3443_v22 }
 0x6f7   :  { %v617_v48 = vsub.f32 %v595_v30, %v613_v14 }
 0x6f9   :  { %v621_v49 = vmul.f32 %v617_v48, %v617_v48 }
 0x6fb   :  { %v625_v40 = vsel %vm128_vm2, %v621_v49, 0.0 }
 0x6fc   :  { %626 = vadd.xlane.f32.xlu2 %v625_v40  ;;  %v606_v50 = vpop.xlane.xlu1 %605 }
 0x6fd   :  { %v614_v41 = vmul.f32 %v606_v50, %v3443_v22 }
 0x6ff   :  { %v618_v51 = vsub.f32 %v596_v36, %v614_v41 }
 0x701   :  { %v622_v52 = vmul.f32 %v618_v51, %v618_v51 }
 0x703   :  { %v628_v53 = vsel %vm128_vm2, %v622_v52, 0.0 }
 0x704   :  { %629 = vadd.xlane.f32.xlu1 %v628_v53 }
 0x710   :  { %v609_v43 = vpop.xlane.xlu0 %608 }
 0x711   :  { %v615_v54 = vmul.f32 %v609_v43, %v3443_v22 }
 0x713   :  { %v3514_v55 = vsub.f32 %v597_v42, %v615_v54 }
 0x715   :  { %v623_v56 = vmul.f32 %v3514_v55, %v3514_v55 }
 0x717   :  { %v631_v57 = vsel %vm128_vm2, %v623_v56, 0.0 }
 0x718   :  { %632 = vadd.xlane.f32.xlu1 %v631_v57  ;;  %v612_v58 = vpop.xlane.xlu1 %611 }
 0x719   :  { %v616_v59 = vmul.f32 %v612_v58, %v3443_v22 }
 0x71b   :  { %v3520_v60 = vsub.f32 %v598_v12, %v616_v59 }
 0x71d   :  { %v624_v61 = vmul.f32 %v3520_v60, %v3520_v60 }
 0x71f   :  { %v634_v62 = vsel %vm128_vm2, %v624_v61, 0.0 }
 0x720   :  { %635 = vadd.xlane.f32.xlu1 %v634_v62 }
 0x76f   :  { %v627_v63 = vpop.xlane.xlu2 %626 }
 0x770   :  { %v637_v0 = vmul.f32 %v627_v63, %v3443_v22 }
 0x772   :  { %v641_v2 = vadd.f32 1e-05, %v637_v0 }
 0x774   :  { %3178 = vrsqrt.f32 %v641_v2  ;;  %vm651_vm10 = vweird.f32 %v641_v2 }
 0x777   :  { %v630_v4 = vpop.xlane.xlu1 %629 }
 0x778   :  { %v638_v5 = vmul.f32 %v630_v4, %v3443_v22 }
 0x77a   :  { %v3179_v6 = vpop.eup %3178  ;;  %v642_v7 = vadd.f32 1e-05, %v638_v5 }
 0x77b   :  { %v646_v11 = vmul.f32 %v3179_v6, %v641_v2  ;;  %vm652_vm9 = vweird.f32 %v3179_v6 }
 0x77c   :  { %3180 = vrsqrt.f32 %v642_v7  ;;  %vm653_vm11 = vmor %vm651_vm10, %vm652_vm9  ;;  %vm661_vm13 = vweird.f32 %v642_v7 }
 0x77d   :  { %v647_v13 = vmul.f32 %v3179_v6, %v646_v11 }
 0x77f   :  { %v648_v16 = vmul.f32 0.5, %v647_v13 }
 0x781   :  { %v649_v17 = vsub.f32 1.5, %v648_v16 }
 0x782   :  { %v3181_v15 = vpop.eup %3180 }
 0x783   :  { %v650_v9 = vmul.f32 %v3179_v6, %v649_v17  ;;  %v656_v10 = vmul.f32 %v3181_v15, %v642_v7  ;;  %vm662_vm12 = vweird.f32 %v3181_v15 }
 0x784   :  { %vm663_vm14 = vmor %vm661_vm13, %vm662_vm12 }
 0x785   :  { %v654_v18 = vsel %vm653_vm11, %v3179_v6, %v650_v9  ;;  %v657_v20 = vmul.f32 %v3181_v15, %v656_v10 }
 0x786   :  { %v685_v21 = vmul.f32 %v654_v18, %v617_v48 }
 0x787   :  { %v658_v27 = vmul.f32 0.5, %v657_v20 }
 0x788   :  { %v690_v25 = vmul.f32 %v3120_v19, %v685_v21 }
 0x789   :  { %v659_v23 = vsub.f32 1.5, %v658_v27 }
 0x78a   :  { %v3540_v30 = vadd.f32 %v3121_v24, %v690_v25 }
 0x78b   :  { %v660_v31 = vmul.f32 %v3181_v15, %v659_v23  ;;  %v633_v26 = vpop.xlane.xlu1 %632 }
 0x78c   :  { %v639_v28 = vmul.f32 %v633_v26, %v3443_v22  ;;  %v709_v37 = vpack.c.bf16 %v3540_v30, %v3540_v30 }
 0x78d   :  { %v664_v29 = vsel %vm663_vm14, %v3181_v15, %v660_v31  ;;  %vm1479_vm14 = vcmask 1041408  }
 0x78e   :  { %v686_v32 = vmul.f32 %v664_v29, %v618_v51  ;;  %v643_v33 = vadd.f32 1e-05, %v639_v28  ;;  %v717_v45 = vunpack.c.l.b16 %v709_v37 }
 0x790   :  { %v691_v34 = vmul.f32 %v3120_v19, %v686_v32  ;;  %3182 = vrsqrt.f32 %v643_v33  ;;  %vm671_vm4 = vweird.f32 %v643_v33 }
 0x792   :  { %v3542_v36 = vadd.f32 %v3121_v24, %v691_v34 }
 0x793   :  { %v636_v38 = vpop.xlane.xlu1 %635 }
 0x794   :  { %v640_v39 = vmul.f32 %v636_v38, %v3443_v22  ;;  %v710_v42 = vpack.c.bf16 %v3542_v36, %v3542_v36 }
 0x796   :  { %v3183_v44 = vpop.eup %3182  ;;  %v644_v35 = vadd.f32 1e-05, %v640_v39  ;;  %v718_v12 = vunpack.c.l.b16 %v710_v42 }
 0x797   :  { %v666_v46 = vmul.f32 %v3183_v44, %v643_v33  ;;  %vm672_vm15 = vweird.f32 %v3183_v44 }
 0x798   :  { %3184 = vrsqrt.f32 %v644_v35  ;;  %v721_v47 = vpack.c.b16 %v718_v12, %v717_v45  ;;  %vm673_vm5 = vmor %vm671_vm4, %vm672_vm15  ;;  %vm681_vm7 = vweird.f32 %v644_v35 }
 0x799   :  { %v667_v14 = vmul.f32 %v3183_v44, %v666_v46 }
 0x79a   :  { %2920 = vmatmul.msk.bf16.vlgmr.msrb.gmra.mxu3 %vm128_vm2, %v721_v47 }
 0x79b   :  { %v668_v48 = vmul.f32 0.5, %v667_v14 }
 0x79d   :  { %v669_v49 = vsub.f32 1.5, %v668_v48 }
 0x79e   :  { %v3185_v40 = vpop.eup %3184 }
 0x79f   :  { %v670_v50 = vmul.f32 %v3183_v44, %v669_v49  ;;  %v676_v41 = vmul.f32 %v3185_v40, %v644_v35  ;;  %vm682_vm6 = vweird.f32 %v3185_v40 }
 0x7a0   :  { %vm683_vm8 = vmor %vm681_vm7, %vm682_vm6 }
 0x7a1   :  { %v674_v51 = vsel %vm673_vm5, %v3183_v44, %v670_v50  ;;  %v677_v52 = vmul.f32 %v3185_v40, %v676_v41 }
 0x7a2   :  { %v687_v53 = vmul.f32 %v674_v51, %v3514_v55 }
 0x7a3   :  { %v678_v43 = vmul.f32 0.5, %v677_v52 }
 0x7a4   :  { %v692_v56 = vmul.f32 %v3120_v19, %v687_v53 }
 0x7a5   :  { %v679_v54 = vsub.f32 1.5, %v678_v43 }
 0x7a6   :  { %v3552_v61 = vadd.f32 %v3121_v24, %v692_v56 }
 0x7a7   :  { %v680_v57 = vmul.f32 %v3185_v40, %v679_v54 }
 0x7a8   :  { %v711_v0 = vpack.c.bf16 %v3552_v61, %v3552_v61 }
 0x7a9   :  { %v684_v58 = vsel %vm683_vm8, %v3185_v40, %v680_v57 }
 0x7aa   :  { %v688_v59 = vmul.f32 %v684_v58, %v3520_v60  ;;  %v719_v2 = vunpack.c.l.b16 %v711_v0 }
 0x7ac   :  { %v693_v62 = vmul.f32 %v3120_v19, %v688_v59 }
 0x7ae   :  { %v3554_v63 = vadd.f32 %v3121_v24, %v693_v62 }
 0x7b0   :  { %v712_v55 = vpack.c.bf16 %v3554_v63, %v3554_v63 }
 0x7b2   :  { %v720_v4 = vunpack.c.l.b16 %v712_v55 }
 0x7b4   :  { %v722_v5 = vpack.c.b16 %v720_v4, %v719_v2 }
 0x7b6   :  { %2921 = vmatmul.msk.bf16.gmra.mxu3 %vm128_vm2, %v722_v5 }
 0x81d   :  { %v750_v6 = vpop.f32.mrf.mxu3 }
 0x81e   :  { %v760_v7 = vpack.c.bf16 %v750_v6, %v750_v6 }
 0x820   :  { %v766_v13 = vunpack.c.l.b16 %v760_v7 }
 0x825   :  { %v752_v11 = vpop.f32.mrf.mxu3 }
 0x826   :  { %v761_v60 = vpack.c.bf16 %v752_v11, %v752_v11 }
 0x828   :  { %v767_v16 = vunpack.c.l.b16 %v761_v60 }
 0x82a   :  { %v768_v17 = vpack.c.b16 %v767_v16, %v766_v13 }
 0x82c   :  { %769 = vrot.lane.b32.xlu1 %v768_v17, %s3319_s12 }
 0x839   :  { %v755_v15 = vpop.f32.mrf.mxu3 }
 0x83a   :  { %v762_v9 = vpack.c.bf16 %v755_v15, %v755_v15 }
 0x83c   :  { %v793_v20 = vunpack.c.l.b16 %v762_v9 }
 0x841   :  { %v757_v10 = vpop.f32.mrf.mxu3 }
 0x842   :  { %v763_v18 = vpack.c.bf16 %v757_v10, %v757_v10 }
 0x844   :  { %v794_v19 = vunpack.c.l.b16 %v763_v18 }
 0x846   :  { %v795_v21 = vpack.c.b16 %v794_v19, %v793_v20 }
 0x848   :  { %796 = vrot.lane.b32.xlu0 %v795_v21, %s3319_s12 }
 0x89e   :  { %v770_v27 = vpop.permute.xlu1 %769 }
 0x89f   :  { %v775_v23 = vsel %vm165_vm3, %v770_v27, 0 }
 0x8a0   :  { %784 = vmatpush.bf16.xpose.msra.mxu0 %v775_v23 }
 0x8a7   :  { %2922 = vmatmul.msk.bf16.vlgmr.msra.gmra.mxu0 %vm165_vm3, %v768_v17 }
 0x8ba   :  { %v797_v24 = vpop.permute.xlu0 %796 }
 0x8bb   :  { %v802_v25 = vsel %vm165_vm3, %v797_v24, 0 }
 0x8bc   :  { %811 = vmatpush.bf16.xpose.msra.mxu1 %v802_v25 }
 0x8c3   :  { %2923 = vmatmul.msk.bf16.vlgmr.msra.gmra.mxu1 %vm165_vm3, %v795_v21 }
 0x924   :  { %v786_v31 = vpop.f32.mrf.mxu0 }
 0x925   :  { %v818_v26 = vmul.f32 0.25, %v786_v31 }
 0x927   :  { %v822_v28 = vsel %vm165_vm3, %v818_v26, -inf }
 0x928   :  { %823 = vmax.xlane.f32.xlu2 %v822_v28 }
 0x92c   :  { %v788_v29 = vpop.f32.mrf.mxu0 }
 0x92d   :  { %v819_v32 = vmul.f32 0.25, %v788_v29 }
 0x92f   :  { %v825_v33 = vsel %vm165_vm3, %v819_v32, -inf }
 0x930   :  { %826 = vmax.xlane.f32.xlu2 %v825_v33 }
 0x940   :  { %v813_v34 = vpop.f32.mrf.mxu1 }
 0x941   :  { %v820_v37 = vmul.f32 0.25, %v813_v34  ;;  %v1297_v34 = vld [vmem:[%s4050_s2 + $0x5] sm:$0xf] }
 0x943   :  { %v828_v38 = vsel %vm165_vm3, %v820_v37, -inf }
 0x944   :  { %829 = vmax.xlane.f32.xlu0 %v828_v38 }
 0x948   :  { %v815_v39 = vpop.f32.mrf.mxu1  ;;  %875 = vrot.lane.b32.xlu2 %v768_v17, %s3320_s13 }
 0x949   :  { %v821_v42 = vmul.f32 0.25, %v815_v39 }
 0x94b   :  { %v831_v44 = vsel %vm165_vm3, %v821_v42, -inf }
 0x94c   :  { %832 = vmax.xlane.f32.xlu1 %v831_v44 }
 0x99b   :  { %v824_v35 = vpop.xlane.xlu2 %823 }
 0x99c   :  { %v834_v45 = vsub.f32 %v818_v26, %v824_v35 }
 0x99e   :  { %v838_v12 = vmul.f32 1.442695, %v834_v45 }
 0x9a0   :  { %3186 = vpow2.f32 %v838_v12 }
 0x9a3   :  { %v827_v46 = vpop.xlane.xlu2 %826 }
 0x9a4   :  { %v835_v47 = vsub.f32 %v819_v32, %v827_v46 }
 0x9a6   :  { %v3187_v14 = vpop.eup %3186  ;;  %v840_v48 = vmul.f32 1.442695, %v835_v47 }
 0x9a7   :  { %v846_v49 = vsel %vm165_vm3, %v3187_v14, 0.0 }
 0x9a8   :  { %3188 = vpow2.f32 %v840_v48  ;;  %847 = vadd.xlane.f32.xlu2 %v846_v49 }
 0x9ab   :  { %v876_v40 = vpop.permute.xlu2 %875 }
 0x9ac   :  { %888 = vmatpush.bf16.msra.mxu2 %v876_v40 }
 0x9ae   :  { %v3189_v50 = vpop.eup %3188 }
 0x9af   :  { %v849_v41 = vsel %vm165_vm3, %v3189_v50, 0.0 }
 0x9b0   :  { %850 = vadd.xlane.f32.xlu2 %v849_v41  ;;  %v3598_v41 = vld [vmem:[#allocation2 + $0x40] sm:$0xff] }
 0x9b7   :  { %v830_v51 = vpop.xlane.xlu0 %829 }
 0x9b8   :  { %v836_v52 = vsub.f32 %v820_v37, %v830_v51 }
 0x9ba   :  { %v842_v53 = vmul.f32 1.442695, %v836_v52 }
 0x9bc   :  { %3190 = vpow2.f32 %v842_v53 }
 0x9bf   :  { %v833_v43 = vpop.xlane.xlu1 %832 }
 0x9c0   :  { %v837_v54 = vsub.f32 %v821_v42, %v833_v43  ;;  %v1314_v43 = vld.sshfl [vmem:[#allocation1] sm:$0xff pattern:$0x75316420] }
 0x9c2   :  { %v3191_v56 = vpop.eup %3190  ;;  %v844_v57 = vmul.f32 1.442695, %v837_v54 }
 0x9c3   :  { %v852_v58 = vsel %vm165_vm3, %v3191_v56, 0.0 }
 0x9c4   :  { %3192 = vpow2.f32 %v844_v57  ;;  %853 = vadd.xlane.f32.xlu0 %v852_v58 }
 0x9c8   :  { %900 = vrot.lane.b32.xlu2 %v795_v21, %s3320_s13 }
 0x9ca   :  { %v3193_v59 = vpop.eup %3192 }
 0x9cb   :  { %v855_v62 = vsel %vm165_vm3, %v3193_v59, 0.0 }
 0x9cc   :  { %856 = vadd.xlane.f32.xlu1 %v855_v62 }
 0x9d8   :  { %936 = vrot.lane.b32.xlu0 %v3526_v1, %s3317_s20 }
 0x9e5   :  { %934 = vrot.lane.b32.xlu1 %v3529_v3, %s3317_s20 }
 0xa1b   :  { %v848_v0 = vpop.xlane.xlu2 %847 }
 0xa1c   :  { %3194 = vrcp.f32 %v848_v0 }
 0xa22   :  { %v3195_v2 = vpop.eup %3194 }
 0xa23   :  { %v851_v55 = vpop.xlane.xlu2 %850  ;;  %v862_v4 = vmul.f32 %v3195_v2, %v3187_v14 }
 0xa24   :  { %3196 = vrcp.f32 %v851_v55 }
 0xa25   :  { %v866_v6 = vpack.c.bf16 %v862_v4, %v862_v4 }
 0xa27   :  { %v872_v13 = vunpack.c.l.b16 %v866_v6 }
 0xa2a   :  { %v3197_v5 = vpop.eup %3196 }
 0xa2b   :  { %v863_v7 = vmul.f32 %v3197_v5, %v3189_v50  ;;  %v901_v11 = vpop.permute.xlu2 %900  ;;  %v3595_v50 = vld [vmem:[#allocation2 + $0x48] sm:$0xff] }
 0xa2c   :  { %913 = vmatpush.bf16.msra.mxu3 %v901_v11 }
 0xa2d   :  { %v867_v60 = vpack.c.bf16 %v863_v7, %v863_v7 }
 0xa2f   :  { %v873_v16 = vunpack.c.l.b16 %v867_v60 }
 0xa30   :  { %1387 = vmatpush.bf16.msrb.mxu3 %v3595_v50 }
 0xa31   :  { %v874_v17 = vpack.c.b16 %v873_v16, %v872_v13 }
 0xa33   :  { %2924 = vmatmul.msk.bf16.vlgmr.msra.gmra.mxu2 %vm165_vm3, %v874_v17 }
 0xa34   :  { %1388 = vmatpush.bf16.msrb.mxu3 %v3598_v41 }
 0xa37   :  { %v854_v1 = vpop.xlane.xlu0 %853 }
 0xa38   :  { %3198 = vrcp.f32 %v854_v1 }
 0xa3e   :  { %v3199_v15 = vpop.eup %3198 }
 0xa3f   :  { %v857_v3 = vpop.xlane.xlu1 %856  ;;  %v864_v9 = vmul.f32 %v3199_v15, %v3191_v56 }
 0xa40   :  { %3200 = vrcp.f32 %v857_v3 }
 0xa41   :  { %v868_v18 = vpack.c.bf16 %v864_v9, %v864_v9 }
 0xa43   :  { %v897_v21 = vunpack.c.l.b16 %v868_v18 }
 0xa46   :  { %v3201_v10 = vpop.eup %3200 }
 0xa47   :  { %v865_v20 = vmul.f32 %v3201_v10, %v3193_v59 }
 0xa49   :  { %v869_v19 = vpack.c.bf16 %v865_v20, %v865_v20 }
 0xa4a   :  { %v937_v24 = vpop.permute.xlu0 %936 }
 0xa4b   :  { %v898_v27 = vunpack.c.l.b16 %v869_v19  ;;  %952 = vmatpush.bf16.msrb.mxu0 %v937_v24 }
 0xa4d   :  { %v899_v23 = vpack.c.b16 %v898_v27, %v897_v21 }
 0xa4f   :  { %2925 = vmatmul.msk.bf16.vlgmr.msra.gmra.mxu3 %vm165_vm3, %v899_v23 }
 0xa57   :  { %v935_v25 = vpop.permute.xlu1 %934 }
 0xa58   :  { %953 = vmatpush.bf16.msrb.mxu0 %v935_v25 }
 0xa5c   :  { %2944 = vmatpush.msk.msra.mxu0 %vm54_vm0, %v1297_v34  ;;  %v3070_v34 = vld [vmem:[#allocation2 + $0x30] sm:$0xff] }
 0xab6   :  { %v890_v31 = vpop.f32.mrf.mxu2 }
 0xab7   :  { %v920_v26 = vpack.c.bf16 %v890_v31, %v890_v31 }
 0xab9   :  { %v928_v32 = vunpack.c.l.b16 %v920_v26 }
 0xabe   :  { %v892_v28 = vpop.f32.mrf.mxu2 }
 0xabf   :  { %v921_v29 = vpack.c.bf16 %v892_v28, %v892_v28 }
 0xac1   :  { %v929_v33 = vunpack.c.l.b16 %v921_v29 }
 0xac3   :  { %v932_v37 = vpack.c.b16 %v929_v33, %v928_v32  ;;  %v3643_v32 = vld [vmem:[#allocation2 + $0x38] sm:$0xff] }
 0xac4   :  { %1110 = vmatpush.bf16.msrb.mxu1 %v3643_v32 }
 0xac5   :  { %2926 = vmatmul.msk.bf16.vlgmr.msrb.gmra.mxu0 %vm128_vm2, %v932_v37 }
 0xac8   :  { %1111 = vmatpush.bf16.msrb.mxu1 %v3070_v34 }
 0xad2   :  { %v915_v38 = vpop.f32.mrf.mxu3 }
 0xad3   :  { %v922_v39 = vpack.c.bf16 %v915_v38, %v915_v38 }
 0xad5   :  { %v930_v35 = vunpack.c.l.b16 %v922_v39 }
 0xada   :  { %v917_v42 = vpop.f32.mrf.mxu3 }
 0xadb   :  { %v923_v44 = vpack.c.bf16 %v917_v42, %v917_v42 }
 0xadd   :  { %v931_v45 = vunpack.c.l.b16 %v923_v44 }
 0xadf   :  { %v933_v12 = vpack.c.b16 %v931_v45, %v930_v35 }
 0xae1   :  { %2927 = vmatmul.msk.bf16.gmra.mxu0 %vm128_vm2, %v933_v12 }
 0xaf1   :  { %2945 = vmatmul.msk.f32.vlgmr.msra.gmra.mxu0 %vm41_vm1, %v3374_v8 }
 0xb42   :  { %v955_v46 = vpop.f32.mrf.mxu0 }
 0xb43   :  { %v965_v47 = vadd.f32 %v955_v46, %v3540_v30 }
 0xb45   :  { %v971_v14 = vsel %vm128_vm2, %v965_v47, 0.0 }
 0xb46   :  { %972 = vadd.xlane.f32.xlu2 %v971_v14 }
 0xb4a   :  { %v957_v48 = vpop.f32.mrf.mxu0 }
 0xb4b   :  { %v966_v49 = vadd.f32 %v957_v48, %v3542_v36 }
 0xb4d   :  { %v974_v40 = vsel %vm128_vm2, %v966_v49, 0.0 }
 0xb4e   :  { %975 = vadd.xlane.f32.xlu0 %v974_v40  ;;  %v3651_v40 = vld [vmem:[%s4050_s2 + $0x23] ss:$0 sm:$0xff] }
 0xb5e   :  { %v960_v8 = vpop.f32.mrf.mxu0 }
 0xb5f   :  { %v967_v30 = vadd.f32 %v960_v8, %v3552_v61 }
 0xb61   :  { %v977_v51 = vsel %vm128_vm2, %v967_v30, 0.0 }
 0xb62   :  { %978 = vadd.xlane.f32.xlu1 %v977_v51 }
 0xb66   :  { %v962_v52 = vpop.f32.mrf.mxu0 }
 0xb67   :  { %v968_v36 = vadd.f32 %v962_v52, %v3554_v63  ;;  %v3656_v52 = vld [vmem:[%s4050_s2 + $0x24] ss:$0 sm:$0xff] }
 0xb69   :  { %v980_v53 = vsel %vm128_vm2, %v968_v36, 0.0 }
 0xb6a   :  { %981 = vadd.xlane.f32.xlu2 %v980_v53 }
 0xb6e   :  { %v1338_v54 = vpop.f32.mrf.mxu0 }
 0xb6f   :  { %v3605_v56 = vadd.f32 %v1338_v54, %v1314_v43 }
 0xb71   :  { %v1342_v57 = vrot.slane %v3605_v56, 4  ;;  %v1359_v58 = vpack.c.bf16 %v3605_v56, %v3605_v56 }
 0xb73   :  { %v1360_v59 = vpack.c.bf16 %v1342_v57, %v1342_v57  ;;  %1362 = vst [vmem:[#allocation1] ss:$4 sm:$0xff] %v1359_v58 }
 0xb75   :  { %1365 = vst [vmem:[#allocation1 + $0x1] ss:$4 sm:$0xff] %v1360_v59 }
 0xb7c   :  { %v1366_v61 = vld.sshfl [vmem:[#allocation1] sm:$0xff pattern:$0x73625140] }
 0xb7d   :  { %2954 = vmatmul.msk.bf16.vlgmr.msrb.gmra.mxu3 %vm128_vm2, %v1366_v61 }
 0xbb9   :  { %v973_v62 = vpop.xlane.xlu2 %972 }
 0xbba   :  { %v983_v63 = vmul.f32 %v973_v62, %v3443_v22 }
 0xbbc   :  { %v987_v0 = vsub.f32 %v965_v47, %v983_v63 }
 0xbbe   :  { %v991_v55 = vmul.f32 %v987_v0, %v987_v0 }
 0xbc0   :  { %v995_v2 = vsel %vm128_vm2, %v991_v55, 0.0 }
 0xbc1   :  { %v976_v4 = vpop.xlane.xlu0 %975  ;;  %996 = vadd.xlane.f32.xlu1 %v995_v2 }
 0xbc2   :  { %v984_v5 = vmul.f32 %v976_v4, %v3443_v22 }
 0xbc4   :  { %v3614_v6 = vsub.f32 %v966_v49, %v984_v5 }
 0xbc6   :  { %v992_v7 = vmul.f32 %v3614_v6, %v3614_v6 }
 0xbc8   :  { %v998_v11 = vsel %vm128_vm2, %v992_v7, 0.0 }
 0xbc9   :  { %999 = vadd.xlane.f32.xlu1 %v998_v11 }
 0xbd5   :  { %v979_v18 = vpop.xlane.xlu1 %978 }
 0xbd6   :  { %v985_v20 = vmul.f32 %v979_v18, %v3443_v22 }
 0xbd8   :  { %v3632_v27 = vsub.f32 %v967_v30, %v985_v20 }
 0xbda   :  { %v993_v24 = vmul.f32 %v3632_v27, %v3632_v27 }
 0xbdc   :  { %v1001_v31 = vsel %vm128_vm2, %v993_v24, 0.0 }
 0xbdd   :  { %v982_v19 = vpop.xlane.xlu2 %981 }
 0xbde   :  { %v986_v21 = vmul.f32 %v982_v19, %v3443_v22 }
 0xbe0   :  { %v3634_v23 = vsub.f32 %v968_v36, %v986_v21 }
 0xbe2   :  { %v994_v25 = vmul.f32 %v3634_v23, %v3634_v23 }
 0xbe4   :  { %v1004_v26 = vsel %vm128_vm2, %v994_v25, 0.0 }
 0xc00   :  { %v1390_v60 = vpop.f32.mrf.mxu3 }
 0xc01   :  { %v1395_v13 = vrot.slane %v1390_v60, 4  ;;  %v3619_v16 = vpack.c.bf16 %v1390_v60, %v1390_v60 }
 0xc03   :  { %v3621_v17 = vpack.c.bf16 %v1395_v13, %v1395_v13  ;;  %v1400_v1 = vunpack.c.l.b16 %v3619_v16 }
 0xc05   :  { %v1424_v3 = vunpack.c.l.b16 %v3621_v17  ;;  %v1401_v15 = vpack.c.b16 %v1400_v1, %v1400_v1 }
 0xc07   :  { %1402 = vrot.lane.b32.xlu2 %v1401_v15, %s3319_s12  ;;  %v3626_v9 = vpack.c.b16 %v1424_v3, %v1424_v3 }
 0xc08   :  { %v1392_v10 = vpop.f32.mrf.mxu3 }
 0xc09   :  { %1426 = vrot.lane.b32.xlu0 %v3626_v9, %s3319_s12 }
 0xc30   :  { %1002 = vadd.xlane.f32.xlu2 %v1001_v31 }
 0xc33   :  { %1005 = vadd.xlane.f32.xlu0 %v1004_v26 }
 0xc34   :  { %v997_v28 = vpop.xlane.xlu1 %996 }
 0xc35   :  { %v1007_v29 = vmul.f32 %v997_v28, %v3443_v22 }
 0xc37   :  { %v1011_v33 = vadd.f32 1e-05, %v1007_v29 }
 0xc39   :  { %3202 = vrsqrt.f32 %v1011_v33  ;;  %vm1021_vm9 = vweird.f32 %v1011_v33 }
 0xc3c   :  { %v1000_v37 = vpop.xlane.xlu1 %999 }
 0xc3d   :  { %v1008_v38 = vmul.f32 %v1000_v37, %v3443_v22 }
 0xc3f   :  { %v3203_v39 = vpop.eup %3202  ;;  %v1012_v42 = vadd.f32 1e-05, %v1008_v38 }
 0xc40   :  { %v1016_v44 = vmul.f32 %v3203_v39, %v1011_v33  ;;  %vm1022_vm0 = vweird.f32 %v3203_v39 }
 0xc41   :  { %3204 = vrsqrt.f32 %v1012_v42  ;;  %vm1023_vm10 = vmor %vm1021_vm9, %vm1022_vm0  ;;  %vm1031_vm12 = vweird.f32 %v1012_v42  ;;  %vm1449_vm0 = vcmask 27648  }
 0xc42   :  { %v1017_v35 = vmul.f32 %v3203_v39, %v1016_v44 }
 0xc44   :  { %v1018_v45 = vmul.f32 0.5, %v1017_v35 }
 0xc46   :  { %v1019_v12 = vsub.f32 1.5, %v1018_v45 }
 0xc47   :  { %v3205_v46 = vpop.eup %3204 }
 0xc48   :  { %v1020_v47 = vmul.f32 %v3203_v39, %v1019_v12  ;;  %v1026_v14 = vmul.f32 %v3205_v46, %v1012_v42  ;;  %1162 = vrot.lane.b32.xlu2 %v3070_v34, %s3320_s13  ;;  %vm1032_vm11 = vweird.f32 %v3205_v46 }
 0xc49   :  { %vm1033_vm13 = vmor %vm1031_vm12, %vm1032_vm11 }
 0xc4a   :  { %v1024_v48 = vsel %vm1023_vm10, %v3203_v39, %v1020_v47  ;;  %v1027_v49 = vmul.f32 %v3205_v46, %v1026_v14 }
 0xc4b   :  { %v1055_v8 = vmul.f32 %v1024_v48, %v987_v0 }
 0xc4c   :  { %v1028_v30 = vmul.f32 0.5, %v1027_v49 }
 0xc4d   :  { %v1060_v36 = vmul.f32 %v3651_v40, %v1055_v8 }
 0xc4e   :  { %v1029_v51 = vsub.f32 1.5, %v1028_v30 }
 0xc4f   :  { %v3661_v54 = vadd.f32 %v3656_v52, %v1060_v36 }
 0xc50   :  { %v1030_v53 = vmul.f32 %v3205_v46, %v1029_v51  ;;  %1474 = vrot.lane.b32.xlu2 %v1401_v15, %s3320_s13 }
 0xc51   :  { %v1071_v61 = vpack.c.bf16 %v3661_v54, %v3661_v54 }
 0xc52   :  { %v1034_v43 = vsel %vm1033_vm13, %v3205_v46, %v1030_v53  ;;  %v3124_v53 = vld [vmem:[%s4050_s2 + $0x21] ss:$0 sm:$0xff]  ;;  %vm1551_vm13 = vcmask 257024  }
 0xc53   :  { %v1056_v57 = vmul.f32 %v1034_v43, %v3614_v6  ;;  %v1080_v63 = vunpack.c.l.b16 %v1071_v61 }
 0xc55   :  { %v1061_v58 = vmul.f32 %v3651_v40, %v1056_v57 }
 0xc57   :  { %v3666_v59 = vadd.f32 %v3656_v52, %v1061_v58 }
 0xc58   :  { %1527 = vrot.lane.b32.xlu2 %v3595_v50, %s3317_s20 }
 0xc59   :  { %v1072_v62 = vpack.c.bf16 %v3666_v59, %v3666_v59 }
 0xc5b   :  { %v1081_v0 = vunpack.c.l.b16 %v1072_v62 }
 0xc5d   :  { %v1084_v55 = vpack.c.b16 %v1081_v0, %v1080_v63 }
 0xc5f   :  { %2936 = vmatmul.msk.bf16.vlgmr.msrb.gmra.mxu1 %vm128_vm2, %v1084_v55 }
 0xc61   :  { %v1403_v2 = vpop.permute.xlu2 %1402 }
 0xc62   :  { %v1408_v4 = vsel %vm165_vm3, %v1403_v2, 0 }
 0xc63   :  { %1417 = vmatpush.bf16.xpose.msra.mxu3 %v1408_v4 }
 0xc6a   :  { %2955 = vmatmul.msk.bf16.vlgmr.msra.gmra.mxu3 %vm165_vm3, %v3619_v16 }
 0xc7b   :  { %v1427_v5 = vpop.permute.xlu0 %1426 }
 0xc7c   :  { %v1432_v6 = vsel %vm165_vm3, %v1427_v5, 0 }
 0xc7d   :  { %1441 = vmatpush.bf16.xpose.msrb.mxu0 %v1432_v6 }
 0xc84   :  { %2956 = vmatmul.msk.bf16.vlgmr.msrb.gmra.mxu0 %vm165_vm3, %v3621_v17 }
 0xca3   :  { %v1003_v50 = vpop.xlane.xlu2 %1002 }
 0xca4   :  { %v1009_v7 = vmul.f32 %v1003_v50, %v3443_v22 }
 0xca6   :  { %v1013_v11 = vadd.f32 1e-05, %v1009_v7  ;;  %v1006_v60 = vpop.xlane.xlu0 %1005 }
 0xca7   :  { %v1010_v13 = vmul.f32 %v1006_v60, %v3443_v22 }
 0xca8   :  { %3206 = vrsqrt.f32 %v1013_v11  ;;  %vm1041_vm4 = vweird.f32 %v1013_v11 }
 0xca9   :  { %v1014_v1 = vadd.f32 1e-05, %v1010_v13 }
 0xcab   :  { %3208 = vrsqrt.f32 %v1014_v1  ;;  %v3683_v3 = vpop.permute.xlu2 %1162  ;;  %vm1051_vm7 = vweird.f32 %v1014_v1 }
 0xcae   :  { %v3207_v16 = vpop.eup %3206 }
 0xcaf   :  { %v1036_v15 = vmul.f32 %v3207_v16, %v1013_v11  ;;  %vm1042_vm15 = vweird.f32 %v3207_v16 }
 0xcb0   :  { %vm1043_vm5 = vmor %vm1041_vm4, %vm1042_vm15 }
 0xcb1   :  { %v3209_v10 = vpop.eup %3208  ;;  %v1037_v18 = vmul.f32 %v3207_v16, %v1036_v15 }
 0xcb2   :  { %v1046_v20 = vmul.f32 %v3209_v10, %v1014_v1  ;;  %vm1052_vm6 = vweird.f32 %v3209_v10 }
 0xcb3   :  { %v1038_v19 = vmul.f32 0.5, %v1037_v18  ;;  %v1475_v17 = vpop.permute.xlu2 %1474  ;;  %vm1053_vm8 = vmor %vm1051_vm7, %vm1052_vm6 }
 0xcb4   :  { %v1047_v21 = vmul.f32 %v3209_v10, %v1046_v20  ;;  %v1481_v24 = vsel %vm1479_vm14, %v1475_v17, 0 }
 0xcb5   :  { %v1039_v25 = vsub.f32 1.5, %v1038_v19  ;;  %1490 = vmatpush.bf16.msra.mxu1 %v1481_v24 }
 0xcb6   :  { %v1048_v31 = vmul.f32 0.5, %v1047_v21 }
 0xcb7   :  { %v1040_v26 = vmul.f32 %v3207_v16, %v1039_v25 }
 0xcb8   :  { %v1049_v28 = vsub.f32 1.5, %v1048_v31 }
 0xcb9   :  { %v1044_v29 = vsel %vm1043_vm5, %v3207_v16, %v1040_v26 }
 0xcba   :  { %v1057_v33 = vmul.f32 %v1044_v29, %v3632_v27  ;;  %v1050_v34 = vmul.f32 %v3209_v10, %v1049_v28 }
 0xcbc   :  { %v1054_v37 = vsel %vm1053_vm8, %v3209_v10, %v1050_v34  ;;  %v1062_v38 = vmul.f32 %v3651_v40, %v1057_v33 }
 0xcbd   :  { %v1058_v39 = vmul.f32 %v1054_v37, %v3634_v23 }
 0xcbe   :  { %v3690_v42 = vadd.f32 %v3656_v52, %v1062_v38 }
 0xcbf   :  { %v1063_v44 = vmul.f32 %v3651_v40, %v1058_v39 }
 0xcc0   :  { %v1073_v45 = vpack.c.bf16 %v3690_v42, %v3690_v42 }
 0xcc1   :  { %v3694_v35 = vadd.f32 %v3656_v52, %v1063_v44 }
 0xcc2   :  { %v1082_v12 = vunpack.c.l.b16 %v1073_v45 }
 0xcc3   :  { %v1074_v27 = vpack.c.bf16 %v3694_v35, %v3694_v35 }
 0xcc5   :  { %v1083_v46 = vunpack.c.l.b16 %v1074_v27 }
 0xcc7   :  { %v1085_v47 = vpack.c.b16 %v1083_v46, %v1082_v12 }
 0xcc9   :  { %2937 = vmatmul.msk.bf16.gmra.mxu1 %vm128_vm2, %v1085_v47 }
 0xcdc   :  { %v1113_v52 = vpop.f32.mrf.mxu1 }
 0xcdd   :  { %v1114_v62 = vadd.f32 %v3124_v53, %v1113_v52 }
 0xcdf   :  { %v1127_v55 = vmin.f32 %v1114_v62, 0.0  ;;  %vm1123_vm10 = vcmp.gt.f32.partialorder %v1114_v62, 0.0 }
 0xce1   :  { %v1131_v50 = vmul.f32 1.442695, %v1127_v55 }
 0xce4   :  { %v1115_v36 = vpop.f32.mrf.mxu1 }
 0xce5   :  { %v1116_v58 = vadd.f32 %v3124_v53, %v1115_v36 }
 0xce7   :  { %v1128_v0 = vmin.f32 %v1116_v58, 0.0  ;;  %vm1124_vm9 = vcmp.gt.f32.partialorder %v1116_v58, 0.0 }
 0xce9   :  { %v1133_v5 = vmul.f32 1.442695, %v1128_v0 }
 0xced   :  { %v1419_v23 = vpop.f32.mrf.mxu3 }
 0xcee   :  { %v1447_v8 = vmul.f32 0.25, %v1419_v23 }
 0xcf0   :  { %v1450_v51 = vsel %vm1449_vm0, %v1447_v8, -inf }
 0xcf5   :  { %v1421_v14 = vpop.f32.mrf.mxu3 }
 0xd01   :  { %v1443_v48 = vpop.f32.mrf.mxu0 }
 0xd02   :  { %v1448_v49 = vmul.f32 0.25, %v1443_v48 }
 0xd04   :  { %v1453_v40 = vsel %vm1449_vm0, %v1448_v49, -inf }
 0xd05   :  { %1454 = vmax.xlane.f32.xlu1 %v1453_v40 }
 0xd09   :  { %v1445_v30 = vpop.f32.mrf.mxu0 }
 0xd0d   :  { %1451 = vmax.xlane.f32.xlu1 %v1450_v51 }
 0xd26   :  { %1164 = vrot.lane.b32.xlu1 %v3643_v32, %s3320_s13 }
 0xd46   :  { %v1118_v63 = vpop.f32.mrf.mxu1 }
 0xd47   :  { %v1119_v16 = vadd.f32 %v3124_v53, %v1118_v63 }
 0xd49   :  { %v1129_v19 = vmin.f32 %v1119_v16, 0.0  ;;  %vm1125_vm12 = vcmp.gt.f32.partialorder %v1119_v16, 0.0 }
 0xd4b   :  { %v1135_v25 = vmul.f32 1.442695, %v1129_v19 }
 0xd4e   :  { %v1120_v11 = vpop.f32.mrf.mxu1 }
 0xd4f   :  { %v1121_v60 = vadd.f32 %v3124_v53, %v1120_v11  ;;  %v3125_v53 = vld [vmem:[%s4050_s2 + $0x22] ss:$0 sm:$0xff]  ;;  %v1528_v11 = vpop.permute.xlu2 %1527 }
 0xd50   :  { %1539 = vmatpush.bf16.msrb.mxu3 %v1528_v11 }
 0xd51   :  { %v1130_v18 = vmin.f32 %v1121_v60, 0.0  ;;  %vm1126_vm11 = vcmp.gt.f32.partialorder %v1121_v60, 0.0 }
 0xd53   :  { %v1137_v21 = vmul.f32 1.442695, %v1130_v18 }
 0xd78   :  { %v1455_v43 = vpop.xlane.xlu1 %1454 }
 0xd79   :  { %v1457_v57 = vsub.f32 %v1448_v49, %v1455_v43 }
 0xd7b   :  { %v1460_v61 = vmul.f32 1.442695, %v1457_v57 }
 0xd7d   :  { %3210 = vpow2.f32 %v1460_v61 }
 0xd80   :  { %v1452_v2 = vpop.xlane.xlu1 %1451 }
 0xd81   :  { %v1456_v4 = vsub.f32 %v1447_v8, %v1452_v2 }
 0xd83   :  { %v3211_v6 = vpop.eup %3210  ;;  %v1458_v32 = vmul.f32 1.442695, %v1456_v4 }
 0xd84   :  { %v1465_v7 = vsel %vm1449_vm0, %v3211_v6, 0.0 }
 0xd85   :  { %3212 = vpow2.f32 %v1458_v32  ;;  %1466 = vadd.xlane.f32.xlu0 %v1465_v7 }
 0xd86   :  { %3214 = vpow2.f32 %v1133_v5 }
 0xd87   :  { %3216 = vpow2.f32 %v1131_v50 }
 0xd88   :  { %3218 = vpow2.f32 %v1137_v21 }
 0xd89   :  { %3220 = vpow2.f32 %v1135_v25 }
 0xd8b   :  { %v3213_v13 = vpop.eup %3212 }
 0xd8c   :  { %v3215_v1 = vpop.eup %3214  ;;  %v1462_v15 = vsel %vm1449_vm0, %v3213_v13, 0.0 }
 0xd8d   :  { %1463 = vadd.xlane.f32.xlu1 %v1462_v15  ;;  %v3217_v10 = vpop.eup %3216  ;;  %v2939_v20 = vadd.f32 -1.0, %v3215_v1 }
 0xd8e   :  { %v2938_v17 = vadd.f32 -1.0, %v3217_v10  ;;  %v3219_v34 = vpop.eup %3218 }
 0xd8f   :  { %v1144_v24 = vsel %vm1124_vm9, %v1116_v58, %v2939_v20  ;;  %v3221_v38 = vpop.eup %3220  ;;  %v2941_v44 = vadd.f32 -1.0, %v3219_v34 }
 0xd90   :  { %v1143_v31 = vsel %vm1123_vm10, %v1114_v62, %v2938_v17  ;;  %v1148_v26 = vpack.c.bf16 %v1144_v24, %v1144_v24  ;;  %v2940_v45 = vadd.f32 -1.0, %v3221_v38 }
 0xd91   :  { %v1147_v28 = vpack.c.bf16 %v1143_v31, %v1143_v31  ;;  %v1146_v27 = vsel %vm1126_vm11, %v1121_v60, %v2941_v44 }
 0xd92   :  { %v1157_v33 = vunpack.c.l.b16 %v1148_v26  ;;  %v1145_v12 = vsel %vm1125_vm12, %v1119_v16, %v2940_v45 }
 0xd93   :  { %v1156_v37 = vunpack.c.l.b16 %v1147_v28  ;;  %v1149_v46 = vpack.c.bf16 %v1145_v12, %v1145_v12 }
 0xd95   :  { %v1160_v39 = vpack.c.b16 %v1157_v33, %v1156_v37  ;;  %v1158_v23 = vunpack.c.l.b16 %v1149_v46 }
 0xd98   :  { %v1165_v29 = vpop.permute.xlu1 %1164 }
 0xd99   :  { %1496 = vrot.lane.b32.xlu0 %v3626_v9, %s3320_s13  ;;  %1180 = vmatpush.bf16.msrb.mxu2 %v1165_v29  ;;  %v1150_v9 = vpack.c.bf16 %v1146_v27, %v1146_v27 }
 0xd9b   :  { %v1159_v47 = vunpack.c.l.b16 %v1150_v9 }
 0xd9d   :  { %1181 = vmatpush.bf16.msrb.mxu2 %v3683_v3  ;;  %v1161_v14 = vpack.c.b16 %v1159_v47, %v1158_v23 }
 0xda0   :  { %2942 = vmatmul.msk.bf16.vlgmr.msrb.gmra.mxu2 %vm128_vm2, %v1160_v39 }
 0xda1   :  { %1525 = vrot.lane.b32.xlu0 %v3598_v41, %s3317_s20 }
 0xdb0   :  { %2943 = vmatmul.msk.bf16.gmra.mxu2 %vm128_vm2, %v1161_v14 }
 0xdf8   :  { %v1467_v3 = vpop.xlane.xlu0 %1466 }
 0xdf9   :  { %3222 = vrcp.f32 %v1467_v3 }
 0xdff   :  { %v3223_v49 = vpop.eup %3222 }
 0xe00   :  { %v1464_v48 = vpop.xlane.xlu1 %1463  ;;  %v1471_v30 = vmul.f32 %v3223_v49, %v3211_v6 }
 0xe01   :  { %3224 = vrcp.f32 %v1464_v48 }
 0xe02   :  { %v1473_v36 = vpack.c.bf16 %v1471_v30, %v1471_v30 }
 0xe07   :  { %v3225_v40 = vpop.eup %3224 }
 0xe08   :  { %v1470_v8 = vmul.f32 %v3225_v40, %v3213_v13 }
 0xe0a   :  { %v1472_v41 = vpack.c.bf16 %v1470_v8, %v1470_v8 }
 0xe0b   :  { %v1497_v51 = vpop.permute.xlu0 %1496 }
 0xe0c   :  { %v1502_v52 = vsel %vm1479_vm14, %v1497_v51, 0  ;;  %2957 = vmatmul.msk.bf16.vlgmr.msra.gmra.mxu1 %vm41_vm1, %v1472_v41 }
 0xe0d   :  { %1511 = vmatpush.bf16.msra.mxu2 %v1502_v52  ;;  %v3770_v52 = vld [vmem:[#allocation2 + $0x58] sm:$0xff] }
 0xe0e   :  { %1630 = vmatpush.bf16.msra.mxu0 %v3770_v52 }
 0xe10   :  { %2958 = vmatmul.msk.bf16.vlgmr.msra.gmra.mxu2 %vm41_vm1, %v1473_v36 }
 0xe23   :  { %v1183_v43 = vpop.f32.mrf.mxu2 }
 0xe24   :  { %v1184_v57 = vadd.f32 %v3125_v53, %v1183_v43 }
 0xe26   :  { %v1193_v58 = vadd.f32 %v1184_v57, %v3661_v54 }
 0xe28   :  { %v1199_v61 = vsel %vm128_vm2, %v1193_v58, 0.0 }
 0xe29   :  { %1200 = vadd.xlane.f32.xlu2 %v1199_v61 }
 0xe2b   :  { %v1185_v62 = vpop.f32.mrf.mxu2 }
 0xe2c   :  { %v1186_v63 = vadd.f32 %v3125_v53, %v1185_v62 }
 0xe2e   :  { %v1194_v0 = vadd.f32 %v1186_v63, %v3666_v59  ;;  %v1526_v59 = vpop.permute.xlu0 %1525 }
 0xe2f   :  { %1540 = vmatpush.bf16.msrb.mxu3 %v1526_v59 }
 0xe30   :  { %v1202_v55 = vsel %vm128_vm2, %v1194_v0, 0.0 }
 0xe31   :  { %1203 = vadd.xlane.f32.xlu0 %v1202_v55 }
 0xe33   :  { %v1188_v2 = vpop.f32.mrf.mxu2 }
 0xe34   :  { %v1189_v4 = vadd.f32 %v3125_v53, %v1188_v2 }
 0xe36   :  { %v1195_v5 = vadd.f32 %v1189_v4, %v3690_v42 }
 0xe38   :  { %v1205_v6 = vsel %vm128_vm2, %v1195_v5, 0.0 }
 0xe39   :  { %1206 = vadd.xlane.f32.xlu1 %v1205_v6 }
 0xe3b   :  { %v1190_v32 = vpop.f32.mrf.mxu2 }
 0xe3c   :  { %v1191_v50 = vadd.f32 %v3125_v53, %v1190_v32  ;;  %v3776_v53 = vld [vmem:[#allocation2 + $0x50] sm:$0xff] }
 0xe3d   :  { %1631 = vmatpush.bf16.msra.mxu0 %v3776_v53 }
 0xe3e   :  { %v1196_v54 = vadd.f32 %v1191_v50, %v3694_v35 }
 0xe40   :  { %v1208_v7 = vsel %vm128_vm2, %v1196_v54, 0.0 }
 0xe41   :  { %1209 = vadd.xlane.f32.xlu1 %v1208_v7 }
 0xe89   :  { %v1492_v60 = vpop.f32.mrf.mxu1 }
 0xe8a   :  { %v1517_v13 = vpack.c.bf16 %v1492_v60, %v1492_v60 }
 0xe8c   :  { %1520 = vst [vmem:[#allocation1] ss:$4 sm:$0xff] %v1517_v13 }
 0xe91   :  { %v1494_v1 = vpop.f32.mrf.mxu1 }
 0xe93   :  { %v1513_v16 = vpop.f32.mrf.mxu2 }
 0xe94   :  { %v1518_v42 = vpack.c.bf16 %v1513_v16, %v1513_v16 }
 0xe96   :  { %1523 = vst [vmem:[#allocation1 + $0x1] ss:$4 sm:$0xff] %v1518_v42 }
 0xe9b   :  { %v1515_v15 = vpop.f32.mrf.mxu2 }
 0xe9c   :  { %v1201_v34 = vpop.xlane.xlu2 %1200 }
 0xe9d   :  { %v1524_v10 = vld.sshfl [vmem:[#allocation1] sm:$0xff pattern:$0x73625140]  ;;  %v1211_v37 = vmul.f32 %v1201_v34, %v3443_v22 }
 0xe9e   :  { %2959 = vmatmul.msk.bf16.vlgmr.msrb.gmra.mxu3 %vm128_vm2, %v1524_v10 }
 0xe9f   :  { %v3747_v44 = vsub.f32 %v1193_v58, %v1211_v37  ;;  %v3126_v37 = vld [vmem:[%s4050_s2 + $0x25] ss:$0 sm:$0xff] }
 0xea1   :  { %v1219_v9 = vmul.f32 %v3747_v44, %v3747_v44 }
 0xea3   :  { %v1223_v46 = vsel %vm128_vm2, %v1219_v9, 0.0  ;;  %v3127_v9 = vld [vmem:[%s4050_s2 + $0x26] ss:$0 sm:$0xff] }
 0xea4   :  { %v1204_v18 = vpop.xlane.xlu0 %1203 }
 0xea5   :  { %v1212_v35 = vmul.f32 %v1204_v18, %v3443_v22 }
 0xea7   :  { %v3733_v20 = vsub.f32 %v1194_v0, %v1212_v35 }
 0xea9   :  { %v1220_v19 = vmul.f32 %v3733_v20, %v3733_v20 }
 0xeab   :  { %v1226_v17 = vsel %vm128_vm2, %v1220_v19, 0.0 }
 0xeac   :  { %v1207_v21 = vpop.xlane.xlu1 %1206  ;;  %1227 = vadd.xlane.f32.xlu2 %v1226_v17 }
 0xead   :  { %v1213_v24 = vmul.f32 %v1207_v21, %v3443_v22 }
 0xeaf   :  { %v3739_v25 = vsub.f32 %v1195_v5, %v1213_v24 }
 0xeb1   :  { %v1221_v31 = vmul.f32 %v3739_v25, %v3739_v25 }
 0xeb3   :  { %v1229_v26 = vsel %vm128_vm2, %v1221_v31, 0.0 }
 0xeb4   :  { %1230 = vadd.xlane.f32.xlu0 %v1229_v26  ;;  %v1210_v27 = vpop.xlane.xlu1 %1209 }
 0xeb5   :  { %v1214_v12 = vmul.f32 %v1210_v27, %v3443_v22 }
 0xec4   :  { %1656 = vrot.lane.b32.xlu2 %v3770_v52, %s3319_s12 }
 0xf1f   :  { %v1228_v57 = vpop.xlane.xlu2 %1227 }
 0xf20   :  { %v1236_v61 = vmul.f32 %v1228_v57, %v3443_v22 }
 0xf21   :  { %v1542_v28 = vpop.f32.mrf.mxu3 }
 0xf22   :  { %v1543_v29 = vadd.f32 %v1542_v28, %v3605_v56  ;;  %v3753_v56 = vsub.f32 %v1196_v54, %v1214_v12  ;;  %v1240_v63 = vadd.f32 1e-05, %v1236_v61 }
 0xf24   :  { %v1552_v33 = vsel %vm1551_vm13, %v1543_v29, 0.0  ;;  %v1547_v38 = vrot.slane %v1543_v29, 4  ;;  %v1222_v47 = vmul.f32 %v3753_v56, %v3753_v56  ;;  %vm1259_vm7 = vweird.f32 %v1240_v63 }
 0xf25   :  { %1553 = vadd.xlane.f32.xlu1 %v1552_v33 }
 0xf26   :  { %v1555_v45 = vsel %vm1551_vm13, %v1547_v38, 0.0  ;;  %v1232_v23 = vsel %vm128_vm2, %v1222_v47, 0.0 }
 0xf27   :  { %v1231_v2 = vpop.xlane.xlu0 %1230  ;;  %v1657_v59 = vpop.permute.xlu2 %1656 }
 0xf28   :  { %v1237_v32 = vmul.f32 %v1231_v2, %v3443_v22  ;;  %1672 = vmatpush.bf16.msrb.mxu1 %v1657_v59 }
 0xf29   :  { %v1544_v39 = vpop.f32.mrf.mxu3 }
 0xf2a   :  { %v1241_v11 = vadd.f32 1e-05, %v1237_v32 }
 0xf2d   :  { %1556 = vadd.xlane.f32.xlu1 %v1555_v45 }
 0xf35   :  { %1224 = vadd.xlane.f32.xlu1 %v1223_v46 }
 0xf3d   :  { %1233 = vadd.xlane.f32.xlu1 %v1232_v23 }
 0xf98   :  { %v1554_v14 = vpop.xlane.xlu1 %1553 }
 0xf99   :  { %v1558_v3 = vmul.f32 %v1554_v14, %v3443_v22 }
 0xf9b   :  { %v3760_v48 = vsub.f32 %v1543_v29, %v1558_v3 }
 0xf9d   :  { %v1562_v49 = vmul.f32 %v3760_v48, %v3760_v48 }
 0xf9f   :  { %v1564_v40 = vsel %vm1551_vm13, %v1562_v49, 0.0 }
 0xfa0   :  { %1565 = vadd.xlane.f32.xlu0 %v1564_v40  ;;  %v1557_v8 = vpop.xlane.xlu1 %1556 }
 0xfa1   :  { %v1559_v30 = vmul.f32 %v1557_v8, %v3443_v22 }
 0xfa3   :  { %v3766_v41 = vsub.f32 %v1547_v38, %v1559_v30 }
 0xfa5   :  { %v1563_v51 = vmul.f32 %v3766_v41, %v3766_v41 }
 0xfa7   :  { %v1567_v36 = vsel %vm1551_vm13, %v1563_v51, 0.0 }
 0xfa8   :  { %1568 = vadd.xlane.f32.xlu1 %v1567_v36  ;;  %v1225_v43 = vpop.xlane.xlu1 %1224 }
 0xfa9   :  { %v1235_v58 = vmul.f32 %v1225_v43, %v3443_v22 }
 0xfab   :  { %v1239_v62 = vadd.f32 1e-05, %v1235_v58 }
 0xfad   :  { %3226 = vrsqrt.f32 %v1239_v62  ;;  %vm1249_vm5 = vweird.f32 %v1239_v62 }
 0xfae   :  { %3228 = vrsqrt.f32 %v1240_v63 }
 0xfb0   :  { %v1234_v0 = vpop.xlane.xlu1 %1233 }
 0xfb1   :  { %v1238_v5 = vmul.f32 %v1234_v0, %v3443_v22 }
 0xfb3   :  { %v3227_v55 = vpop.eup %3226  ;;  %v1242_v54 = vadd.f32 1e-05, %v1238_v5 }
 0xfb4   :  { %1654 = vrot.lane.b32.xlu0 %v3776_v53, %s3319_s12  ;;  %v3229_v4 = vpop.eup %3228  ;;  %v1244_v6 = vmul.f32 %v3227_v55, %v1239_v62  ;;  %vm1250_vm15 = vweird.f32 %v3227_v55 }
 0xfb5   :  { %v1254_v50 = vmul.f32 %v3229_v4, %v1240_v63  ;;  %3230 = vrsqrt.f32 %v1242_v54  ;;  %vm1260_vm4 = vweird.f32 %v3229_v4  ;;  %vm1251_vm6 = vmor %vm1249_vm5, %vm1250_vm15  ;;  %vm1279_vm11 = vweird.f32 %v1242_v54 }
 0xfb6   :  { %v1245_v7 = vmul.f32 %v3227_v55, %v1244_v6  ;;  %3232 = vrsqrt.f32 %v1241_v11  ;;  %vm1261_vm8 = vmor %vm1259_vm7, %vm1260_vm4  ;;  %vm1269_vm15 = vweird.f32 %v1241_v11 }
 0xfb7   :  { %v1255_v60 = vmul.f32 %v3229_v4, %v1254_v50  ;;  %v3128_v50 = vld [vmem:[%s4050_s2 + $0x29] ss:$0 sm:$0xff] }
 0xfb8   :  { %v1246_v13 = vmul.f32 0.5, %v1245_v7 }
 0xfb9   :  { %v1256_v1 = vmul.f32 0.5, %v1255_v60 }
 0xfba   :  { %v1247_v16 = vsub.f32 1.5, %v1246_v13 }
 0xfbb   :  { %v3231_v42 = vpop.eup %3230  ;;  %v1257_v15 = vsub.f32 1.5, %v1256_v1 }
 0xfbc   :  { %v3233_v10 = vpop.eup %3232  ;;  %v1248_v18 = vmul.f32 %v3227_v55, %v1247_v16  ;;  %v1274_v35 = vmul.f32 %v3231_v42, %v1242_v54  ;;  %vm1280_vm9 = vweird.f32 %v3231_v42 }
 0xfbd   :  { %v1258_v19 = vmul.f32 %v3229_v4, %v1257_v15  ;;  %v1264_v17 = vmul.f32 %v3233_v10, %v1241_v11  ;;  %vm1270_vm10 = vweird.f32 %v3233_v10  ;;  %vm1281_vm12 = vmor %vm1279_vm11, %vm1280_vm9  ;;  %vm1741_vm11 = vcmask 125952  }
 0xfbe   :  { %v1252_v21 = vsel %vm1251_vm6, %v3227_v55, %v1248_v18  ;;  %v1275_v24 = vmul.f32 %v3231_v42, %v1274_v35  ;;  %vm1271_vm4 = vmor %vm1269_vm15, %vm1270_vm10 }
 0xfbf   :  { %v1262_v31 = vsel %vm1261_vm8, %v3229_v4, %v1258_v19  ;;  %v1265_v26 = vmul.f32 %v3233_v10, %v1264_v17  ;;  %v1283_v29 = vmul.f32 %v1252_v21, %v3747_v44 }
 0xfc0   :  { %v1276_v34 = vmul.f32 0.5, %v1275_v24  ;;  %v1284_v38 = vmul.f32 %v1262_v31, %v3733_v20 }
 0xfc1   :  { %v1266_v45 = vmul.f32 0.5, %v1265_v26  ;;  %v1288_v27 = vmul.f32 %v3126_v37, %v1283_v29 }
 0xfc2   :  { %v1277_v12 = vsub.f32 1.5, %v1276_v34  ;;  %v1289_v46 = vmul.f32 %v3126_v37, %v1284_v38 }
 0xfc3   :  { %v1267_v44 = vsub.f32 1.5, %v1266_v45  ;;  %v1293_v23 = vadd.f32 %v3127_v9, %v1288_v27 }
 0xfc4   :  { %v1278_v3 = vmul.f32 %v3231_v42, %v1277_v12  ;;  %v1294_v40 = vadd.f32 %v3127_v9, %v1289_v46 }
 0xfc5   :  { %v1268_v8 = vmul.f32 %v3233_v10, %v1267_v44  ;;  %v1640_v51 = vpack.c.bf16 %v1293_v23, %v1293_v23 }
 0xfc6   :  { %v1282_v36 = vsel %vm1281_vm12, %v3231_v42, %v1278_v3  ;;  %v1641_v57 = vpack.c.bf16 %v1294_v40, %v1294_v40 }
 0xfc7   :  { %v1272_v58 = vsel %vm1271_vm4, %v3233_v10, %v1268_v8  ;;  %v1286_v62 = vmul.f32 %v1282_v36, %v3753_v56  ;;  %v1648_v63 = vunpack.c.l.b16 %v1640_v51 }
 0xfc8   :  { %v1285_v2 = vmul.f32 %v1272_v58, %v3739_v25  ;;  %v1649_v5 = vunpack.c.l.b16 %v1641_v57  ;;  %v3129_v25 = vld [vmem:[%s4050_s2 + $0x2a] ss:$0 sm:$0xff] }
 0xfc9   :  { %v1291_v56 = vmul.f32 %v3126_v37, %v1286_v62 }
 0xfca   :  { %v3800_v54 = vpack.c.b16 %v1649_v5, %v1648_v63  ;;  %v1290_v60 = vmul.f32 %v3126_v37, %v1285_v2 }
 0xfcb   :  { %v1296_v16 = vadd.f32 %v3127_v9, %v1291_v56 }
 0xfcc   :  { %v1295_v10 = vadd.f32 %v3127_v9, %v1290_v60 }
 0xfcd   :  { %v1643_v19 = vpack.c.bf16 %v1296_v16, %v1296_v16 }
 0xfce   :  { %v1642_v21 = vpack.c.bf16 %v1295_v10, %v1295_v10 }
 0xfcf   :  { %v1651_v31 = vunpack.c.l.b16 %v1643_v19 }
0x1013   :  { %v1566_v28 = vpop.xlane.xlu0 %1565 }
0x1014   :  { %v1570_v33 = vmul.f32 %v1566_v28, %v3443_v22  ;;  %v1650_v28 = vunpack.c.l.b16 %v1642_v21 }
0x1016   :  { %v1572_v39 = vadd.f32 1e-05, %v1570_v33  ;;  %v3817_v33 = vpack.c.b16 %v1651_v31, %v1650_v28 }
0x1018   :  { %3234 = vrsqrt.f32 %v1572_v39  ;;  %vm1580_vm6 = vweird.f32 %v1572_v39 }
0x101b   :  { %v1569_v47 = vpop.xlane.xlu1 %1568 }
0x101c   :  { %v1571_v14 = vmul.f32 %v1569_v47, %v3443_v22 }
0x101e   :  { %v3235_v49 = vpop.eup %3234  ;;  %v1573_v20 = vadd.f32 1e-05, %v1571_v14 }
0x101f   :  { %v1575_v30 = vmul.f32 %v3235_v49, %v1572_v39  ;;  %vm1581_vm5 = vweird.f32 %v3235_v49 }
0x1020   :  { %3236 = vrsqrt.f32 %v1573_v20  ;;  %vm1582_vm7 = vmor %vm1580_vm6, %vm1581_vm5  ;;  %vm1590_vm9 = vweird.f32 %v1573_v20 }
0x1021   :  { %v1576_v43 = vmul.f32 %v3235_v49, %v1575_v30 }
0x1023   :  { %v1577_v61 = vmul.f32 0.5, %v1576_v43 }
0x1025   :  { %v1578_v0 = vsub.f32 1.5, %v1577_v61 }
0x1026   :  { %v3237_v55 = vpop.eup %3236  ;;  %v1655_v4 = vpop.permute.xlu0 %1654 }
0x1027   :  { %v1579_v6 = vmul.f32 %v3235_v49, %v1578_v0  ;;  %v1585_v32 = vmul.f32 %v3237_v55, %v1573_v20  ;;  %1673 = vmatpush.bf16.msrb.mxu1 %v1655_v4  ;;  %vm1591_vm8 = vweird.f32 %v3237_v55 }
0x1028   :  { %vm1592_vm10 = vmor %vm1590_vm9, %vm1591_vm8 }
0x1029   :  { %v1583_v7 = vsel %vm1582_vm7, %v3235_v49, %v1579_v6  ;;  %v1586_v11 = vmul.f32 %v3237_v55, %v1585_v32 }
0x102a   :  { %v1594_v59 = vmul.f32 %v1583_v7, %v3760_v48  ;;  %2969 = vmatmul.msk.bf16.vlgmr.msrb.gmra.mxu1 %vm128_vm2, %v3800_v54 }
0x102b   :  { %v1587_v13 = vmul.f32 0.5, %v1586_v11 }
0x102c   :  { %v1597_v1 = vmul.f32 %v3128_v50, %v1594_v59 }
0x102d   :  { %v1588_v42 = vsub.f32 1.5, %v1587_v13 }
0x102e   :  { %v3808_v15 = vadd.f32 %v3129_v25, %v1597_v1 }
0x102f   :  { %v1589_v18 = vmul.f32 %v3237_v55, %v1588_v42 }
0x1030   :  { %v1602_v35 = vpack.c.bf16 %v3808_v15, %v3808_v15 }
0x1031   :  { %v1593_v48 = vsel %vm1592_vm10, %v3237_v55, %v1589_v18 }
0x1032   :  { %1605 = vst [vmem:[#allocation1] ss:$4 sm:$0xff] %v1602_v35  ;;  %v1595_v17 = vmul.f32 %v1593_v48, %v3766_v41 }
0x1034   :  { %v1598_v24 = vmul.f32 %v3128_v50, %v1595_v17 }
0x1036   :  { %v3813_v26 = vadd.f32 %v3129_v25, %v1598_v24 }
0x1038   :  { %v1603_v29 = vpack.c.bf16 %v3813_v26, %v3813_v26 }
0x103a   :  { %1608 = vst [vmem:[#allocation1 + $0x1] ss:$4 sm:$0xff] %v1603_v29  ;;  %2970 = vmatmul.msk.bf16.gmra.mxu1 %vm128_vm2, %v3817_v33 }
0x1041   :  { %v1609_v34 = vld.sshfl [vmem:[#allocation1] sm:$0xff pattern:$0x73625140] }
0x1042   :  { %2968 = vmatmul.msk.bf16.vlgmr.msra.gmra.mxu0 %vm128_vm2, %v1609_v34 }
0x10a7   :  { %v1675_v37 = vpop.f32.mrf.mxu1 }
0x10a8   :  { %v1687_v41 = vpack.c.bf16 %v1675_v37, %v1675_v37 }
0x10aa   :  { %v1693_v45 = vunpack.c.l.b16 %v1687_v41 }
0x10af   :  { %v1677_v38 = vpop.f32.mrf.mxu1 }
0x10b0   :  { %v1688_v39 = vpack.c.bf16 %v1677_v38, %v1677_v38 }
0x10b2   :  { %v1694_v27 = vunpack.c.l.b16 %v1688_v39 }
0x10b4   :  { %v1695_v12 = vpack.c.b16 %v1694_v27, %v1693_v45 }
0x10b6   :  { %v1700_v9 = vsel %vm165_vm3, %v1695_v12, 0 }
0x10b7   :  { %v1680_v46 = vpop.f32.mrf.mxu1  ;;  %1709 = vmatpush.bf16.xpose.msrb.mxu2 %v1700_v9 }
0x10b8   :  { %v1689_v44 = vpack.c.bf16 %v1680_v46, %v1680_v46 }
0x10ba   :  { %v1717_v49 = vunpack.c.l.b16 %v1689_v44 }
0x10bf   :  { %v1633_v47 = vpop.f32.mrf.mxu0  ;;  %v1682_v23 = vpop.f32.mrf.mxu1 }
0x10c0   :  { %v1685_v14 = vpack.c.bf16 %v1633_v47, %v1633_v47  ;;  %v1690_v3 = vpack.c.bf16 %v1682_v23, %v1682_v23  ;;  %v1638_v51 = vrot.slane %v1633_v47, 4 }
0x10c2   :  { %v1718_v40 = vunpack.c.l.b16 %v1690_v3  ;;  %2971 = vmatmul.msk.bf16.vlgmr.msrb.gmra.mxu2 %vm165_vm3, %v1685_v14  ;;  %v1686_v36 = vpack.c.bf16 %v1638_v51, %v1638_v51 }
0x10c4   :  { %v1719_v20 = vpack.c.b16 %v1718_v40, %v1717_v49 }
0x10c6   :  { %v1724_v8 = vsel %vm165_vm3, %v1719_v20, 0 }
0x10c7   :  { %v1635_v30 = vpop.f32.mrf.mxu0  ;;  %1733 = vmatpush.bf16.xpose.msra.mxu3 %v1724_v8  ;;  %v3077_v8 = vld [vmem:[#allocation2 + $0x68] sm:$0xff] }
0x10ce   :  { %2972 = vmatmul.msk.bf16.vlgmr.msra.gmra.mxu3 %vm165_vm3, %v1686_v36 }
0x1145   :  { %v1711_v43 = vpop.f32.mrf.mxu2 }
0x1146   :  { %v1739_v63 = vmul.f32 0.25, %v1711_v43 }
0x1148   :  { %v1742_v55 = vsel %vm1741_vm11, %v1739_v63, -inf }
0x114d   :  { %v1713_v57 = vpop.f32.mrf.mxu2 }
0x114e   :  { %v3076_v57 = vld [vmem:[#allocation2 + $0x60] sm:$0xff] }
0x1151   :  { %v1735_v58 = vpop.f32.mrf.mxu3 }
0x1152   :  { %v1740_v61 = vmul.f32 0.25, %v1735_v58 }
0x1154   :  { %v1745_v62 = vsel %vm1741_vm11, %v1740_v61, -inf }
0x1155   :  { %1746 = vmax.xlane.f32.xlu1 %v1745_v62 }
0x1159   :  { %v1737_v0 = vpop.f32.mrf.mxu3 }
0x115d   :  { %1743 = vmax.xlane.f32.xlu1 %v1742_v55 }
0x1176   :  { %1785 = vrot.lane.b32.xlu1 %v1719_v20, %s3319_s12 }
0x117e   :  { %1766 = vrot.lane.b32.xlu1 %v1695_v12, %s3319_s12 }
0x1186   :  { %1814 = vrot.lane.b32.xlu1 %v3770_v52, %s3317_s20 }
0x11c8   :  { %v1747_v2 = vpop.xlane.xlu1 %1746 }
0x11c9   :  { %v1749_v4 = vsub.f32 %v1740_v61, %v1747_v2 }
0x11cb   :  { %v1752_v5 = vmul.f32 1.442695, %v1749_v4  ;;  %v3130_v4 = vld [vmem:[%s4050_s2 + $0x2b] ss:$0 sm:$0xff] }
0x11cd   :  { %3238 = vpow2.f32 %v1752_v5 }
0x11d0   :  { %v1744_v6 = vpop.xlane.xlu1 %1743 }
0x11d1   :  { %v1748_v32 = vsub.f32 %v1739_v63, %v1744_v6 }
0x11d3   :  { %v3239_v50 = vpop.eup %3238  ;;  %v1750_v56 = vmul.f32 1.442695, %v1748_v32  ;;  %v3131_v32 = vld [vmem:[%s4050_s2 + $0x2c] ss:$0 sm:$0xff] }
0x11d4   :  { %v1757_v7 = vsel %vm1741_vm11, %v3239_v50, 0.0 }
0x11d5   :  { %3240 = vpow2.f32 %v1750_v56  ;;  %1758 = vadd.xlane.f32.xlu2 %v1757_v7 }
0x11db   :  { %v3241_v11 = vpop.eup %3240 }
0x11dc   :  { %v1754_v25 = vsel %vm1741_vm11, %v3241_v11, 0.0 }
0x11dd   :  { %1755 = vadd.xlane.f32.xlu0 %v1754_v25 }
0x11e8   :  { %v1786_v59 = vpop.permute.xlu1 %1785 }
0x11e9   :  { %1798 = vmatpush.bf16.msra.mxu2 %v1786_v59 }
0x11ed   :  { %1812 = vrot.lane.b32.xlu2 %v3776_v53, %s3317_s20 }
0x11f0   :  { %v1767_v52 = vpop.permute.xlu1 %1766 }
0x11f1   :  { %1779 = vmatpush.bf16.msrb.mxu0 %v1767_v52 }
0x11f5   :  { %1932 = vmatpush.bf16.msra.mxu0 %v3077_v8  ;;  %1965 = vrot.lane.b32.xlu2 %v3077_v8, %s3320_s13 }
0x11f8   :  { %v1815_v19 = vpop.permute.xlu1 %1814 }
0x11f9   :  { %1833 = vmatpush.bf16.msrb.mxu3 %v1815_v19  ;;  %1933 = vmatpush.bf16.msra.mxu0 %v3076_v57 }
0x1248   :  { %v1759_v60 = vpop.xlane.xlu2 %1758 }
0x1249   :  { %3242 = vrcp.f32 %v1759_v60 }
0x124f   :  { %v3243_v13 = vpop.eup %3242 }
0x1250   :  { %v1763_v1 = vmul.f32 %v3243_v13, %v3239_v50  ;;  %v1756_v16 = vpop.xlane.xlu0 %1755  ;;  %v1813_v48 = vpop.permute.xlu2 %1812 }
0x1251   :  { %3244 = vrcp.f32 %v1756_v16  ;;  %1834 = vmatpush.bf16.msrb.mxu3 %v1813_v48 }
0x1252   :  { %v1765_v42 = vpack.c.bf16 %v1763_v1, %v1763_v1 }
0x1254   :  { %2974 = vmatmul.msk.bf16.vlgmr.msra.gmra.mxu2 %vm165_vm3, %v1765_v42 }
0x1257   :  { %v3245_v10 = vpop.eup %3244 }
0x1258   :  { %v1762_v18 = vmul.f32 %v3245_v10, %v3241_v11  ;;  %v3132_v10 = vld [vmem:[%s4050_s2 + $0x27] ss:$0 sm:$0xff] }
0x125a   :  { %v1764_v35 = vpack.c.bf16 %v1762_v18, %v1762_v18 }
0x125c   :  { %2973 = vmatmul.msk.bf16.vlgmr.msrb.gmra.mxu0 %vm165_vm3, %v1764_v35  ;;  %v1966_v35 = vpop.permute.xlu2 %1965 }
0x125d   :  { %1983 = vmatpush.bf16.msra.mxu1 %v1966_v35 }
0x12d7   :  { %v1800_v53 = vpop.f32.mrf.mxu2 }
0x12d8   :  { %v1805_v17 = vpack.c.bf16 %v1800_v53, %v1800_v53 }
0x12d9   :  { %v1781_v21 = vpop.f32.mrf.mxu0 }
0x12da   :  { %1810 = vst [vmem:[#allocation1 + $0x1] ss:$4 sm:$0xff] %v1805_v17  ;;  %v1804_v24 = vpack.c.bf16 %v1781_v21, %v1781_v21 }
0x12dc   :  { %1807 = vst [vmem:[#allocation1] ss:$4 sm:$0xff] %v1804_v24 }
0x12df   :  { %v1802_v31 = vpop.f32.mrf.mxu2 }
0x12e1   :  { %v1783_v28 = vpop.f32.mrf.mxu0 }
0x12e3   :  { %v1811_v29 = vld.sshfl [vmem:[#allocation1] sm:$0xff pattern:$0x73625140] }
0x12e4   :  { %1820 = vst [vmem:[#allocation1] ss:$2 sm:$0xff] %v3808_v15  ;;  %2975 = vmatmul.msk.bf16.vlgmr.msrb.gmra.mxu3 %vm128_vm2, %v1811_v29 }
0x12e5   :  { %1822 = vst [vmem:[#allocation1 + $0x1] ss:$2 sm:$0xff] %v3813_v26 }
0x12ec   :  { %v1823_v34 = vld.sshfl [vmem:[#allocation1] sm:$0xff pattern:$0x75316420] }
0x1367   :  { %v1836_v37 = vpop.f32.mrf.mxu3 }
0x1368   :  { %v1837_v41 = vadd.f32 %v1836_v37, %v1823_v34 }
0x136a   :  { %v1845_v38 = vsel %vm1551_vm13, %v1837_v41, 0.0  ;;  %v1841_v39 = vrot.slane %v1837_v41, 4 }
0x136b   :  { %1846 = vadd.xlane.f32.xlu1 %v1845_v38 }
0x136c   :  { %v1848_v45 = vsel %vm1551_vm13, %v1841_v39, 0.0 }
0x136d   :  { %1849 = vadd.xlane.f32.xlu0 %v1848_v45 }
0x136f   :  { %v1838_v27 = vpop.f32.mrf.mxu3 }
0x13de   :  { %v1847_v12 = vpop.xlane.xlu1 %1846 }
0x13df   :  { %v1851_v9 = vmul.f32 %v1847_v12, %v3443_v22 }
0x13e0   :  { %v1850_v46 = vpop.xlane.xlu0 %1849 }
0x13e1   :  { %v1853_v15 = vsub.f32 %v1837_v41, %v1851_v9  ;;  %v1852_v44 = vmul.f32 %v1850_v46, %v3443_v22  ;;  %v3133_v46 = vld [vmem:[%s4050_s2 + $0x28] ss:$0 sm:$0xff] }
0x13e3   :  { %v1855_v47 = vmul.f32 %v1853_v15, %v1853_v15  ;;  %v1854_v26 = vsub.f32 %v1841_v39, %v1852_v44 }
0x13e5   :  { %v1857_v23 = vsel %vm1551_vm13, %v1855_v47, 0.0  ;;  %v1856_v14 = vmul.f32 %v1854_v26, %v1854_v26 }
0x13e6   :  { %1858 = vadd.xlane.f32.xlu0 %v1857_v23 }
0x13e7   :  { %v1860_v3 = vsel %vm1551_vm13, %v1856_v14, 0.0 }
0x13ee   :  { %1861 = vadd.xlane.f32.xlu0 %v1860_v3 }
0x1402   :  { %1963 = vrot.lane.b32.xlu0 %v3076_v57, %s3320_s13 }
0x1459   :  { %v1859_v49 = vpop.xlane.xlu0 %1858 }
0x145a   :  { %v1863_v40 = vmul.f32 %v1859_v49, %v3443_v22 }
0x145c   :  { %v1865_v20 = vadd.f32 1e-05, %v1863_v40 }
0x145e   :  { %3246 = vrsqrt.f32 %v1865_v20  ;;  %vm1873_vm15 = vweird.f32 %v1865_v20 }
0x1461   :  { %v1862_v30 = vpop.xlane.xlu0 %1861 }
0x1462   :  { %v1864_v51 = vmul.f32 %v1862_v30, %v3443_v22 }
0x1464   :  { %v3247_v36 = vpop.eup %3246  ;;  %v1866_v43 = vadd.f32 1e-05, %v1864_v51 }
0x1465   :  { %v1868_v58 = vmul.f32 %v3247_v36, %v1865_v20  ;;  %vm1874_vm12 = vweird.f32 %v3247_v36 }
0x1466   :  { %3248 = vrsqrt.f32 %v1866_v43  ;;  %vm1875_vm4 = vmor %vm1873_vm15, %vm1874_vm12  ;;  %vm1883_vm6 = vweird.f32 %v1866_v43 }
0x1467   :  { %v1869_v61 = vmul.f32 %v3247_v36, %v1868_v58 }
0x1469   :  { %v1870_v62 = vmul.f32 0.5, %v1869_v61 }
0x146b   :  { %v1871_v63 = vsub.f32 1.5, %v1870_v62 }
0x146c   :  { %v3249_v0 = vpop.eup %3248 }
0x146d   :  { %v1872_v55 = vmul.f32 %v3247_v36, %v1871_v63  ;;  %v1878_v2 = vmul.f32 %v3249_v0, %v1866_v43  ;;  %vm1884_vm5 = vweird.f32 %v3249_v0 }
0x146e   :  { %vm1885_vm7 = vmor %vm1883_vm6, %vm1884_vm5 }
0x146f   :  { %v1876_v5 = vsel %vm1875_vm4, %v3247_v36, %v1872_v55  ;;  %v1879_v6 = vmul.f32 %v3249_v0, %v1878_v2  ;;  %v3872_v2 = vld [vmem:[#allocation2 + $0x78] sm:$0xff] }
0x1470   :  { %v1887_v50 = vmul.f32 %v1876_v5, %v1853_v15  ;;  %2090 = vmatpush.bf16.msrb.mxu2 %v3872_v2 }
0x1471   :  { %v1880_v56 = vmul.f32 0.5, %v1879_v6 }
0x1472   :  { %v1890_v7 = vmul.f32 %v3130_v4, %v1887_v50 }
0x1473   :  { %v1881_v11 = vsub.f32 1.5, %v1880_v56 }
0x1474   :  { %v1893_v25 = vadd.f32 %v3131_v32, %v1890_v7  ;;  %v1964_v19 = vpop.permute.xlu0 %1963 }
0x1475   :  { %v1882_v59 = vmul.f32 %v3249_v0, %v1881_v11  ;;  %1984 = vmatpush.bf16.msra.mxu1 %v1964_v19  ;;  %v3135_v19 = vld [vmem:[%s4050_s2 + $0x2e] ss:$0 sm:$0xff] }
0x1476   :  { %v1897_v52 = vpack.c.bf16 %v1893_v25, %v1893_v25 }
0x1477   :  { %v1886_v60 = vsel %vm1885_vm7, %v3249_v0, %v1882_v59 }
0x1478   :  { %1901 = vst [vmem:[#allocation1] ss:$4 sm:$0xff] %v1897_v52  ;;  %v1888_v13 = vmul.f32 %v1886_v60, %v1854_v26 }
0x147a   :  { %v1891_v1 = vmul.f32 %v3130_v4, %v1888_v13 }
0x147c   :  { %v1894_v16 = vadd.f32 %v3131_v32, %v1891_v1  ;;  %v3876_v32 = vld [vmem:[#allocation2 + $0x70] sm:$0xff] }
0x147d   :  { %2091 = vmatpush.bf16.msrb.mxu2 %v3876_v32 }
0x147e   :  { %v1898_v42 = vpack.c.bf16 %v1894_v16, %v1894_v16 }
0x1480   :  { %1904 = vst [vmem:[#allocation1 + $0x1] ss:$4 sm:$0xff] %v1898_v42 }
0x1487   :  { %v1905_v18 = vld.sshfl [vmem:[#allocation1] sm:$0xff pattern:$0x73625140] }
0x1488   :  { %1921 = vst [vmem:[#allocation1 + $0x1] ss:$2 sm:$0xff] %v3132_v10  ;;  %2984 = vmatmul.msk.bf16.vlgmr.msra.gmra.mxu0 %vm128_vm2, %v1905_v18 }
0x1489   :  { %1919 = vst [vmem:[#allocation1] ss:$2 sm:$0xff] %v3132_v10  ;;  %v3134_v10 = vld [vmem:[%s4050_s2 + $0x2d] ss:$0 sm:$0xff] }
0x1490   :  { %v1922_v48 = vld.sshfl [vmem:[#allocation1] sm:$0xff pattern:$0x75316420] }
0x1505   :  { %v1935_v53 = vpop.f32.mrf.mxu0 }
0x1506   :  { %v1936_v17 = vadd.f32 %v1935_v53, %v1922_v48 }
0x1508   :  { %v1940_v21 = vrot.slane %v1936_v17, 4  ;;  %v1944_v24 = vmin.f32 %v1936_v17, 0.0  ;;  %vm1942_vm8 = vcmp.gt.f32.partialorder %v1936_v17, 0.0 }
0x150a   :  { %v1945_v31 = vmin.f32 %v1940_v21, 0.0  ;;  %v1946_v28 = vmul.f32 1.442695, %v1944_v24  ;;  %vm1943_vm9 = vcmp.gt.f32.partialorder %v1940_v21, 0.0 }
0x150c   :  { %3250 = vpow2.f32 %v1946_v28  ;;  %v1948_v29 = vmul.f32 1.442695, %v1945_v31 }
0x150d   :  { %v1937_v34 = vpop.f32.mrf.mxu0 }
0x150e   :  { %3252 = vpow2.f32 %v1948_v29 }
0x1512   :  { %v3251_v37 = vpop.eup %3250 }
0x1513   :  { %v2985_v41 = vadd.f32 -1.0, %v3251_v37 }
0x1514   :  { %v3253_v38 = vpop.eup %3252 }
0x1515   :  { %v2986_v39 = vadd.f32 -1.0, %v3253_v38  ;;  %v1952_v45 = vsel %vm1942_vm8, %v1936_v17, %v2985_v41 }
0x1516   :  { %v1954_v27 = vpack.c.bf16 %v1952_v45, %v1952_v45 }
0x1517   :  { %v1953_v12 = vsel %vm1943_vm9, %v1940_v21, %v2986_v39 }
0x1518   :  { %v1955_v9 = vpack.c.bf16 %v1953_v12, %v1953_v12  ;;  %1958 = vst [vmem:[#allocation1] ss:$4 sm:$0xff] %v1954_v27 }
0x151a   :  { %1961 = vst [vmem:[#allocation1 + $0x1] ss:$4 sm:$0xff] %v1955_v9 }
0x1521   :  { %v1962_v15 = vld.sshfl [vmem:[#allocation1] sm:$0xff pattern:$0x73625140] }
0x1522   :  { %1970 = vst [vmem:[#allocation1] ss:$2 sm:$0xff] %v3133_v46  ;;  %2987 = vmatmul.msk.bf16.vlgmr.msra.gmra.mxu1 %vm128_vm2, %v1962_v15 }
0x1523   :  { %1972 = vst [vmem:[#allocation1 + $0x1] ss:$2 sm:$0xff] %v3133_v46 }
0x152a   :  { %v1973_v44 = vld.sshfl [vmem:[#allocation1] sm:$0xff pattern:$0x75316420] }
0x159f   :  { %v1986_v47 = vpop.f32.mrf.mxu1 }
0x15a0   :  { %v1987_v26 = vadd.f32 %v1986_v47, %v1973_v44 }
0x15a2   :  { %v1991_v23 = vrot.slane %v1987_v26, 4  ;;  %v1993_v14 = vadd.f32 %v1987_v26, %v1893_v25 }
0x15a4   :  { %v1997_v3 = vsel %vm1551_vm13, %v1993_v14, 0.0  ;;  %v1994_v49 = vadd.f32 %v1991_v23, %v1894_v16 }
0x15a5   :  { %1998 = vadd.xlane.f32.xlu2 %v1997_v3 }
0x15a6   :  { %v2000_v40 = vsel %vm1551_vm13, %v1994_v49, 0.0 }
0x15a7   :  { %v1988_v20 = vpop.f32.mrf.mxu1  ;;  %2001 = vadd.xlane.f32.xlu1 %v2000_v40 }
0x1618   :  { %v1999_v8 = vpop.xlane.xlu2 %1998 }
0x1619   :  { %v2003_v30 = vmul.f32 %v1999_v8, %v3443_v22 }
0x161a   :  { %v2002_v51 = vpop.xlane.xlu1 %2001 }
0x161b   :  { %v2005_v36 = vsub.f32 %v1993_v14, %v2003_v30  ;;  %v2004_v43 = vmul.f32 %v2002_v51, %v3443_v22 }
0x161d   :  { %v2006_v57 = vsub.f32 %v1994_v49, %v2004_v43  ;;  %v2007_v58 = vmul.f32 %v2005_v36, %v2005_v36 }
0x161f   :  { %v2009_v61 = vsel %vm1551_vm13, %v2007_v58, 0.0  ;;  %v2008_v62 = vmul.f32 %v2006_v57, %v2006_v57 }
0x1620   :  { %2010 = vadd.xlane.f32.xlu0 %v2009_v61 }
0x1621   :  { %v2012_v63 = vsel %vm1551_vm13, %v2008_v62, 0.0 }
0x1622   :  { %2013 = vadd.xlane.f32.xlu1 %v2012_v63 }
0x1693   :  { %v2011_v0 = vpop.xlane.xlu0 %2010 }
0x1694   :  { %v2015_v55 = vmul.f32 %v2011_v0, %v3443_v22 }
0x1695   :  { %v2014_v4 = vpop.xlane.xlu1 %2013 }
0x1696   :  { %v2017_v5 = vadd.f32 1e-05, %v2015_v55  ;;  %v2016_v6 = vmul.f32 %v2014_v4, %v3443_v22 }
0x1698   :  { %3254 = vrsqrt.f32 %v2017_v5  ;;  %v2018_v50 = vadd.f32 1e-05, %v2016_v6  ;;  %vm2025_vm12 = vweird.f32 %v2017_v5 }
0x169a   :  { %3256 = vrsqrt.f32 %v2018_v50  ;;  %vm2035_vm5 = vweird.f32 %v2018_v50 }
0x169e   :  { %v3255_v56 = vpop.eup %3254 }
0x169f   :  { %v2020_v7 = vmul.f32 %v3255_v56, %v2017_v5  ;;  %vm2026_vm10 = vweird.f32 %v3255_v56 }
0x16a0   :  { %v3257_v11 = vpop.eup %3256  ;;  %vm2027_vm4 = vmor %vm2025_vm12, %vm2026_vm10 }
0x16a1   :  { %v2021_v25 = vmul.f32 %v3255_v56, %v2020_v7  ;;  %v2030_v59 = vmul.f32 %v3257_v11, %v2018_v50  ;;  %vm2036_vm15 = vweird.f32 %v3257_v11 }
0x16a2   :  { %vm2037_vm6 = vmor %vm2035_vm5, %vm2036_vm15 }
0x16a3   :  { %v2022_v52 = vmul.f32 0.5, %v2021_v25  ;;  %v2031_v60 = vmul.f32 %v3257_v11, %v2030_v59 }
0x16a5   :  { %v2023_v13 = vsub.f32 1.5, %v2022_v52  ;;  %v2032_v1 = vmul.f32 0.5, %v2031_v60 }
0x16a7   :  { %v2024_v16 = vmul.f32 %v3255_v56, %v2023_v13  ;;  %v2033_v42 = vsub.f32 1.5, %v2032_v1 }
0x16a9   :  { %v2028_v18 = vsel %vm2027_vm4, %v3255_v56, %v2024_v16  ;;  %v2034_v35 = vmul.f32 %v3257_v11, %v2033_v42 }
0x16aa   :  { %v2039_v48 = vmul.f32 %v2028_v18, %v2005_v36 }
0x16ab   :  { %v2038_v53 = vsel %vm2037_vm6, %v3257_v11, %v2034_v35 }
0x16ac   :  { %v2042_v17 = vmul.f32 %v3134_v10, %v2039_v48  ;;  %v2040_v21 = vmul.f32 %v2038_v53, %v2006_v57  ;;  %v3917_v53 = vld [vmem:[#allocation2 + $0x88] sm:$0xff] }
0x16ae   :  { %v3885_v24 = vadd.f32 %v3135_v19, %v2042_v17  ;;  %v2043_v31 = vmul.f32 %v3134_v10, %v2040_v21  ;;  %v3920_v17 = vld [vmem:[#allocation2 + $0x80] sm:$0xff] }
0x16b0   :  { %v2062_v28 = vpack.c.bf16 %v3885_v24, %v3885_v24  ;;  %v3889_v29 = vadd.f32 %v3135_v19, %v2043_v31 }
0x16b2   :  { %2065 = vst [vmem:[#allocation1] ss:$4 sm:$0xff] %v2062_v28  ;;  %v2063_v34 = vpack.c.bf16 %v3889_v29, %v3889_v29 }
0x16b4   :  { %2068 = vst [vmem:[#allocation1 + $0x1] ss:$4 sm:$0xff] %v2063_v34 }
0x16bb   :  { %v2069_v37 = vld.sshfl [vmem:[#allocation1] sm:$0xff pattern:$0x73625140] }
0x16bc   :  { %2996 = vmatmul.msk.bf16.vlgmr.msrb.gmra.mxu2 %vm128_vm2, %v2069_v37 }
0x173f   :  { %v2093_v41 = vpop.f32.mrf.mxu2 }
0x1740   :  { %v2098_v38 = vrot.slane %v2093_v41, 4  ;;  %v2100_v39 = vpack.c.bf16 %v2093_v41, %v2093_v41 }
0x1742   :  { %v2101_v45 = vpack.c.bf16 %v2098_v38, %v2098_v38  ;;  %v2103_v27 = vunpack.c.l.b16 %v2100_v39 }
0x1744   :  { %v2127_v12 = vunpack.c.l.b16 %v2101_v45  ;;  %v2104_v9 = vpack.c.b16 %v2103_v27, %v2103_v27 }
0x1746   :  { %2105 = vrot.lane.b32.xlu1 %v2104_v9, %s3319_s12  ;;  %v2128_v46 = vpack.c.b16 %v2127_v12, %v2127_v12 }
0x1747   :  { %v2095_v15 = vpop.f32.mrf.mxu2 }
0x1748   :  { %2129 = vrot.lane.b32.xlu2 %v2128_v46, %s3319_s12 }
0x17a2   :  { %v2130_v44 = vpop.permute.xlu2 %2129 }
0x17a3   :  { %v2135_v47 = vsel %vm165_vm3, %v2130_v44, 0 }
0x17a4   :  { %2144 = vmatpush.bf16.xpose.msrb.mxu0 %v2135_v47 }
0x17ab   :  { %2998 = vmatmul.msk.bf16.vlgmr.msrb.gmra.mxu0 %vm165_vm3, %v2101_v45 }
0x17ac   :  { %2337 = vmatpush.bf16.msra.mxu0 %v3917_v53 }
0x17b0   :  { %2338 = vmatpush.bf16.msra.mxu0 %v3920_v17 }
0x17b8   :  { %v2106_v26 = vpop.permute.xlu1 %2105 }
0x17b9   :  { %v2111_v23 = vsel %vm165_vm3, %v2106_v26, 0 }
0x17ba   :  { %2120 = vmatpush.bf16.xpose.msra.mxu3 %v2111_v23 }
0x17c1   :  { %2997 = vmatmul.msk.bf16.vlgmr.msra.gmra.mxu3 %vm165_vm3, %v2100_v39 }
0x1828   :  { %v2146_v14 = vpop.f32.mrf.mxu0 }
0x1829   :  { %v2151_v3 = vmul.f32 0.25, %v2146_v14 }
0x182b   :  { %v2155_v49 = vsel %vm1449_vm0, %v2151_v3, -inf }
0x182c   :  { %2156 = vmax.xlane.f32.xlu1 %v2155_v49 }
0x1830   :  { %v2148_v40 = vpop.f32.mrf.mxu0 }
0x1844   :  { %v2122_v20 = vpop.f32.mrf.mxu3 }
0x1845   :  { %v2150_v8 = vmul.f32 0.25, %v2122_v20  ;;  %2228 = vrot.lane.b32.xlu1 %v3872_v2, %s3317_s20 }
0x1847   :  { %v2152_v30 = vsel %vm1449_vm0, %v2150_v8, -inf }
0x1848   :  { %2153 = vmax.xlane.f32.xlu0 %v2152_v30 }
0x184c   :  { %v2124_v51 = vpop.f32.mrf.mxu3 }
0x185c   :  { %2197 = vrot.lane.b32.xlu0 %v2128_v46, %s3320_s13 }
0x189f   :  { %v2157_v36 = vpop.xlane.xlu1 %2156 }
0x18a0   :  { %v2159_v43 = vsub.f32 %v2151_v3, %v2157_v36 }
0x18a2   :  { %v2162_v57 = vmul.f32 1.442695, %v2159_v43 }
0x18a4   :  { %3258 = vpow2.f32 %v2162_v57 }
0x18aa   :  { %v3259_v58 = vpop.eup %3258 }
0x18ab   :  { %v2167_v61 = vsel %vm1449_vm0, %v3259_v58, 0.0 }
0x18ac   :  { %2168 = vadd.xlane.f32.xlu2 %v2167_v61 }
0x18b7   :  { %v2229_v16 = vpop.permute.xlu1 %2228 }
0x18b8   :  { %2247 = vmatpush.bf16.msrb.mxu3 %v2229_v16 }
0x18bb   :  { %v2154_v62 = vpop.xlane.xlu0 %2153 }
0x18bc   :  { %v2158_v63 = vsub.f32 %v2150_v8, %v2154_v62 }
0x18be   :  { %v2160_v0 = vmul.f32 1.442695, %v2158_v63  ;;  %v3136_v63 = vld [vmem:[%s4050_s2 + $0x31] ss:$0 sm:$0xff] }
0x18c0   :  { %3260 = vpow2.f32 %v2160_v0 }
0x18c6   :  { %v3261_v55 = vpop.eup %3260 }
0x18c7   :  { %v2164_v2 = vsel %vm1449_vm0, %v3261_v55, 0.0 }
0x18c8   :  { %2165 = vadd.xlane.f32.xlu0 %v2164_v2  ;;  %v3137_v2 = vld [vmem:[%s4050_s2 + $0x32] ss:$0 sm:$0xff] }
0x18ce   :  { %v2198_v4 = vpop.permute.xlu0 %2197 }
0x18cf   :  { %v2203_v5 = vsel %vm1479_vm14, %v2198_v4, 0 }
0x18d0   :  { %2212 = vmatpush.bf16.msra.mxu2 %v2203_v5 }
0x18dc   :  { %2176 = vrot.lane.b32.xlu0 %v2104_v9, %s3320_s13 }
0x18e4   :  { %2226 = vrot.lane.b32.xlu0 %v3876_v32, %s3317_s20 }
0x191f   :  { %v2169_v6 = vpop.xlane.xlu2 %2168 }
0x1920   :  { %3262 = vrcp.f32 %v2169_v6 }
0x1926   :  { %v3263_v50 = vpop.eup %3262 }
0x1927   :  { %v2173_v56 = vmul.f32 %v3263_v50, %v3259_v58 }
0x1929   :  { %v2175_v7 = vpack.c.bf16 %v2173_v56, %v2173_v56 }
0x192b   :  { %3000 = vmatmul.msk.bf16.vlgmr.msra.gmra.mxu2 %vm41_vm1, %v2175_v7 }
0x193b   :  { %v2166_v11 = vpop.xlane.xlu0 %2165 }
0x193c   :  { %3264 = vrcp.f32 %v2166_v11 }
0x1942   :  { %v3265_v25 = vpop.eup %3264 }
0x1943   :  { %v2172_v59 = vmul.f32 %v3265_v25, %v3261_v55 }
0x1945   :  { %v2174_v13 = vpack.c.bf16 %v2172_v59, %v2172_v59 }
0x194e   :  { %v2177_v52 = vpop.permute.xlu0 %2176 }
0x194f   :  { %v2182_v60 = vsel %vm1479_vm14, %v2177_v52, 0 }
0x1950   :  { %2191 = vmatpush.bf16.msrb.mxu1 %v2182_v60 }
0x1953   :  { %2999 = vmatmul.msk.bf16.vlgmr.msrb.gmra.mxu1 %vm41_vm1, %v2174_v13 }
0x1956   :  { %v2227_v42 = vpop.permute.xlu0 %2226 }
0x1957   :  { %2248 = vmatpush.bf16.msrb.mxu3 %v2227_v42 }
0x19ae   :  { %v2214_v1 = vpop.f32.mrf.mxu2 }
0x19af   :  { %v2219_v32 = vpack.c.bf16 %v2214_v1, %v2214_v1 }
0x19b1   :  { %2224 = vst [vmem:[#allocation1 + $0x1] ss:$4 sm:$0xff] %v2219_v32 }
0x19b6   :  { %v2216_v10 = vpop.f32.mrf.mxu2 }
0x19d0   :  { %v2193_v18 = vpop.f32.mrf.mxu1 }
0x19d1   :  { %v2218_v35 = vpack.c.bf16 %v2193_v18, %v2193_v18 }
0x19d3   :  { %2221 = vst [vmem:[#allocation1] ss:$4 sm:$0xff] %v2218_v35 }
0x19d8   :  { %v2195_v19 = vpop.f32.mrf.mxu1 }
0x19da   :  { %v2225_v48 = vld.sshfl [vmem:[#allocation1] sm:$0xff pattern:$0x73625140] }
0x19db   :  { %3001 = vmatmul.msk.bf16.vlgmr.msrb.gmra.mxu3 %vm128_vm2, %v2225_v48  ;;  %2234 = vst [vmem:[#allocation1] ss:$2 sm:$0xff] %v3885_v24 }
0x19dc   :  { %2236 = vst [vmem:[#allocation1 + $0x1] ss:$2 sm:$0xff] %v3889_v29 }
0x19e3   :  { %v2237_v21 = vld.sshfl [vmem:[#allocation1] sm:$0xff pattern:$0x75316420] }
0x1a5e   :  { %v2250_v31 = vpop.f32.mrf.mxu3 }
0x1a5f   :  { %v2251_v28 = vadd.f32 %v2250_v31, %v2237_v21 }
0x1a61   :  { %v2259_v34 = vsel %vm1551_vm13, %v2251_v28, 0.0  ;;  %v2255_v37 = vrot.slane %v2251_v28, 4 }
0x1a62   :  { %2260 = vadd.xlane.f32.xlu2 %v2259_v34 }
0x1a63   :  { %v2262_v41 = vsel %vm1551_vm13, %v2255_v37, 0.0 }
0x1a64   :  { %2263 = vadd.xlane.f32.xlu0 %v2262_v41 }
0x1a66   :  { %v2252_v24 = vpop.f32.mrf.mxu3 }
0x1a78   :  { %2347 = vrot.lane.b32.xlu0 %v3920_v17, %s3319_s12 }
0x1a7a   :  { %2349 = vrot.lane.b32.xlu2 %v3917_v53, %s3319_s12 }
0x1ad5   :  { %v2261_v29 = vpop.xlane.xlu2 %2260 }
0x1ad6   :  { %v2265_v38 = vmul.f32 %v2261_v29, %v3443_v22 }
0x1ad7   :  { %v2264_v39 = vpop.xlane.xlu0 %2263 }
0x1ad8   :  { %v2267_v45 = vsub.f32 %v2251_v28, %v2265_v38  ;;  %v2266_v27 = vmul.f32 %v2264_v39, %v3443_v22 }
0x1ada   :  { %v2268_v12 = vsub.f32 %v2255_v37, %v2266_v27  ;;  %v2269_v9 = vmul.f32 %v2267_v45, %v2267_v45 }
0x1adc   :  { %v2271_v46 = vsel %vm1551_vm13, %v2269_v9, 0.0  ;;  %v2270_v15 = vmul.f32 %v2268_v12, %v2268_v12 }
0x1add   :  { %2272 = vadd.xlane.f32.xlu1 %v2271_v46  ;;  %v2350_v44 = vpop.permute.xlu2 %2349 }
0x1ade   :  { %v2274_v47 = vsel %vm1551_vm13, %v2270_v15, 0.0  ;;  %2359 = vmatpush.bf16.msra.mxu1 %v2350_v44 }
0x1adf   :  { %2275 = vadd.xlane.f32.xlu2 %v2274_v47 }
0x1aea   :  { %v2348_v26 = vpop.permute.xlu0 %2347 }
0x1aeb   :  { %2360 = vmatpush.bf16.msra.mxu1 %v2348_v26 }
0x1aee   :  { %3011 = vmatmul.msk.bf16.vlgmr.msra.gmra.mxu1 %vm128_vm2, %v3800_v54 }
0x1afe   :  { %3012 = vmatmul.msk.bf16.gmra.mxu1 %vm128_vm2, %v3817_v33 }
0x1b50   :  { %v2273_v23 = vpop.xlane.xlu1 %2272 }
0x1b51   :  { %v2277_v14 = vmul.f32 %v2273_v23, %v3443_v22 }
0x1b52   :  { %v2276_v3 = vpop.xlane.xlu2 %2275 }
0x1b53   :  { %v2279_v49 = vadd.f32 1e-05, %v2277_v14  ;;  %v2278_v40 = vmul.f32 %v2276_v3, %v3443_v22 }
0x1b55   :  { %3266 = vrsqrt.f32 %v2279_v49  ;;  %v2280_v20 = vadd.f32 1e-05, %v2278_v40  ;;  %vm2287_vm14 = vweird.f32 %v2279_v49 }
0x1b57   :  { %3268 = vrsqrt.f32 %v2280_v20  ;;  %vm2297_vm8 = vweird.f32 %v2280_v20 }
0x1b5b   :  { %v3267_v8 = vpop.eup %3266 }
0x1b5c   :  { %v2282_v30 = vmul.f32 %v3267_v8, %v2279_v49  ;;  %vm2288_vm1 = vweird.f32 %v3267_v8 }
0x1b5d   :  { %v3269_v51 = vpop.eup %3268  ;;  %vm2289_vm7 = vmor %vm2287_vm14, %vm2288_vm1 }
0x1b5e   :  { %v2283_v36 = vmul.f32 %v3267_v8, %v2282_v30  ;;  %v2292_v43 = vmul.f32 %v3269_v51, %v2280_v20  ;;  %vm2298_vm0 = vweird.f32 %v3269_v51 }
0x1b5f   :  { %vm2299_vm9 = vmor %vm2297_vm8, %vm2298_vm0 }
0x1b60   :  { %v2284_v57 = vmul.f32 0.5, %v2283_v36  ;;  %v2293_v54 = vmul.f32 %v3269_v51, %v2292_v43 }
0x1b62   :  { %v2285_v58 = vsub.f32 1.5, %v2284_v57  ;;  %v2294_v33 = vmul.f32 0.5, %v2293_v54 }
0x1b64   :  { %v2286_v61 = vmul.f32 %v3267_v8, %v2285_v58  ;;  %v2295_v62 = vsub.f32 1.5, %v2294_v33 }
0x1b66   :  { %v2290_v0 = vsel %vm2289_vm7, %v3267_v8, %v2286_v61  ;;  %v2296_v55 = vmul.f32 %v3269_v51, %v2295_v62 }
0x1b67   :  { %v2301_v4 = vmul.f32 %v2290_v0, %v2267_v45 }
0x1b68   :  { %v2300_v5 = vsel %vm2299_vm9, %v3269_v51, %v2296_v55  ;;  %vm2761_vm9 = vcmask 523264  }
0x1b69   :  { %v2304_v6 = vmul.f32 %v3136_v63, %v2301_v4  ;;  %v2302_v50 = vmul.f32 %v2300_v5, %v2268_v12 }
0x1b6b   :  { %v3945_v56 = vadd.f32 %v3137_v2, %v2304_v6  ;;  %v2305_v7 = vmul.f32 %v3136_v63, %v2302_v50  ;;  %v2362_v11 = vpop.f32.mrf.mxu1 }
0x1b6c   :  { %v2374_v60 = vpack.c.bf16 %v2362_v11, %v2362_v11 }
0x1b6d   :  { %v2309_v25 = vpack.c.bf16 %v3945_v56, %v3945_v56  ;;  %v3949_v59 = vadd.f32 %v3137_v2, %v2305_v7 }
0x1b6e   :  { %v2380_v32 = vunpack.c.l.b16 %v2374_v60 }
0x1b6f   :  { %2312 = vst [vmem:[#allocation1] ss:$4 sm:$0xff] %v2309_v25  ;;  %v2310_v52 = vpack.c.bf16 %v3949_v59, %v3949_v59 }
0x1b71   :  { %2315 = vst [vmem:[#allocation1 + $0x1] ss:$4 sm:$0xff] %v2310_v52 }
0x1b73   :  { %v2364_v13 = vpop.f32.mrf.mxu1 }
0x1b74   :  { %v2375_v1 = vpack.c.bf16 %v2364_v13, %v2364_v13 }
0x1b76   :  { %v2381_v16 = vunpack.c.l.b16 %v2375_v1 }
0x1b78   :  { %v2382_v42 = vpack.c.b16 %v2381_v16, %v2380_v32  ;;  %v2316_v10 = vld.sshfl [vmem:[#allocation1] sm:$0xff pattern:$0x73625140] }
0x1b79   :  { %3010 = vmatmul.msk.bf16.vlgmr.msra.gmra.mxu0 %vm128_vm2, %v2316_v10 }
0x1b7a   :  { %v2387_v18 = vsel %vm165_vm3, %v2382_v42, 0 }
0x1b7b   :  { %v2367_v35 = vpop.f32.mrf.mxu1  ;;  %2396 = vmatpush.bf16.xpose.msrb.mxu2 %v2387_v18 }
0x1b7c   :  { %v2376_v19 = vpack.c.bf16 %v2367_v35, %v2367_v35 }
0x1b7e   :  { %v2404_v31 = vunpack.c.l.b16 %v2376_v19 }
0x1b83   :  { %v2369_v48 = vpop.f32.mrf.mxu1 }
0x1b84   :  { %v2377_v21 = vpack.c.bf16 %v2369_v48, %v2369_v48 }
0x1b86   :  { %v2405_v28 = vunpack.c.l.b16 %v2377_v21 }
0x1b88   :  { %v2406_v34 = vpack.c.b16 %v2405_v28, %v2404_v31 }
0x1b8a   :  { %v2411_v37 = vsel %vm165_vm3, %v2406_v34, 0 }
0x1b8b   :  { %2420 = vmatpush.bf16.xpose.msra.mxu3 %v2411_v37 }
0x1bf6   :  { %v2340_v41 = vpop.f32.mrf.mxu0 }
0x1bf7   :  { %v2345_v24 = vrot.slane %v2340_v41, 4  ;;  %v2372_v29 = vpack.c.bf16 %v2340_v41, %v2340_v41 }
0x1bf9   :  { %v2373_v38 = vpack.c.bf16 %v2345_v24, %v2345_v24  ;;  %3013 = vmatmul.msk.bf16.vlgmr.msrb.gmra.mxu2 %vm165_vm3, %v2372_v29  ;;  %v3082_v29 = vld [vmem:[#allocation2 + $0x90] sm:$0xff] }
0x1bfb   :  { %3014 = vmatmul.msk.bf16.vlgmr.msra.gmra.mxu3 %vm165_vm3, %v2373_v38 }
0x1bfe   :  { %v2342_v39 = vpop.f32.mrf.mxu0 }
0x1c7c   :  { %v2398_v45 = vpop.f32.mrf.mxu2 }
0x1c7d   :  { %v2426_v15 = vmul.f32 0.25, %v2398_v45 }
0x1c7e   :  { %v2422_v27 = vpop.f32.mrf.mxu3 }
0x1c7f   :  { %v2427_v12 = vmul.f32 0.25, %v2422_v27  ;;  %v2428_v47 = vsel %vm1741_vm11, %v2426_v15, -inf }
0x1c81   :  { %v2431_v9 = vsel %vm1741_vm11, %v2427_v12, -inf }
0x1c82   :  { %2432 = vmax.xlane.f32.xlu1 %v2431_v9 }
0x1c84   :  { %v2400_v46 = vpop.f32.mrf.mxu2 }
0x1c86   :  { %v2424_v44 = vpop.f32.mrf.mxu3 }
0x1c8a   :  { %2429 = vmax.xlane.f32.xlu1 %v2428_v47 }
0x1ca3   :  { %2471 = vrot.lane.b32.xlu1 %v2406_v34, %s3319_s12  ;;  %v3083_v34 = vld [vmem:[#allocation2 + $0x98] sm:$0xff] }
0x1cab   :  { %2500 = vrot.lane.b32.xlu1 %v3917_v53, %s3317_s20 }
0x1cf5   :  { %v2433_v26 = vpop.xlane.xlu1 %2432 }
0x1cf6   :  { %v2435_v23 = vsub.f32 %v2427_v12, %v2433_v26 }
0x1cf8   :  { %v2438_v14 = vmul.f32 1.442695, %v2435_v23 }
0x1cfa   :  { %3270 = vpow2.f32 %v2438_v14  ;;  %v3138_v14 = vld [vmem:[%s4050_s2 + $0x33] ss:$0 sm:$0xff] }
0x1cfd   :  { %v2430_v3 = vpop.xlane.xlu1 %2429 }
0x1cfe   :  { %v2434_v49 = vsub.f32 %v2426_v15, %v2430_v3 }
0x1d00   :  { %v3271_v40 = vpop.eup %3270  ;;  %v2436_v20 = vmul.f32 1.442695, %v2434_v49 }
0x1d01   :  { %v2443_v8 = vsel %vm1741_vm11, %v3271_v40, 0.0 }
0x1d02   :  { %3272 = vpow2.f32 %v2436_v20  ;;  %2444 = vadd.xlane.f32.xlu0 %v2443_v8 }
0x1d08   :  { %v3273_v30 = vpop.eup %3272 }
0x1d09   :  { %v2440_v51 = vsel %vm1741_vm11, %v3273_v30, 0.0 }
0x1d0a   :  { %2441 = vadd.xlane.f32.xlu2 %v2440_v51 }
0x1d15   :  { %v2472_v36 = vpop.permute.xlu1 %2471 }
0x1d16   :  { %2484 = vmatpush.bf16.msra.mxu2 %v2472_v36 }
0x1d1d   :  { %v2501_v0 = vpop.permute.xlu1 %2500 }
0x1d1e   :  { %2519 = vmatpush.bf16.msrb.mxu3 %v2501_v0 }
0x1d22   :  { %2452 = vrot.lane.b32.xlu2 %v2382_v42, %s3319_s12 }
0x1d2a   :  { %2498 = vrot.lane.b32.xlu2 %v3920_v17, %s3317_s20 }
0x1d75   :  { %v2445_v53 = vpop.xlane.xlu0 %2444 }
0x1d76   :  { %3274 = vrcp.f32 %v2445_v53 }
0x1d7c   :  { %v3275_v43 = vpop.eup %3274 }
0x1d7d   :  { %v2449_v57 = vmul.f32 %v3275_v43, %v3271_v40  ;;  %v2442_v54 = vpop.xlane.xlu2 %2441  ;;  %v3139_v40 = vld [vmem:[%s4050_s2 + $0x34] ss:$0 sm:$0xff] }
0x1d7e   :  { %3276 = vrcp.f32 %v2442_v54 }
0x1d7f   :  { %v2451_v58 = vpack.c.bf16 %v2449_v57, %v2449_v57 }
0x1d81   :  { %3016 = vmatmul.msk.bf16.vlgmr.msra.gmra.mxu2 %vm165_vm3, %v2451_v58  ;;  %v3140_v58 = vld [vmem:[%s4050_s2 + $0x2f] ss:$0 sm:$0xff] }
0x1d84   :  { %v3277_v33 = vpop.eup %3276 }
0x1d85   :  { %v2448_v61 = vmul.f32 %v3277_v33, %v3273_v30  ;;  %v2453_v62 = vpop.permute.xlu2 %2452 }
0x1d86   :  { %2465 = vmatpush.bf16.msrb.mxu0 %v2453_v62 }
0x1d87   :  { %v2450_v63 = vpack.c.bf16 %v2448_v61, %v2448_v61 }
0x1d89   :  { %3015 = vmatmul.msk.bf16.vlgmr.msrb.gmra.mxu0 %vm165_vm3, %v2450_v63 }
0x1d8a   :  { %2618 = vmatpush.bf16.msra.mxu0 %v3083_v34 }
0x1d8d   :  { %v2499_v55 = vpop.permute.xlu2 %2498 }
0x1d8e   :  { %2520 = vmatpush.bf16.msrb.mxu3 %v2499_v55  ;;  %2619 = vmatpush.bf16.msra.mxu0 %v3082_v29 }
0x1e04   :  { %v2486_v17 = vpop.f32.mrf.mxu2 }
0x1e05   :  { %v2491_v2 = vpack.c.bf16 %v2486_v17, %v2486_v17 }
0x1e06   :  { %v2467_v4 = vpop.f32.mrf.mxu0 }
0x1e07   :  { %2496 = vst [vmem:[#allocation1 + $0x1] ss:$4 sm:$0xff] %v2491_v2  ;;  %v2490_v5 = vpack.c.bf16 %v2467_v4, %v2467_v4 }
0x1e09   :  { %2493 = vst [vmem:[#allocation1] ss:$4 sm:$0xff] %v2490_v5 }
0x1e0c   :  { %v2488_v6 = vpop.f32.mrf.mxu2 }
0x1e0e   :  { %v2469_v50 = vpop.f32.mrf.mxu0 }
0x1e10   :  { %v2497_v7 = vld.sshfl [vmem:[#allocation1] sm:$0xff pattern:$0x73625140] }
0x1e11   :  { %3017 = vmatmul.msk.bf16.vlgmr.msrb.gmra.mxu3 %vm128_vm2, %v2497_v7  ;;  %2506 = vst [vmem:[#allocation1] ss:$2 sm:$0xff] %v3945_v56 }
0x1e12   :  { %2508 = vst [vmem:[#allocation1 + $0x1] ss:$2 sm:$0xff] %v3949_v59 }
0x1e19   :  { %v2509_v11 = vld.sshfl [vmem:[#allocation1] sm:$0xff pattern:$0x75316420] }
0x1e94   :  { %v2522_v25 = vpop.f32.mrf.mxu3 }
0x1e95   :  { %v2523_v52 = vadd.f32 %v2522_v25, %v2509_v11 }
0x1e97   :  { %v2531_v60 = vsel %vm1551_vm13, %v2523_v52, 0.0  ;;  %v2527_v13 = vrot.slane %v2523_v52, 4 }
0x1e98   :  { %2532 = vadd.xlane.f32.xlu1 %v2531_v60 }
0x1e99   :  { %v2534_v1 = vsel %vm1551_vm13, %v2527_v13, 0.0 }
0x1e9a   :  { %2535 = vadd.xlane.f32.xlu0 %v2534_v1 }
0x1e9c   :  { %v2524_v32 = vpop.f32.mrf.mxu3 }
0x1f0b   :  { %v2533_v16 = vpop.xlane.xlu1 %2532 }
0x1f0c   :  { %v2537_v42 = vmul.f32 %v2533_v16, %v3443_v22  ;;  %v3141_v16 = vld [vmem:[%s4050_s2 + $0x30] ss:$0 sm:$0xff] }
0x1f0d   :  { %v2536_v10 = vpop.xlane.xlu0 %2535 }
0x1f0e   :  { %v2539_v18 = vsub.f32 %v2523_v52, %v2537_v42  ;;  %v2538_v56 = vmul.f32 %v2536_v10, %v3443_v22 }
0x1f10   :  { %v2540_v35 = vsub.f32 %v2527_v13, %v2538_v56  ;;  %v2541_v59 = vmul.f32 %v2539_v18, %v2539_v18 }
0x1f12   :  { %v2543_v19 = vsel %vm1551_vm13, %v2541_v59, 0.0  ;;  %v2542_v48 = vmul.f32 %v2540_v35, %v2540_v35 }
0x1f13   :  { %2544 = vadd.xlane.f32.xlu2 %v2543_v19 }
0x1f14   :  { %v2546_v21 = vsel %vm1551_vm13, %v2542_v48, 0.0 }
0x1f15   :  { %2547 = vadd.xlane.f32.xlu0 %v2546_v21 }
0x1f29   :  { %2651 = vrot.lane.b32.xlu0 %v3083_v34, %s3320_s13 }
0x1f31   :  { %2649 = vrot.lane.b32.xlu0 %v3082_v29, %s3320_s13 }
0x1f86   :  { %v2545_v31 = vpop.xlane.xlu2 %2544 }
0x1f87   :  { %v2549_v28 = vmul.f32 %v2545_v31, %v3443_v22 }
0x1f88   :  { %v2548_v37 = vpop.xlane.xlu0 %2547 }
0x1f89   :  { %v2551_v41 = vadd.f32 1e-05, %v2549_v28  ;;  %v2550_v24 = vmul.f32 %v2548_v37, %v3443_v22 }
0x1f8b   :  { %3278 = vrsqrt.f32 %v2551_v41  ;;  %v2552_v38 = vadd.f32 1e-05, %v2550_v24  ;;  %vm2559_vm11 = vweird.f32 %v2551_v41 }
0x1f8d   :  { %3280 = vrsqrt.f32 %v2552_v38  ;;  %vm2569_vm15 = vweird.f32 %v2552_v38 }
0x1f91   :  { %v3279_v39 = vpop.eup %3278 }
0x1f92   :  { %v2554_v45 = vmul.f32 %v3279_v39, %v2551_v41  ;;  %vm2560_vm3 = vweird.f32 %v3279_v39 }
0x1f93   :  { %v3281_v27 = vpop.eup %3280  ;;  %vm2561_vm12 = vmor %vm2559_vm11, %vm2560_vm3  ;;  %vm2764_vm3 = vcmask 785408   ;;  %vm2795_vm11 = vcmask 1041409  }
0x1f94   :  { %v2555_v12 = vmul.f32 %v3279_v39, %v2554_v45  ;;  %v2564_v9 = vmul.f32 %v3281_v27, %v2552_v38  ;;  %vm2570_vm10 = vweird.f32 %v3281_v27 }
0x1f95   :  { %vm2571_vm4 = vmor %vm2569_vm15, %vm2570_vm10 }
0x1f96   :  { %v2556_v46 = vmul.f32 0.5, %v2555_v12  ;;  %v2565_v15 = vmul.f32 %v3281_v27, %v2564_v9 }
0x1f98   :  { %v2557_v44 = vsub.f32 1.5, %v2556_v46  ;;  %v2566_v47 = vmul.f32 0.5, %v2565_v15 }
0x1f9a   :  { %v2558_v26 = vmul.f32 %v3279_v39, %v2557_v44  ;;  %v2567_v23 = vsub.f32 1.5, %v2566_v47 }
0x1f9b   :  { %v2652_v61 = vpop.permute.xlu0 %2651 }
0x1f9c   :  { %v2562_v3 = vsel %vm2561_vm12, %v3279_v39, %v2558_v26  ;;  %v2568_v49 = vmul.f32 %v3281_v27, %v2567_v23  ;;  %2669 = vmatpush.bf16.msrb.mxu1 %v2652_v61 }
0x1f9d   :  { %v2573_v20 = vmul.f32 %v2562_v3, %v2539_v18 }
0x1f9e   :  { %v2572_v8 = vsel %vm2571_vm4, %v3281_v27, %v2568_v49 }
0x1f9f   :  { %v2576_v30 = vmul.f32 %v3138_v14, %v2573_v20  ;;  %v2574_v51 = vmul.f32 %v2572_v8, %v2540_v35 }
0x1fa1   :  { %v2579_v36 = vadd.f32 %v3139_v40, %v2576_v30  ;;  %v2577_v53 = vmul.f32 %v3138_v14, %v2574_v51 }
0x1fa3   :  { %v2583_v43 = vpack.c.bf16 %v2579_v36, %v2579_v36  ;;  %v2580_v57 = vadd.f32 %v3139_v40, %v2577_v53  ;;  %v2650_v62 = vpop.permute.xlu0 %2649 }
0x1fa4   :  { %2670 = vmatpush.bf16.msrb.mxu1 %v2650_v62 }
0x1fa5   :  { %2587 = vst [vmem:[#allocation1] ss:$4 sm:$0xff] %v2583_v43  ;;  %v2584_v54 = vpack.c.bf16 %v2580_v57, %v2580_v57 }
0x1fa7   :  { %2590 = vst [vmem:[#allocation1 + $0x1] ss:$4 sm:$0xff] %v2584_v54 }
0x1fae   :  { %v2591_v33 = vld.sshfl [vmem:[#allocation1] sm:$0xff pattern:$0x73625140] }
0x1faf   :  { %3026 = vmatmul.msk.bf16.vlgmr.msra.gmra.mxu0 %vm128_vm2, %v2591_v33  ;;  %2605 = vst [vmem:[#allocation1] ss:$2 sm:$0xff] %v3140_v58 }
0x1fb0   :  { %2607 = vst [vmem:[#allocation1 + $0x1] ss:$2 sm:$0xff] %v3140_v58 }
0x1fb7   :  { %v2608_v63 = vld.sshfl [vmem:[#allocation1] sm:$0xff pattern:$0x75316420] }
0x202c   :  { %v2621_v0 = vpop.f32.mrf.mxu0 }
0x202d   :  { %v2622_v55 = vadd.f32 %v2621_v0, %v2608_v63 }
0x202f   :  { %v2626_v17 = vrot.slane %v2622_v55, 4  ;;  %v2630_v2 = vmin.f32 %v2622_v55, 0.0  ;;  %vm2628_vm5 = vcmp.gt.f32.partialorder %v2622_v55, 0.0 }
0x2031   :  { %v2631_v4 = vmin.f32 %v2626_v17, 0.0  ;;  %v2632_v5 = vmul.f32 1.442695, %v2630_v2  ;;  %vm2629_vm6 = vcmp.gt.f32.partialorder %v2626_v17, 0.0 }
0x2033   :  { %3282 = vpow2.f32 %v2632_v5  ;;  %v2634_v6 = vmul.f32 1.442695, %v2631_v4 }
0x2034   :  { %v2623_v50 = vpop.f32.mrf.mxu0 }
0x2035   :  { %3284 = vpow2.f32 %v2634_v6 }
0x2039   :  { %v3283_v7 = vpop.eup %3282 }
0x203a   :  { %v3027_v11 = vadd.f32 -1.0, %v3283_v7 }
0x203b   :  { %v3285_v25 = vpop.eup %3284 }
0x203c   :  { %v3028_v52 = vadd.f32 -1.0, %v3285_v25  ;;  %v2638_v60 = vsel %vm2628_vm5, %v2622_v55, %v3027_v11  ;;  %v3091_v25 = vld [vmem:[%s4051_s3 + $0x38] sm:$0xff] }
0x203d   :  { %v2640_v13 = vpack.c.bf16 %v2638_v60, %v2638_v60  ;;  %2851 = vmatpush.bf16.msrb.mxu2 %v3091_v25  ;;  %v3089_v60 = vld [vmem:[%s4051_s3 + $0x28] sm:$0xff] }
0x203e   :  { %v2639_v1 = vsel %vm2629_vm6, %v2626_v17, %v3028_v52  ;;  %v3090_v52 = vld [vmem:[%s4051_s3 + $0x30] sm:$0xff] }
0x203f   :  { %v2641_v32 = vpack.c.bf16 %v2639_v1, %v2639_v1  ;;  %2644 = vst [vmem:[#allocation1] ss:$4 sm:$0xff] %v2640_v13  ;;  %v3088_v13 = vld [vmem:[%s4051_s3 + $0x20] sm:$0xff]  ;;  %v3087_v1 = vld [vmem:[%s4051_s3 + $0x18] sm:$0xff] }
0x2041   :  { %2647 = vst [vmem:[#allocation1 + $0x1] ss:$4 sm:$0xff] %v2641_v32  ;;  %2852 = vmatpush.bf16.msrb.mxu2 %v3090_v52  ;;  %v3086_v32 = vld [vmem:[%s4051_s3 + $0x10] sm:$0xff] }
0x2045   :  { %2853 = vmatpush.bf16.msrb.mxu2 %v3089_v60 }
0x2048   :  { %v2648_v42 = vld.sshfl [vmem:[#allocation1] sm:$0xff pattern:$0x73625140] }
0x2049   :  { %3029 = vmatmul.msk.bf16.vlgmr.msrb.gmra.mxu1 %vm128_vm2, %v2648_v42  ;;  %2656 = vst [vmem:[#allocation1] ss:$2 sm:$0xff] %v3141_v16  ;;  %2854 = vmatpush.bf16.msrb.mxu2 %v3088_v13  ;;  %v3084_v42 = vld [vmem:[%s4051_s3] sm:$0xff] }
0x204a   :  { %2658 = vst [vmem:[#allocation1 + $0x1] ss:$2 sm:$0xff] %v3141_v16  ;;  %v3085_v16 = vld [vmem:[%s4051_s3 + $0x8] sm:$0xff] }
0x204d   :  { %2855 = vmatpush.bf16.msrb.mxu2 %v3087_v1 }
0x2051   :  { %v2659_v10 = vld.sshfl [vmem:[#allocation1] sm:$0xff pattern:$0x75316420]  ;;  %2856 = vmatpush.bf16.msrb.mxu2 %v3086_v32 }
0x2055   :  { %2857 = vmatpush.bf16.msrb.mxu2 %v3085_v16 }
0x2059   :  { %2858 = vmatpush.bf16.msrb.mxu2 %v3084_v42 }
0x20c6   :  { %v2672_v18 = vpop.f32.mrf.mxu1 }
0x20c7   :  { %v2673_v56 = vadd.f32 %v2672_v18, %v2659_v10 }
0x20c9   :  { %v2677_v35 = vrot.slane %v2673_v56, 4  ;;  %v2679_v59 = vadd.f32 %v2673_v56, %v2579_v36 }
0x20cb   :  { %v2683_v19 = vsel %vm1551_vm13, %v2679_v59, 0.0  ;;  %v2680_v48 = vadd.f32 %v2677_v35, %v2580_v57  ;;  %v3143_v57 = vld [vmem:[%s4050_s2 + $0x36] ss:$0 sm:$0xff] }
0x20cc   :  { %2684 = vadd.xlane.f32.xlu2 %v2683_v19 }
0x20cd   :  { %v2686_v21 = vsel %vm1551_vm13, %v2680_v48, 0.0 }
0x20ce   :  { %v2674_v31 = vpop.f32.mrf.mxu1  ;;  %2687 = vadd.xlane.f32.xlu1 %v2686_v21 }
0x213f   :  { %v2685_v28 = vpop.xlane.xlu2 %2684 }
0x2140   :  { %v2689_v34 = vmul.f32 %v2685_v28, %v3443_v22 }
0x2141   :  { %v2688_v37 = vpop.xlane.xlu1 %2687 }
0x2142   :  { %v2691_v41 = vsub.f32 %v2679_v59, %v2689_v34  ;;  %v2690_v24 = vmul.f32 %v2688_v37, %v3443_v22 }
0x2144   :  { %v2692_v29 = vsub.f32 %v2680_v48, %v2690_v24  ;;  %v2693_v38 = vmul.f32 %v2691_v41, %v2691_v41 }
0x2146   :  { %v2695_v39 = vsel %vm1551_vm13, %v2693_v38, 0.0  ;;  %v2694_v45 = vmul.f32 %v2692_v29, %v2692_v29 }
0x2147   :  { %2696 = vadd.xlane.f32.xlu1 %v2695_v39 }
0x2148   :  { %v2698_v27 = vsel %vm1551_vm13, %v2694_v45, 0.0 }
0x2149   :  { %2699 = vadd.xlane.f32.xlu0 %v2698_v27 }
0x21ba   :  { %v2697_v12 = vpop.xlane.xlu1 %2696 }
0x21bb   :  { %v2701_v9 = vmul.f32 %v2697_v12, %v3443_v22 }
0x21bc   :  { %v2700_v46 = vpop.xlane.xlu0 %2699 }
0x21bd   :  { %v2703_v15 = vadd.f32 1e-05, %v2701_v9  ;;  %v2702_v44 = vmul.f32 %v2700_v46, %v3443_v22  ;;  %v3142_v22 = vld [vmem:[%s4050_s2 + $0x35] ss:$0 sm:$0xff] }
0x21bf   :  { %3286 = vrsqrt.f32 %v2703_v15  ;;  %v2704_v47 = vadd.f32 1e-05, %v2702_v44  ;;  %vm2711_vm1 = vweird.f32 %v2703_v15 }
0x21c1   :  { %3288 = vrsqrt.f32 %v2704_v47  ;;  %vm2721_vm7 = vweird.f32 %v2704_v47 }
0x21c5   :  { %v3287_v26 = vpop.eup %3286 }
0x21c6   :  { %v2706_v23 = vmul.f32 %v3287_v26, %v2703_v15  ;;  %vm2712_vm13 = vweird.f32 %v3287_v26 }
0x21c7   :  { %v3289_v14 = vpop.eup %3288  ;;  %vm2713_vm0 = vmor %vm2711_vm1, %vm2712_vm13 }
0x21c8   :  { %v2707_v3 = vmul.f32 %v3287_v26, %v2706_v23  ;;  %v2716_v49 = vmul.f32 %v3289_v14, %v2704_v47  ;;  %vm2722_vm14 = vweird.f32 %v3289_v14  ;;  %v2785_v47 = vld [vmem:[%s4050_s2 + $0xa] sm:$0x1] }
0x21c9   :  { %vm2723_vm8 = vmor %vm2721_vm7, %vm2722_vm14 }
0x21ca   :  { %v2708_v40 = vmul.f32 0.5, %v2707_v3  ;;  %v2717_v20 = vmul.f32 %v3289_v14, %v2716_v49 }
0x21cc   :  { %v2709_v8 = vsub.f32 1.5, %v2708_v40  ;;  %v2718_v30 = vmul.f32 0.5, %v2717_v20 }
0x21ce   :  { %v2710_v51 = vmul.f32 %v3287_v26, %v2709_v8  ;;  %v2719_v36 = vsub.f32 1.5, %v2718_v30 }
0x21d0   :  { %v2714_v53 = vsel %vm2713_vm0, %v3287_v26, %v2710_v51  ;;  %v2720_v43 = vmul.f32 %v3289_v14, %v2719_v36  ;;  %v2848_v26 = vrot.slane %v2785_v47, 7 }
0x21d1   :  { %v2725_v54 = vmul.f32 %v2714_v53, %v2691_v41 }
0x21d2   :  { %v2724_v58 = vsel %vm2723_vm8, %v3289_v14, %v2720_v43  ;;  %v2849_v23 = vsel %vm2795_vm11, %v2848_v26, %v2785_v47 }
0x21d3   :  { %v2728_v33 = vmul.f32 %v3142_v22, %v2725_v54  ;;  %v2726_v61 = vmul.f32 %v2724_v58, %v2692_v29 }
0x21d5   :  { %v2731_v62 = vadd.f32 %v3143_v57, %v2728_v33  ;;  %v2729_v63 = vmul.f32 %v3142_v22, %v2726_v61 }
0x21d7   :  { %v2732_v0 = vadd.f32 %v3143_v57, %v2729_v63  ;;  %v2743_v55 = vperm.slane %v2731_v62, 2  ;;  %v2735_v2 = vperm.slane %v2731_v62, 1  ;;  %v2751_v7 = vperm.slane %v2731_v62, 3 }
0x21d9   :  { %v2744_v17 = vperm.slane %v2732_v0, 2  ;;  %v2736_v4 = vperm.slane %v2732_v0, 1  ;;  %v2752_v50 = vperm.slane %v2732_v0, 3 }
0x21db   :  { %v3104_v5 = vpack.i.bf16 %v2743_v55, %v2744_v17  ;;  %v3099_v6 = vpack.i.bf16 %v2735_v2, %v2736_v4  ;;  %v3109_v11 = vpack.i.bf16 %v2751_v7, %v2752_v50 }
0x21dd   :  { %3105 = vrot.lane.b32.xlu1 %v3104_v5, %s3317_s20  ;;  %3100 = vrot.lane.b32.xlu2 %v3099_v6, %s3322_s22 }
0x21e5   :  { %3110 = vrot.lane.b32.xlu2 %v3109_v11, %s3320_s13 }
0x2237   :  { %v3101_v10 = vpop.permute.xlu2 %3100 }
0x2238   :  { %v3103_v18 = vunpack.i.h.bf16 %v3101_v10  ;;  %v3102_v56 = vunpack.i.l.bf16 %v3101_v10 }
0x223a   :  { %v2759_v21 = vsel %vm128_vm2, %v2731_v62, %v3103_v18  ;;  %v2760_v31 = vsel %vm128_vm2, %v2732_v0, %v3102_v56  ;;  %vm2867_vm2 = vcmask 122880  }
0x223f   :  { %v3111_v35 = vpop.permute.xlu2 %3110 }
0x2240   :  { %v3113_v28 = vunpack.i.h.bf16 %v3111_v35  ;;  %v3112_v34 = vunpack.i.l.bf16 %v3111_v35 }
0x224f   :  { %v3106_v59 = vpop.permute.xlu1 %3105 }
0x2250   :  { %v3108_v19 = vunpack.i.h.bf16 %v3106_v59  ;;  %v3107_v48 = vunpack.i.l.bf16 %v3106_v59 }
0x2252   :  { %v2762_v37 = vsel %vm2761_vm9, %v2759_v21, %v3108_v19  ;;  %v2763_v41 = vsel %vm2761_vm9, %v2760_v31, %v3107_v48 }
0x2253   :  { %v2765_v24 = vsel %vm2764_vm3, %v2762_v37, %v3113_v28  ;;  %v2766_v29 = vsel %vm2764_vm3, %v2763_v41, %v3112_v34 }
0x2254   :  { %v2767_v38 = vpack.c.bf16 %v2765_v24, %v2765_v24  ;;  %v2768_v39 = vpack.c.bf16 %v2766_v29, %v2766_v29 }
0x2256   :  { %v2788_v45 = vunpack.c.l.b16 %v2767_v38  ;;  %v2789_v27 = vunpack.c.l.b16 %v2768_v39 }
0x2258   :  { %v3031_v12 = vunpack.i.l.s16 %v2789_v27  ;;  %v3030_v9 = vunpack.i.l.s16 %v2788_v45 }
0x225a   :  { %v2794_v46 = vrot.slane %v3031_v12, 7 }
0x225c   :  { %v2796_v15 = vsel %vm2795_vm11, %v2794_v46, %v3030_v9 }
0x225d   :  { %v2797_v44 = vpack.c.b16 %v2796_v15, %v2796_v15 }
0x225f   :  { %2859 = vmatmul.bf16.vlgmr.msrb.gmra.mxu2 %v2797_v44 }
0x22e2   :  { %v2860_v14 = vpop.f32.mrf.mxu2 }
0x22e3   :  { %v2861_v3 = vadd.f32 %v2860_v14, %v2849_v23 }
0x22e5   :  { %v2865_v49 = vrot.slane %v2861_v3, 1  ;;  %2868 = vst.msk [vmem:[%s4052_s4] sm:$0x1] %vm2867_vm2, %v2861_v3 }
0x22e7   :  { %2869 = vst.msk [vmem:[%s4052_s4 + $0x1] sm:$0x1] %vm2867_vm2, %v2865_v49 }
0x22ea   :  { %v2862_v40 = vpop.f32.mrf.mxu2 }
0x22eb   :  { %2874 = vsyncpa [#allocation3], 1 }

</bundles_post_ra>
